<compile_context>
chip_gen: v6e
topology: v6e:2x2x1
jax: 0.10.0
libtpu: 0.0.40
codegen_flags: <defaults>
</compile_context>

<pallas_src>
import functools

import jax
import jax.numpy as jnp
from jax.experimental import pallas as pl
from jax.experimental.pallas import tpu as pltpu

BN_EPS = 1e-5
CPAD = 8      # pad xyz channels 3 -> 8 (friendly contraction dim); padded with zeros
KPAD = 128    # pad fc3 output k -> 128 lanes; sliced back to k in glue (log_softmax is per-column over batch)


# ----------------------------- Pallas kernels ------------------------------

def feat_kernel(xv_ref, w1_ref, b1_ref, w2_ref, b2_ref, w3_ref, b3_ref,
                wto_ref, b64_ref, wc2_ref, bc2_ref, wc3_ref, bc3_ref,
                gmax_ref, acc_ref):
    """PointNetfeat over grid (batch, point-tile); views looped inside.

    Per view: conv1+bn+relu, conv2+bn+relu, conv3+bn, then the convto64
    contribution is accumulated into acc (the channel-concat over views times
    convto64 == sum over views of per-view chunks).  After the view loop:
    bn_64+relu, conv2+bn2+relu, conv3+bn3 and a running max over points into
    the resident output block.
    """
    t = pl.program_id(1)
    n_views = w1_ref.shape[0]

    acc_ref[...] = jnp.zeros_like(acc_ref)

    @pl.loop(0, n_views)
    def _(v):
        x = xv_ref[v]                                                   # (TILE_N, CPAD) bf16
        # N_Views_MLP_for_3d: conv1(3->64)+bn+relu, conv2(64->128)+bn+relu, conv3(128->1024)+bn
        h = jnp.dot(x, w1_ref[v], preferred_element_type=jnp.float32) + b1_ref[v]
        h = jnp.maximum(h, 0.0)
        h = jnp.dot(h.astype(jnp.bfloat16), w2_ref[v],
                    preferred_element_type=jnp.float32) + b2_ref[v]
        h = jnp.maximum(h, 0.0)
        h = jnp.dot(h.astype(jnp.bfloat16), w3_ref[v],
                    preferred_element_type=jnp.float32) + b3_ref[v]      # (TILE_N, 1024) f32
        # convto64 on the view-concat == sum over views of (TILE_N,1024)@(1024,64) chunks
        acc_ref[...] += jnp.dot(h.astype(jnp.bfloat16), wto_ref[v],
                                preferred_element_type=jnp.float32)

    f64 = jnp.maximum(acc_ref[...] + b64_ref[...], 0.0)                  # bn_64 + relu (f32)
    h2 = jnp.maximum(
        jnp.dot(f64.astype(jnp.bfloat16), wc2_ref[...],
                preferred_element_type=jnp.float32) + bc2_ref[...], 0.0)  # conv2+bn2+relu
    h3 = jnp.dot(h2.astype(jnp.bfloat16), wc3_ref[...],
                 preferred_element_type=jnp.float32) + bc3_ref[...]       # conv3+bn3
    tile_max = jnp.max(h3, axis=0, keepdims=True)                         # (1, 1024) max over this tile's points

    @pl.when(t == 0)
    def _():
        gmax_ref[0] = tile_max

    @pl.when(t > 0)
    def _():
        gmax_ref[0] = jnp.maximum(gmax_ref[0], tile_max)


def head_kernel(g_ref, wf1_ref, bf1_ref, wf2_ref, bf2_ref, wf3_ref, bf3_ref, out_ref):
    """PointNetCls head: fc1+bn+relu, fc2+bn+relu, fc3, log_softmax(dim=0)."""
    x = g_ref[...]                                                      # (B, 1024) f32
    x = jnp.maximum(jnp.dot(x.astype(jnp.bfloat16), wf1_ref[...],
                            preferred_element_type=jnp.float32) + bf1_ref[...], 0.0)
    x = jnp.maximum(jnp.dot(x.astype(jnp.bfloat16), wf2_ref[...],
                            preferred_element_type=jnp.float32) + bf2_ref[...], 0.0)
    x = jnp.dot(x.astype(jnp.bfloat16), wf3_ref[...],
                preferred_element_type=jnp.float32) + bf3_ref[...]      # (B, KPAD)
    # F.log_softmax(x, dim=0): normalize over the *batch* dim, per output column (f32)
    m = jnp.max(x, axis=0, keepdims=True)
    lse = jnp.log(jnp.sum(jnp.exp(x - m), axis=0, keepdims=True)) + m
    out_ref[...] = x - lse


# ------------------------------- wrapper ------------------------------------

def _pick_tile_n(n, target):
    """Largest point-tile <= target that divides n and keeps sublane alignment."""
    if n <= target:
        return n                       # full-dim block is always legal
    for cand in range(target, 7, -1):
        if n % cand == 0 and cand % 8 == 0:
            return cand
    return n                           # fallback: whole point axis


def _feat_vmem_limit(tile_n, views):
    """Explicit scoped-VMEM budget sized from the chosen tile and view count."""
    per_view_w = views * (2 * (CPAD * 64 + 64 * 128 + 128 * 1024 + 1024 * 64)
                          + 4 * (64 + 128 + 1024))                 # bf16 weights + f32 biases, all views
    shared_w = 2 * (64 * 128 + 128 * 1024) + 4 * (64 + 128 + 1024 + 64)
    x_tile = views * tile_n * CPAD * 2
    live = tile_n * (1024 * 3 + 128 + 64 * 3) * 4                  # generous f32 intermediates + acc
    est = 2 * (x_tile + per_view_w + shared_w + 1024 * 4) + live + (8 << 20)
    return int(min(max(est, 32 << 20), 64 << 20))                  # stay under v7x physical VMEM


def pointnet_cls_forward(x, p, k, *, tile_n_target=1024):
    B, V, N, C = x.shape
    tile_n = _pick_tile_n(N, tile_n_target)
    nt = N // tile_n

    # pad xyz 3 -> CPAD with zeros; bf16 activations for the MXU
    xpad = jnp.zeros((B, V, N, CPAD), jnp.float32).at[..., :C].set(x).astype(jnp.bfloat16)

    per_view_w_bytes = 2 * (CPAD * 64 + 64 * 128 + 128 * 1024 + 1024 * 64) \
        + 4 * (64 + 128 + 1024)
    cost = pl.CostEstimate(
        flops=int(2 * B * N * V * (CPAD * 64 + 64 * 128 + 128 * 1024 + 1024 * 64)
                  + 2 * B * N * (64 * 128 + 128 * 1024)),
        transcendentals=0,
        bytes_accessed=int(B * V * N * CPAD * 2
                           + V * per_view_w_bytes                    # per-view weights: streamed once
                           + 2 * (64 * 128 + 128 * 1024)
                           + B * 1024 * 4),
    )

    gfeat = pl.pallas_call(
        feat_kernel,
        out_shape=jax.ShapeDtypeStruct((B, 1, 1024), jnp.float32),
        grid_spec=pltpu.PrefetchScalarGridSpec(
            num_scalar_prefetch=0,
            grid=(B, nt),                                            # views handled inside the kernel
            in_specs=[
                pl.BlockSpec((None, V, tile_n, CPAD), lambda b, t: (b, 0, t, 0)),  # x tile, batch squeezed
                pl.BlockSpec((V, CPAD, 64), lambda b, t: (0, 0, 0)),               # w1 stack (resident)
                pl.BlockSpec((V, 1, 64), lambda b, t: (0, 0, 0)),                  # b1 stack
                pl.BlockSpec((V, 64, 128), lambda b, t: (0, 0, 0)),                # w2 stack
                pl.BlockSpec((V, 1, 128), lambda b, t: (0, 0, 0)),                 # b2 stack
                pl.BlockSpec((V, 128, 1024), lambda b, t: (0, 0, 0)),              # w3 stack
                pl.BlockSpec((V, 1, 1024), lambda b, t: (0, 0, 0)),                # b3 stack
                pl.BlockSpec((V, 1024, 64), lambda b, t: (0, 0, 0)),               # convto64 chunks
                pl.BlockSpec((1, 64), lambda b, t: (0, 0)),                        # b64 (bn_64 folded)
                pl.BlockSpec((64, 128), lambda b, t: (0, 0)),                      # conv2 W
                pl.BlockSpec((1, 128), lambda b, t: (0, 0)),                       # conv2 b
                pl.BlockSpec((128, 1024), lambda b, t: (0, 0)),                    # conv3 W
                pl.BlockSpec((1, 1024), lambda b, t: (0, 0)),                      # conv3 b
            ],
            out_specs=pl.BlockSpec((1, 1, 1024), lambda b, t: (b, 0, 0)),          # running max per batch
            scratch_shapes=[pltpu.VMEM((tile_n, 64), jnp.float32)],                # convto64 accumulator
        ),
        compiler_params=pltpu.CompilerParams(
            dimension_semantics=("parallel", "arbitrary"),
            vmem_limit_bytes=_feat_vmem_limit(tile_n, V),
        ),
        cost_estimate=cost,
    )(xpad, p["w1"], p["b1"], p["w2"], p["b2"], p["w3"], p["b3"],
      p["wto"], p["b64"], p["wc2"], p["bc2"], p["wc3"], p["bc3"])

    gfeat = gfeat.reshape(B, 1024)

    logits_pad = pl.pallas_call(
        head_kernel,
        out_shape=jax.ShapeDtypeStruct((B, KPAD), jnp.float32),
        grid_spec=pltpu.PrefetchScalarGridSpec(
            num_scalar_prefetch=0,
            grid=(1,),
            in_specs=[
                pl.BlockSpec((B, 1024), lambda i: (0, 0)),
                pl.BlockSpec((1024, 512), lambda i: (0, 0)),
                pl.BlockSpec((1, 512), lambda i: (0, 0)),
                pl.BlockSpec((512, 256), lambda i: (0, 0)),
                pl.BlockSpec((1, 256), lambda i: (0, 0)),
                pl.BlockSpec((256, KPAD), lambda i: (0, 0)),
                pl.BlockSpec((1, KPAD), lambda i: (0, 0)),
            ],
            out_specs=pl.BlockSpec((B, KPAD), lambda i: (0, 0)),
        ),
        compiler_params=pltpu.CompilerParams(dimension_semantics=("arbitrary",)),
    )(gfeat, p["wf1"], p["bf1"], p["wf2"], p["bf2"], p["wf3"], p["bf3"])

    return logits_pad[:, :k]


# ------------------------- deterministic parameters --------------------------

def fold_bn(w, b, bn):
    gamma, beta, mean, var = bn
    s = gamma / jnp.sqrt(var + BN_EPS)
    t = beta - mean * s
    return w * jnp.expand_dims(s, -2), b * s + t


def make_params(key, views, k):
    keys = iter(jax.random.split(key, 128))

    def w(shape, fan_in):
        return jax.random.normal(next(keys), shape, jnp.float32) / jnp.sqrt(fan_in)

    def b(shape):
        return 0.05 * jax.random.normal(next(keys), shape, jnp.float32)

    def bn(shape):
        gamma = 1.0 + 0.1 * jax.random.normal(next(keys), shape, jnp.float32)
        beta = 0.1 * jax.random.normal(next(keys), shape, jnp.float32)
        mean = 0.1 * jax.random.normal(next(keys), shape, jnp.float32)
        var = jax.random.uniform(next(keys), shape, jnp.float32, minval=0.5, maxval=1.5)
        return gamma, beta, mean, var

    bf16 = lambda a: a.astype(jnp.bfloat16)   # weights in bf16 (MXU), biases stay f32

    V = views
    # per-view 3-layer MLPs (N_Views_MLP_for_3d), stacked on axis 0
    w1e, b1e = fold_bn(w((V, 3, 64), 3.0), b((V, 64)), bn((V, 64)))
    w2e, b2e = fold_bn(w((V, 64, 128), 64.0), b((V, 128)), bn((V, 128)))
    w3e, b3e = fold_bn(w((V, 128, 1024), 128.0), b((V, 1024)), bn((V, 1024)))
    w1p = jnp.zeros((V, CPAD, 64), jnp.float32).at[:, :3, :].set(w1e)   # pad in-channels 3 -> CPAD

    # convto64 (1024*V -> 64) viewed as V chunks of (1024, 64); bn_64 folded in
    wto_raw = w((V, 1024, 64), 1024.0 * V)
    bto_raw = b((64,))
    g64, bt64, m64, v64 = bn((64,))
    s64 = g64 / jnp.sqrt(v64 + BN_EPS)
    t64 = bt64 - m64 * s64
    wto = wto_raw * s64[None, None, :]
    b64 = (bto_raw * s64 + t64)[None, :]

    # PointNetfeat conv2 / conv3 (+bn2 / bn3)
    wc2, bc2 = fold_bn(w((64, 128), 64.0), b((128,)), bn((128,)))
    wc3, bc3 = fold_bn(w((128, 1024), 128.0), b((1024,)), bn((1024,)))

    # classifier head
    wf1, bf1 = fold_bn(w((1024, 512), 1024.0), b((512,)), bn((512,)))
    wf2, bf2 = fold_bn(w((512, 256), 512.0), b((256,)), bn((256,)))
    wf3_raw, bf3_raw = w((256, k), 256.0), b((k,))
    wf3 = jnp.zeros((256, KPAD), jnp.float32).at[:, :k].set(wf3_raw)
    bf3 = jnp.zeros((KPAD,), jnp.float32).at[:k].set(bf3_raw)

    return dict(
        w1=bf16(w1p), b1=b1e[:, None, :], w2=bf16(w2e), b2=b2e[:, None, :],
        w3=bf16(w3e), b3=b3e[:, None, :], wto=bf16(wto), b64=b64,
        wc2=bf16(wc2), bc2=bc2[None, :], wc3=bf16(wc3), bc3=bc3[None, :],
        wf1=bf16(wf1), bf1=bf1[None, :], wf2=bf16(wf2), bf2=bf2[None, :],
        wf3=bf16(wf3), bf3=bf3[None, :],
    )


# ---------------------------- plain-JAX reference ----------------------------

def reference_forward(x, p, k):
    f32 = lambda a: a.astype(jnp.float32)
    B, V, N, C = x.shape
    xpad = jnp.zeros((B, V, N, CPAD), jnp.float32).at[..., :C].set(x)
    acc = jnp.zeros((B, N, 64), jnp.float32)
    for v in range(V):
        h = jax.nn.relu(xpad[:, v] @ f32(p["w1"][v]) + f32(p["b1"][v]))
        h = jax.nn.relu(h @ f32(p["w2"][v]) + f32(p["b2"][v]))
        h = h @ f32(p["w3"][v]) + f32(p["b3"][v])
        acc = acc + h @ f32(p["wto"][v])
    f = jax.nn.relu(acc + f32(p["b64"]))
    h = jax.nn.relu(f @ f32(p["wc2"]) + f32(p["bc2"]))
    h = h @ f32(p["wc3"]) + f32(p["bc3"])
    g = jnp.max(h, axis=1)                       # torch.max over points -> (B, 1024)
    z = jax.nn.relu(g @ f32(p["wf1"]) + f32(p["bf1"]))
    z = jax.nn.relu(z @ f32(p["wf2"]) + f32(p["bf2"]))
    z = (z @ f32(p["wf3"]) + f32(p["bf3"]))[:, :k]
    return jax.nn.log_softmax(z, axis=0)


# ---------------------------------- main -------------------------------------

if __name__ == "__main__":
    # small shapes: batch=2, views=2, points=32, xyz=3, classes=2
    B, V, N, C, k = 2, 2, 32, 3, 2
    key = jax.random.PRNGKey(0)
    kx, kp = jax.random.split(key)
    x = jax.random.normal(kx, (B, V, N, C), jnp.float32)
    params = make_params(kp, V, k)

    # tile_n_target=16 exercises the multi-tile running-max path (N=32 -> 2 tiles);
    # production default is 1024 rows per tile.
    fwd = jax.jit(functools.partial(pointnet_cls_forward, k=k, tile_n_target=16))
    out = jax.block_until_ready(fwd(x, params))

    ref = reference_forward(x, params, k)
    assert out.shape == (B, k), out.shape
    assert bool(jnp.all(jnp.isfinite(out)))
    assert bool(jnp.allclose(out, ref, atol=5e-2, rtol=5e-2)), (out, ref)
    print("KERNEL_OK")
</pallas_src>

<mosaic_0001>
module attributes {stable_mosaic.version = 11 : i64} {
  func.func @head_kernel(%arg0: i32, %arg1: memref<2x1024xf32, #tpu.memory_space<vmem>>, %arg2: memref<1024x512xbf16, #tpu.memory_space<vmem>>, %arg3: memref<1x512xf32, #tpu.memory_space<vmem>>, %arg4: memref<512x256xbf16, #tpu.memory_space<vmem>>, %arg5: memref<1x256xf32, #tpu.memory_space<vmem>>, %arg6: memref<256x128xbf16, #tpu.memory_space<vmem>>, %arg7: memref<1x128xf32, #tpu.memory_space<vmem>>, %arg8: memref<2x128xf32, #tpu.memory_space<vmem>>) attributes {dimension_semantics = [#tpu.dimension_semantics<arbitrary>], iteration_bounds = array<i64: 1>, scalar_prefetch = 0 : i64, scratch_operands = 0 : i64, tpu.core_type = #tpu.core_type<tc>, window_params = [{pipeline_mode = #tpu.pipeline_mode<synchronous>, transform_indices = @transform_0, window_bounds = array<i64: 2, 1024>}, {pipeline_mode = #tpu.pipeline_mode<synchronous>, transform_indices = @transform_1, window_bounds = array<i64: 1024, 512>}, {pipeline_mode = #tpu.pipeline_mode<synchronous>, transform_indices = @transform_2, window_bounds = array<i64: 1, 512>}, {pipeline_mode = #tpu.pipeline_mode<synchronous>, transform_indices = @transform_3, window_bounds = array<i64: 512, 256>}, {pipeline_mode = #tpu.pipeline_mode<synchronous>, transform_indices = @transform_4, window_bounds = array<i64: 1, 256>}, {pipeline_mode = #tpu.pipeline_mode<synchronous>, transform_indices = @transform_5, window_bounds = array<i64: 256, 128>}, {pipeline_mode = #tpu.pipeline_mode<synchronous>, transform_indices = @transform_6, window_bounds = array<i64: 1, 128>}, {pipeline_mode = #tpu.pipeline_mode<synchronous>, transform_indices = @transform_7, window_bounds = array<i64: 2, 128>}]} {
    %c0 = arith.constant 0 : index
    %c0_0 = arith.constant 0 : index
    %0 = vector.load %arg1[%c0, %c0_0] : memref<2x1024xf32, #tpu.memory_space<vmem>>, vector<2x1024xf32>
    %1 = arith.truncf %0 : vector<2x1024xf32> to vector<2x1024xbf16>
    %c0_1 = arith.constant 0 : index
    %c0_2 = arith.constant 0 : index
    %2 = vector.load %arg2[%c0_1, %c0_2] : memref<1024x512xbf16, #tpu.memory_space<vmem>>, vector<1024x512xbf16>
    %cst = arith.constant dense<0.000000e+00> : vector<2x512xf32>
    %3 = tpu.matmul %1, %2, %cst {dimension_numbers = #tpu.dot_dimension_numbers<[1], [0], [0], [1], [0, 0, 1, 1], [], []>} : vector<2x1024xbf16>, vector<1024x512xbf16>, vector<2x512xf32> -> vector<2x512xf32>
    %c0_3 = arith.constant 0 : index
    %c0_4 = arith.constant 0 : index
    %4 = vector.load %arg3[%c0_3, %c0_4] : memref<1x512xf32, #tpu.memory_space<vmem>>, vector<1x512xf32>
    %5 = vector.broadcast %4 : vector<1x512xf32> to vector<2x512xf32>
    %6 = arith.addf %3, %5 : vector<2x512xf32>
    %cst_5 = arith.constant 0.000000e+00 : f32
    %7 = vector.broadcast %cst_5 : f32 to vector<2x512xf32>
    %8 = arith.maximumf %6, %7 : vector<2x512xf32>
    %9 = arith.truncf %8 : vector<2x512xf32> to vector<2x512xbf16>
    %c0_6 = arith.constant 0 : index
    %c0_7 = arith.constant 0 : index
    %10 = vector.load %arg4[%c0_6, %c0_7] : memref<512x256xbf16, #tpu.memory_space<vmem>>, vector<512x256xbf16>
    %cst_8 = arith.constant dense<0.000000e+00> : vector<2x256xf32>
    %11 = tpu.matmul %9, %10, %cst_8 {dimension_numbers = #tpu.dot_dimension_numbers<[1], [0], [0], [1], [0, 0, 1, 1], [], []>} : vector<2x512xbf16>, vector<512x256xbf16>, vector<2x256xf32> -> vector<2x256xf32>
    %c0_9 = arith.constant 0 : index
    %c0_10 = arith.constant 0 : index
    %12 = vector.load %arg5[%c0_9, %c0_10] : memref<1x256xf32, #tpu.memory_space<vmem>>, vector<1x256xf32>
    %13 = vector.broadcast %12 : vector<1x256xf32> to vector<2x256xf32>
    %14 = arith.addf %11, %13 : vector<2x256xf32>
    %cst_11 = arith.constant 0.000000e+00 : f32
    %15 = vector.broadcast %cst_11 : f32 to vector<2x256xf32>
    %16 = arith.maximumf %14, %15 : vector<2x256xf32>
    %17 = arith.truncf %16 : vector<2x256xf32> to vector<2x256xbf16>
    %c0_12 = arith.constant 0 : index
    %c0_13 = arith.constant 0 : index
    %18 = vector.load %arg6[%c0_12, %c0_13] : memref<256x128xbf16, #tpu.memory_space<vmem>>, vector<256x128xbf16>
    %cst_14 = arith.constant dense<0.000000e+00> : vector<2x128xf32>
    %19 = tpu.matmul %17, %18, %cst_14 {dimension_numbers = #tpu.dot_dimension_numbers<[1], [0], [0], [1], [0, 0, 1, 1], [], []>} : vector<2x256xbf16>, vector<256x128xbf16>, vector<2x128xf32> -> vector<2x128xf32>
    %c0_15 = arith.constant 0 : index
    %c0_16 = arith.constant 0 : index
    %20 = vector.load %arg7[%c0_15, %c0_16] : memref<1x128xf32, #tpu.memory_space<vmem>>, vector<1x128xf32>
    %21 = vector.broadcast %20 : vector<1x128xf32> to vector<2x128xf32>
    %22 = arith.addf %19, %21 : vector<2x128xf32>
    %cst_17 = arith.constant dense<0xFF800000> : vector<128xf32>
    %23 = vector.multi_reduction <maximumf>, %22, %cst_17 [0] : vector<2x128xf32> to vector<128xf32>
    %24 = vector.shape_cast %23 : vector<128xf32> to vector<1x128xf32>
    %25 = vector.broadcast %24 : vector<1x128xf32> to vector<2x128xf32>
    %26 = arith.subf %22, %25 : vector<2x128xf32>
    %27 = math.exp %26 : vector<2x128xf32>
    %cst_18 = arith.constant dense<0.000000e+00> : vector<128xf32>
    %28 = vector.multi_reduction <add>, %27, %cst_18 [0] : vector<2x128xf32> to vector<128xf32>
    %29 = vector.shape_cast %28 : vector<128xf32> to vector<1x128xf32>
    %30 = math.log %29 : vector<1x128xf32>
    %31 = arith.addf %30, %24 : vector<1x128xf32>
    %32 = vector.broadcast %31 : vector<1x128xf32> to vector<2x128xf32>
    %33 = arith.subf %22, %32 : vector<2x128xf32>
    %c0_19 = arith.constant 0 : index
    %c0_20 = arith.constant 0 : index
    %34 = vector.load %arg8[%c0_19, %c0_20] : memref<2x128xf32, #tpu.memory_space<vmem>>, vector<2x128xf32>
    tpu.vector_store %arg8[%c0_19, %c0_20], %33 {strides = array<i32>} : memref<2x128xf32, #tpu.memory_space<vmem>>, vector<2x128xf32>,
    return
  }
  func.func @transform_0(%arg0: i32) -> (i32, i32) {
    %c0_i32 = arith.constant 0 : i32
    %c0_i32_0 = arith.constant 0 : i32
    %c0_i32_1 = arith.constant 0 : i32
    return %c0_i32, %c0_i32_0 : i32, i32
  }
  func.func @transform_1(%arg0: i32) -> (i32, i32) {
    %c0_i32 = arith.constant 0 : i32
    %c0_i32_0 = arith.constant 0 : i32
    %c0_i32_1 = arith.constant 0 : i32
    return %c0_i32, %c0_i32_0 : i32, i32
  }
  func.func @transform_2(%arg0: i32) -> (i32, i32) {
    %c0_i32 = arith.constant 0 : i32
    %c0_i32_0 = arith.constant 0 : i32
    %c0_i32_1 = arith.constant 0 : i32
    return %c0_i32, %c0_i32_0 : i32, i32
  }
  func.func @transform_3(%arg0: i32) -> (i32, i32) {
    %c0_i32 = arith.constant 0 : i32
    %c0_i32_0 = arith.constant 0 : i32
    %c0_i32_1 = arith.constant 0 : i32
    return %c0_i32, %c0_i32_0 : i32, i32
  }
  func.func @transform_4(%arg0: i32) -> (i32, i32) {
    %c0_i32 = arith.constant 0 : i32
    %c0_i32_0 = arith.constant 0 : i32
    %c0_i32_1 = arith.constant 0 : i32
    return %c0_i32, %c0_i32_0 : i32, i32
  }
  func.func @transform_5(%arg0: i32) -> (i32, i32) {
    %c0_i32 = arith.constant 0 : i32
    %c0_i32_0 = arith.constant 0 : i32
    %c0_i32_1 = arith.constant 0 : i32
    return %c0_i32, %c0_i32_0 : i32, i32
  }
  func.func @transform_6(%arg0: i32) -> (i32, i32) {
    %c0_i32 = arith.constant 0 : i32
    %c0_i32_0 = arith.constant 0 : i32
    %c0_i32_1 = arith.constant 0 : i32
    return %c0_i32, %c0_i32_0 : i32, i32
  }
  func.func @transform_7(%arg0: i32) -> (i32, i32) {
    %c0_i32 = arith.constant 0 : i32
    %c0_i32_0 = arith.constant 0 : i32
    %c0_i32_1 = arith.constant 0 : i32
    return %c0_i32, %c0_i32_0 : i32, i32
  }
}

module attributes {stable_mosaic.version = 11 : i64} {
  func.func @feat_kernel(%arg0: i32, %arg1: i32, %arg2: memref<1x2x16x8xbf16, #tpu.memory_space<vmem>>, %arg3: memref<2x8x64xbf16, #tpu.memory_space<vmem>>, %arg4: memref<2x1x64xf32, #tpu.memory_space<vmem>>, %arg5: memref<2x64x128xbf16, #tpu.memory_space<vmem>>, %arg6: memref<2x1x128xf32, #tpu.memory_space<vmem>>, %arg7: memref<2x128x1024xbf16, #tpu.memory_space<vmem>>, %arg8: memref<2x1x1024xf32, #tpu.memory_space<vmem>>, %arg9: memref<2x1024x64xbf16, #tpu.memory_space<vmem>>, %arg10: memref<1x64xf32, #tpu.memory_space<vmem>>, %arg11: memref<64x128xbf16, #tpu.memory_space<vmem>>, %arg12: memref<1x128xf32, #tpu.memory_space<vmem>>, %arg13: memref<128x1024xbf16, #tpu.memory_space<vmem>>, %arg14: memref<1x1024xf32, #tpu.memory_space<vmem>>, %arg15: memref<1x1x1024xf32, #tpu.memory_space<vmem>>, %arg16: memref<16x64xf32, #tpu.memory_space<vmem>>) attributes {dimension_semantics = [#tpu.dimension_semantics<parallel>, #tpu.dimension_semantics<arbitrary>], iteration_bounds = array<i64: 2, 2>, scalar_prefetch = 0 : i64, scratch_operands = 1 : i64, tpu.core_type = #tpu.core_type<tc>, window_params = [{transform_indices = @transform_0, window_bounds = array<i64: 1, 2, 16, 8>}, {pipeline_mode = #tpu.pipeline_mode<synchronous>, transform_indices = @transform_1, window_bounds = array<i64: 2, 8, 64>}, {pipeline_mode = #tpu.pipeline_mode<synchronous>, transform_indices = @transform_2, window_bounds = array<i64: 2, 1, 64>}, {pipeline_mode = #tpu.pipeline_mode<synchronous>, transform_indices = @transform_3, window_bounds = array<i64: 2, 64, 128>}, {pipeline_mode = #tpu.pipeline_mode<synchronous>, transform_indices = @transform_4, window_bounds = array<i64: 2, 1, 128>}, {pipeline_mode = #tpu.pipeline_mode<synchronous>, transform_indices = @transform_5, window_bounds = array<i64: 2, 128, 1024>}, {pipeline_mode = #tpu.pipeline_mode<synchronous>, transform_indices = @transform_6, window_bounds = array<i64: 2, 1, 1024>}, {pipeline_mode = #tpu.pipeline_mode<synchronous>, transform_indices = @transform_7, window_bounds = array<i64: 2, 1024, 64>}, {pipeline_mode = #tpu.pipeline_mode<synchronous>, transform_indices = @transform_8, window_bounds = array<i64: 1, 64>}, {pipeline_mode = #tpu.pipeline_mode<synchronous>, transform_indices = @transform_9, window_bounds = array<i64: 64, 128>}, {pipeline_mode = #tpu.pipeline_mode<synchronous>, transform_indices = @transform_10, window_bounds = array<i64: 1, 128>}, {pipeline_mode = #tpu.pipeline_mode<synchronous>, transform_indices = @transform_11, window_bounds = array<i64: 128, 1024>}, {pipeline_mode = #tpu.pipeline_mode<synchronous>, transform_indices = @transform_12, window_bounds = array<i64: 1, 1024>}, {transform_indices = @transform_13, window_bounds = array<i64: 1, 1, 1024>}]} {
    %cst = arith.constant 0.000000e+00 : f32
    %0 = vector.broadcast %cst : f32 to vector<16x64xf32>
    %c0 = arith.constant 0 : index
    %c0_0 = arith.constant 0 : index
    %1 = vector.load %arg16[%c0, %c0_0] : memref<16x64xf32, #tpu.memory_space<vmem>>, vector<16x64xf32>
    tpu.vector_store %arg16[%c0, %c0_0], %0 {strides = array<i32>} : memref<16x64xf32, #tpu.memory_space<vmem>>, vector<16x64xf32>,
    %c0_i32 = arith.constant 0 : i32
    %c2_i32 = arith.constant 2 : i32
    %2 = arith.addi %c0_i32, %c2_i32 : i32
    %c1_i32 = arith.constant 1 : i32
    scf.for %arg17 = %c0_i32 to %2 step %c1_i32  : i32 {
      %c1_i32_23 = arith.constant 1 : i32
      %31 = arith.muli %arg17, %c1_i32_23 : i32
      %c0_i32_24 = arith.constant 0 : i32
      %32 = arith.addi %c0_i32_24, %31 : i32
      %c0_25 = arith.constant 0 : index
      %33 = arith.index_cast %32 : i32 to index
      %c0_26 = arith.constant 0 : index
      %c0_27 = arith.constant 0 : index
      %34 = vector.load %arg2[%c0_25, %33, %c0_26, %c0_27] : memref<1x2x16x8xbf16, #tpu.memory_space<vmem>>, vector<1x1x16x8xbf16>
      %35 = vector.shape_cast %34 : vector<1x1x16x8xbf16> to vector<16x8xbf16>
      %36 = arith.index_cast %32 : i32 to index
      %c0_28 = arith.constant 0 : index
      %c0_29 = arith.constant 0 : index
      %37 = vector.load %arg3[%36, %c0_28, %c0_29] : memref<2x8x64xbf16, #tpu.memory_space<vmem>>, vector<1x8x64xbf16>
      %38 = vector.shape_cast %37 : vector<1x8x64xbf16> to vector<8x64xbf16>
      %cst_30 = arith.constant dense<0.000000e+00> : vector<16x64xf32>
      %39 = tpu.matmul %35, %38, %cst_30 {dimension_numbers = #tpu.dot_dimension_numbers<[1], [0], [0], [1], [0, 0, 1, 1], [], []>} : vector<16x8xbf16>, vector<8x64xbf16>, vector<16x64xf32> -> vector<16x64xf32>
      %40 = arith.index_cast %32 : i32 to index
      %c0_31 = arith.constant 0 : index
      %c0_32 = arith.constant 0 : index
      %41 = vector.load %arg4[%40, %c0_31, %c0_32] : memref<2x1x64xf32, #tpu.memory_space<vmem>>, vector<1x1x64xf32>
      %42 = vector.shape_cast %41 : vector<1x1x64xf32> to vector<1x64xf32>
      %43 = vector.broadcast %42 : vector<1x64xf32> to vector<16x64xf32>
      %44 = arith.addf %39, %43 : vector<16x64xf32>
      %cst_33 = arith.constant 0.000000e+00 : f32
      %45 = vector.broadcast %cst_33 : f32 to vector<16x64xf32>
      %46 = arith.maximumf %44, %45 : vector<16x64xf32>
      %47 = arith.truncf %46 : vector<16x64xf32> to vector<16x64xbf16>
      %48 = arith.index_cast %32 : i32 to index
      %c0_34 = arith.constant 0 : index
      %c0_35 = arith.constant 0 : index
      %49 = vector.load %arg5[%48, %c0_34, %c0_35] : memref<2x64x128xbf16, #tpu.memory_space<vmem>>, vector<1x64x128xbf16>
      %50 = vector.shape_cast %49 : vector<1x64x128xbf16> to vector<64x128xbf16>
      %cst_36 = arith.constant dense<0.000000e+00> : vector<16x128xf32>
      %51 = tpu.matmul %47, %50, %cst_36 {dimension_numbers = #tpu.dot_dimension_numbers<[1], [0], [0], [1], [0, 0, 1, 1], [], []>} : vector<16x64xbf16>, vector<64x128xbf16>, vector<16x128xf32> -> vector<16x128xf32>
      %52 = arith.index_cast %32 : i32 to index
      %c0_37 = arith.constant 0 : index
      %c0_38 = arith.constant 0 : index
      %53 = vector.load %arg6[%52, %c0_37, %c0_38] : memref<2x1x128xf32, #tpu.memory_space<vmem>>, vector<1x1x128xf32>
      %54 = vector.shape_cast %53 : vector<1x1x128xf32> to vector<1x128xf32>
      %55 = vector.broadcast %54 : vector<1x128xf32> to vector<16x128xf32>
      %56 = arith.addf %51, %55 : vector<16x128xf32>
      %cst_39 = arith.constant 0.000000e+00 : f32
      %57 = vector.broadcast %cst_39 : f32 to vector<16x128xf32>
      %58 = arith.maximumf %56, %57 : vector<16x128xf32>
      %59 = arith.truncf %58 : vector<16x128xf32> to vector<16x128xbf16>
      %60 = arith.index_cast %32 : i32 to index
      %c0_40 = arith.constant 0 : index
      %c0_41 = arith.constant 0 : index
      %61 = vector.load %arg7[%60, %c0_40, %c0_41] : memref<2x128x1024xbf16, #tpu.memory_space<vmem>>, vector<1x128x1024xbf16>
      %62 = vector.shape_cast %61 : vector<1x128x1024xbf16> to vector<128x1024xbf16>
      %cst_42 = arith.constant dense<0.000000e+00> : vector<16x1024xf32>
      %63 = tpu.matmul %59, %62, %cst_42 {dimension_numbers = #tpu.dot_dimension_numbers<[1], [0], [0], [1], [0, 0, 1, 1], [], []>} : vector<16x128xbf16>, vector<128x1024xbf16>, vector<16x1024xf32> -> vector<16x1024xf32>
      %64 = arith.index_cast %32 : i32 to index
      %c0_43 = arith.constant 0 : index
      %c0_44 = arith.constant 0 : index
      %65 = vector.load %arg8[%64, %c0_43, %c0_44] : memref<2x1x1024xf32, #tpu.memory_space<vmem>>, vector<1x1x1024xf32>
      %66 = vector.shape_cast %65 : vector<1x1x1024xf32> to vector<1x1024xf32>
      %67 = vector.broadcast %66 : vector<1x1024xf32> to vector<16x1024xf32>
      %68 = arith.addf %63, %67 : vector<16x1024xf32>
      %c0_45 = arith.constant 0 : index
      %c0_46 = arith.constant 0 : index
      %69 = vector.load %arg16[%c0_45, %c0_46] : memref<16x64xf32, #tpu.memory_space<vmem>>, vector<16x64xf32>
      %70 = arith.truncf %68 : vector<16x1024xf32> to vector<16x1024xbf16>
      %71 = arith.index_cast %32 : i32 to index
      %c0_47 = arith.constant 0 : index
      %c0_48 = arith.constant 0 : index
      %72 = vector.load %arg9[%71, %c0_47, %c0_48] : memref<2x1024x64xbf16, #tpu.memory_space<vmem>>, vector<1x1024x64xbf16>
      %73 = vector.shape_cast %72 : vector<1x1024x64xbf16> to vector<1024x64xbf16>
      %cst_49 = arith.constant dense<0.000000e+00> : vector<16x64xf32>
      %74 = tpu.matmul %70, %73, %cst_49 {dimension_numbers = #tpu.dot_dimension_numbers<[1], [0], [0], [1], [0, 0, 1, 1], [], []>} : vector<16x1024xbf16>, vector<1024x64xbf16>, vector<16x64xf32> -> vector<16x64xf32>
      %75 = arith.addf %69, %74 : vector<16x64xf32>
      %c0_50 = arith.constant 0 : index
      %c0_51 = arith.constant 0 : index
      %76 = vector.load %arg16[%c0_50, %c0_51] : memref<16x64xf32, #tpu.memory_space<vmem>>, vector<16x64xf32>
      tpu.vector_store %arg16[%c0_50, %c0_51], %75 {strides = array<i32>} : memref<16x64xf32, #tpu.memory_space<vmem>>, vector<16x64xf32>,
    }
    %c2_i32_1 = arith.constant 2 : i32
    %c0_2 = arith.constant 0 : index
    %c0_3 = arith.constant 0 : index
    %3 = vector.load %arg16[%c0_2, %c0_3] : memref<16x64xf32, #tpu.memory_space<vmem>>, vector<16x64xf32>
    %c0_4 = arith.constant 0 : index
    %c0_5 = arith.constant 0 : index
    %4 = vector.load %arg10[%c0_4, %c0_5] : memref<1x64xf32, #tpu.memory_space<vmem>>, vector<1x64xf32>
    %5 = vector.broadcast %4 : vector<1x64xf32> to vector<16x64xf32>
    %6 = arith.addf %3, %5 : vector<16x64xf32>
    %cst_6 = arith.constant 0.000000e+00 : f32
    %7 = vector.broadcast %cst_6 : f32 to vector<16x64xf32>
    %8 = arith.maximumf %6, %7 : vector<16x64xf32>
    %9 = arith.truncf %8 : vector<16x64xf32> to vector<16x64xbf16>
    %c0_7 = arith.constant 0 : index
    %c0_8 = arith.constant 0 : index
    %10 = vector.load %arg11[%c0_7, %c0_8] : memref<64x128xbf16, #tpu.memory_space<vmem>>, vector<64x128xbf16>
    %cst_9 = arith.constant dense<0.000000e+00> : vector<16x128xf32>
    %11 = tpu.matmul %9, %10, %cst_9 {dimension_numbers = #tpu.dot_dimension_numbers<[1], [0], [0], [1], [0, 0, 1, 1], [], []>} : vector<16x64xbf16>, vector<64x128xbf16>, vector<16x128xf32> -> vector<16x128xf32>
    %c0_10 = arith.constant 0 : index
    %c0_11 = arith.constant 0 : index
    %12 = vector.load %arg12[%c0_10, %c0_11] : memref<1x128xf32, #tpu.memory_space<vmem>>, vector<1x128xf32>
    %13 = vector.broadcast %12 : vector<1x128xf32> to vector<16x128xf32>
    %14 = arith.addf %11, %13 : vector<16x128xf32>
    %cst_12 = arith.constant 0.000000e+00 : f32
    %15 = vector.broadcast %cst_12 : f32 to vector<16x128xf32>
    %16 = arith.maximumf %14, %15 : vector<16x128xf32>
    %17 = arith.truncf %16 : vector<16x128xf32> to vector<16x128xbf16>
    %c0_13 = arith.constant 0 : index
    %c0_14 = arith.constant 0 : index
    %18 = vector.load %arg13[%c0_13, %c0_14] : memref<128x1024xbf16, #tpu.memory_space<vmem>>, vector<128x1024xbf16>
    %cst_15 = arith.constant dense<0.000000e+00> : vector<16x1024xf32>
    %19 = tpu.matmul %17, %18, %cst_15 {dimension_numbers = #tpu.dot_dimension_numbers<[1], [0], [0], [1], [0, 0, 1, 1], [], []>} : vector<16x128xbf16>, vector<128x1024xbf16>, vector<16x1024xf32> -> vector<16x1024xf32>
    %c0_16 = arith.constant 0 : index
    %c0_17 = arith.constant 0 : index
    %20 = vector.load %arg14[%c0_16, %c0_17] : memref<1x1024xf32, #tpu.memory_space<vmem>>, vector<1x1024xf32>
    %21 = vector.broadcast %20 : vector<1x1024xf32> to vector<16x1024xf32>
    %22 = arith.addf %19, %21 : vector<16x1024xf32>
    %cst_18 = arith.constant dense<0xFF800000> : vector<1024xf32>
    %23 = vector.multi_reduction <maximumf>, %22, %cst_18 [0] : vector<16x1024xf32> to vector<1024xf32>
    %24 = vector.shape_cast %23 : vector<1024xf32> to vector<1x1024xf32>
    %c0_i32_19 = arith.constant 0 : i32
    %25 = arith.cmpi eq, %arg1, %c0_i32_19 : i32
    %26 = arith.extui %25 : i1 to i32
    %c0_i32_20 = arith.constant 0 : i32
    %27 = arith.cmpi ne, %26, %c0_i32_20 : i32
    scf.if %27 {
      %c0_23 = arith.constant 0 : index
      %c0_24 = arith.constant 0 : index
      %c0_25 = arith.constant 0 : index
      %31 = vector.load %arg15[%c0_23, %c0_24, %c0_25] : memref<1x1x1024xf32, #tpu.memory_space<vmem>>, vector<1x1x1024xf32>
      %32 = vector.shape_cast %31 : vector<1x1x1024xf32> to vector<1x1024xf32>
      %33 = vector.shape_cast %24 : vector<1x1024xf32> to vector<1x1x1024xf32>
      tpu.vector_store %arg15[%c0_23, %c0_24, %c0_25], %33 {strides = array<i32>} : memref<1x1x1024xf32, #tpu.memory_space<vmem>>, vector<1x1x1024xf32>,
    } else {
    }
    %c0_i32_21 = arith.constant 0 : i32
    %28 = arith.cmpi sgt, %arg1, %c0_i32_21 : i32
    %29 = arith.extui %28 : i1 to i32
    %c0_i32_22 = arith.constant 0 : i32
    %30 = arith.cmpi ne, %29, %c0_i32_22 : i32
    scf.if %30 {
      %c0_23 = arith.constant 0 : index
      %c0_24 = arith.constant 0 : index
      %c0_25 = arith.constant 0 : index
      %31 = vector.load %arg15[%c0_23, %c0_24, %c0_25] : memref<1x1x1024xf32, #tpu.memory_space<vmem>>, vector<1x1x1024xf32>
      %32 = vector.shape_cast %31 : vector<1x1x1024xf32> to vector<1x1024xf32>
      %33 = arith.maximumf %32, %24 : vector<1x1024xf32>
      %c0_26 = arith.constant 0 : index
      %c0_27 = arith.constant 0 : index
      %c0_28 = arith.constant 0 : index
      %34 = vector.load %arg15[%c0_26, %c0_27, %c0_28] : memref<1x1x1024xf32, #tpu.memory_space<vmem>>, vector<1x1x1024xf32>
      %35 = vector.shape_cast %34 : vector<1x1x1024xf32> to vector<1x1024xf32>
      %36 = vector.shape_cast %33 : vector<1x1024xf32> to vector<1x1x1024xf32>
      tpu.vector_store %arg15[%c0_26, %c0_27, %c0_28], %36 {strides = array<i32>} : memref<1x1x1024xf32, #tpu.memory_space<vmem>>, vector<1x1x1024xf32>,
    } else {
    }
    return
  }
  func.func @transform_0(%arg0: i32, %arg1: i32) -> (i32, i32, i32, i32) {
    %c0_i32 = arith.constant 0 : i32
    %c0_i32_0 = arith.constant 0 : i32
    %c0_i32_1 = arith.constant 0 : i32
    return %arg0, %c0_i32, %arg1, %c0_i32_0 : i32, i32, i32, i32
  }
  func.func @transform_1(%arg0: i32, %arg1: i32) -> (i32, i32, i32) {
    %c0_i32 = arith.constant 0 : i32
    %c0_i32_0 = arith.constant 0 : i32
    %c0_i32_1 = arith.constant 0 : i32
    %c0_i32_2 = arith.constant 0 : i32
    return %c0_i32, %c0_i32_0, %c0_i32_1 : i32, i32, i32
  }
  func.func @transform_2(%arg0: i32, %arg1: i32) -> (i32, i32, i32) {
    %c0_i32 = arith.constant 0 : i32
    %c0_i32_0 = arith.constant 0 : i32
    %c0_i32_1 = arith.constant 0 : i32
    %c0_i32_2 = arith.constant 0 : i32
    return %c0_i32, %c0_i32_0, %c0_i32_1 : i32, i32, i32
  }
  func.func @transform_3(%arg0: i32, %arg1: i32) -> (i32, i32, i32) {
    %c0_i32 = arith.constant 0 : i32
    %c0_i32_0 = arith.constant 0 : i32
    %c0_i32_1 = arith.constant 0 : i32
    %c0_i32_2 = arith.constant 0 : i32
    return %c0_i32, %c0_i32_0, %c0_i32_1 : i32, i32, i32
  }
  func.func @transform_4(%arg0: i32, %arg1: i32) -> (i32, i32, i32) {
    %c0_i32 = arith.constant 0 : i32
    %c0_i32_0 = arith.constant 0 : i32
    %c0_i32_1 = arith.constant 0 : i32
    %c0_i32_2 = arith.constant 0 : i32
    return %c0_i32, %c0_i32_0, %c0_i32_1 : i32, i32, i32
  }
  func.func @transform_5(%arg0: i32, %arg1: i32) -> (i32, i32, i32) {
    %c0_i32 = arith.constant 0 : i32
    %c0_i32_0 = arith.constant 0 : i32
    %c0_i32_1 = arith.constant 0 : i32
    %c0_i32_2 = arith.constant 0 : i32
    return %c0_i32, %c0_i32_0, %c0_i32_1 : i32, i32, i32
  }
  func.func @transform_6(%arg0: i32, %arg1: i32) -> (i32, i32, i32) {
    %c0_i32 = arith.constant 0 : i32
    %c0_i32_0 = arith.constant 0 : i32
    %c0_i32_1 = arith.constant 0 : i32
    %c0_i32_2 = arith.constant 0 : i32
    return %c0_i32, %c0_i32_0, %c0_i32_1 : i32, i32, i32
  }
  func.func @transform_7(%arg0: i32, %arg1: i32) -> (i32, i32, i32) {
    %c0_i32 = arith.constant 0 : i32
    %c0_i32_0 = arith.constant 0 : i32
    %c0_i32_1 = arith.constant 0 : i32
    %c0_i32_2 = arith.constant 0 : i32
    return %c0_i32, %c0_i32_0, %c0_i32_1 : i32, i32, i32
  }
  func.func @transform_8(%arg0: i32, %arg1: i32) -> (i32, i32) {
    %c0_i32 = arith.constant 0 : i32
    %c0_i32_0 = arith.constant 0 : i32
    %c0_i32_1 = arith.constant 0 : i32
    return %c0_i32, %c0_i32_0 : i32, i32
  }
  func.func @transform_9(%arg0: i32, %arg1: i32) -> (i32, i32) {
    %c0_i32 = arith.constant 0 : i32
    %c0_i32_0 = arith.constant 0 : i32
    %c0_i32_1 = arith.constant 0 : i32
    return %c0_i32, %c0_i32_0 : i32, i32
  }
  func.func @transform_10(%arg0: i32, %arg1: i32) -> (i32, i32) {
    %c0_i32 = arith.constant 0 : i32
    %c0_i32_0 = arith.constant 0 : i32
    %c0_i32_1 = arith.constant 0 : i32
    return %c0_i32, %c0_i32_0 : i32, i32
  }
  func.func @transform_11(%arg0: i32, %arg1: i32) -> (i32, i32) {
    %c0_i32 = arith.constant 0 : i32
    %c0_i32_0 = arith.constant 0 : i32
    %c0_i32_1 = arith.constant 0 : i32
    return %c0_i32, %c0_i32_0 : i32, i32
  }
  func.func @transform_12(%arg0: i32, %arg1: i32) -> (i32, i32) {
    %c0_i32 = arith.constant 0 : i32
    %c0_i32_0 = arith.constant 0 : i32
    %c0_i32_1 = arith.constant 0 : i32
    return %c0_i32, %c0_i32_0 : i32, i32
  }
  func.func @transform_13(%arg0: i32, %arg1: i32) -> (i32, i32, i32) {
    %c0_i32 = arith.constant 0 : i32
    %c0_i32_0 = arith.constant 0 : i32
    %c0_i32_1 = arith.constant 0 : i32
    return %arg0, %c0_i32, %c0_i32_0 : i32, i32, i32
  }
}

</mosaic_0001>

<bundles_post_ra>
// kernel: pointnet_cls_forward.2
= control target key start
LH: loop header
LB: loop body
LE: loop exit
PB: predicated region body
PF: predicated region fallthrough
CT: control target
= control target key end

     0   :  { %s4185_s0 = inlined_call_operand.vmem [shape: bf16[2,2,32,8], index: 0, kind: input, shape index: {}]   ;;  %s4186_s1 = inlined_call_operand.vmem [shape: bf16[2,8,64], index: 1, kind: input, shape index: {}]   ;;  %s4187_s2 = inlined_call_operand.vmem [shape: f32[2,1,64], index: 2, kind: input, shape index: {}]   ;;  %s4188_s3 = inlined_call_operand.vmem [shape: bf16[2,64,128], index: 3, kind: input, shape index: {}]   ;;  %s4189_s4 = inlined_call_operand.vmem [shape: f32[2,1,128], index: 4, kind: input, shape index: {}]   ;;  %s4190_s5 = inlined_call_operand.vmem [shape: bf16[2,128,1024], index: 5, kind: input, shape index: {}]   ;;  %s4191_s6 = inlined_call_operand.vmem [shape: f32[2,1,1024], index: 6, kind: input, shape index: {}]   ;;  %s4192_s7 = inlined_call_operand.vmem [shape: bf16[2,1024,64], index: 7, kind: input, shape index: {}]   ;;  %s4193_s8 = inlined_call_operand.vmem [shape: f32[1,64], index: 8, kind: input, shape index: {}]   ;;  %s4194_s9 = inlined_call_operand.vmem [shape: bf16[64,128], index: 9, kind: input, shape index: {}]   ;;  %s4195_s10 = inlined_call_operand.vmem [shape: f32[1,128], index: 10, kind: input, shape index: {}]   ;;  %s4196_s11 = inlined_call_operand.vmem [shape: bf16[128,1024], index: 11, kind: input, shape index: {}]   ;;  %s4197_s12 = inlined_call_operand.vmem [shape: f32[1,1024], index: 12, kind: input, shape index: {}]   ;;  %s4198_s13 = inlined_call_operand.vmem [shape: f32[2,1,1024], index: 13, kind: output, shape index: {}]  }
   0x1   :  { %4202 = sst [smem:[#allocation8_spill]] %s4185_s0 }
   0x2   :  { %4203 = sst [smem:[#allocation9_spill]] %s4195_s10 }
   0x3   :  { %4204 = sst [smem:[#allocation10_spill]] %s4197_s12 }
   0x4   :  { %4205 = sst [smem:[#allocation11_spill]] %s4198_s13 }
   0x5   :  { %s3605_s25 = smov 0   ;;  %s3607_s26 = smov 0  }
   0x6   :  { %s3609_s27 = smov 0   ;;  %s3611_s28 = smov 0  }
   0x7   :  { %s3613_s29 = smov 0   ;;  %s3615_s30 = smov 0  }
   0x8   :  { %s3617_s14 = smov 0  }
   0x9 LB: > { %4206 = sst [smem:[#allocation4_spill]] %s3505_s27  ;;  %s32_s15 = sadd.s32 1, %s3513_s29  ;;  %s3521_s14 = sphi %s3617_s14, %s23_s14   ;;  %s3517_s30 = sphi %s3615_s30, %s4218_s30   ;;  %s3513_s29 = sphi %s3613_s29, %s4222_s29   ;;  %s3509_s28 = sphi %s3611_s28, %s4216_s28   ;;  %s3505_s27 = sphi %s3609_s27, %s4221_s27   ;;  %s3501_s26 = sphi %s3607_s26, %s4220_s26   ;;  %s3497_s25 = sphi %s3605_s25, %s4219_s25  }
   0xa   : > { %4207 = sst [smem:[#allocation5_spill]] %s3517_s30  ;;  %p33_p0 = scmp.ge.s32.totalorder %s32_s15, 2 }
   0xb   : > { %s35_s16 = sadd.s32 1, %s3517_s30  ;;  %p51_p1 = scmp.ne.s32.totalorder %s3501_s26, %s3497_s25 }
   0xc   : > { %p52_p2 = scmp.eq.s32.totalorder %s3521_s14, 0  ;;  %s4224_s15 = smov (%p33_p0, %s32_s15), 0 }
   0xd   : > { %4208 = sst [smem:[#allocation6_spill]] %s4224_s15  ;;  %s4226_s16 = smov (!%p33_p0, %s35_s16), %s3517_s30 }
   0xe   : > { %p53_p3 = por %p52_p2, %p51_p1  ;;  %p37_p4 = scmp.ge.s32.totalorder %s4226_s16, 2 }
   0xf   : > { %s40_s17 = ssub.s32 %s3513_s29, %s4224_s15  ;;  %s44_s20 = sadd.s32 1, %s3501_s26 }
  0x10   : > { %s4228_s16 = smov (%p37_p4, %s4226_s16), 0  ;;  %p2956_p6 = scmp.ge.s32.totalorder %s3521_s14, 4 }
  0x11   : > { %4209 = sst [smem:[#allocation7_spill]] %s4228_s16  ;;  %s39_s18 = ssub.s32 %s3517_s30, %s4228_s16 }
  0x12   : > { %s41_s19 = sor.u32 %s40_s17, %s39_s18  ;;  %391 = sbr.rel (%p2956_p6) target bundleno = 34 (0x22), region = 64 }
  0x13   : > { %p42_p5 = scmp.eq.s32.totalorder %s41_s19, 0 }
  0x15   : > { %s3656_s21 = scalar_select %p42_p5, %s3501_s26, %s44_s20  }
  0x17   : > { %394 = sbr.rel (!%p53_p3) target bundleno = 34 (0x22), region = 68  ;;  %s396_s22 = sand.u32 (%p53_p3), 1, %s3501_s26  }
  0x18   : > { %s2958_s23 = sshll.u32 (%p53_p3), %s3513_s29, 1  ;;  %s2957_s24 = sshll.u32 (%p53_p3), %s396_s22, 4 }
  0x19   : > { %s2959_s15 = sshll.u32 (%p53_p3), %s3517_s30, 3  ;;  %s4210_s0 = sld [smem:[#allocation8_spill]] (%p53_p3) }
  0x1a   : > { %s401_s27 = sadd.s32 (%p53_p3), %s2959_s15, %s2958_s23  ;;  %s398_s18 = scalar_lea.vmem (%p53_p3), [#allocation3], %s2957_s24 }
  0x1b   : > { %s2960_s12 = sshll.u32 (%p53_p3), %s401_s27, 2 }
  0x1f   : > { %s403_s17 = scalar_lea.vmem %s4210_s0, %s2960_s12 }
  0x20   : > { %v420_v0 = vld [vmem:[%s403_s17] sm:$0xff]   ;;  %v424_v1 = vld [vmem:[%s403_s17 + $0x10] sm:$0xff]  }
  0x21   : > { %421 = vst [vmem:[%s398_s18] sm:$0xff] %v420_v0   ;;  %425 = vst [vmem:[%s398_s18 + $0x8] sm:$0xff] %v424_v1  }
  0x22 PF: > { %p2961_p7 = scmp.ge.s32.totalorder %s3521_s14, 1  ;;  %p458_p8 = scmp.lt.s32.totalorder %s3521_s14, 5 }
  0x24   : > { %p459_p9 = pnand %p2961_p7, %p458_p8 }
  0x25   : > { %s465_s27 = sand.u32 (!%p459_p9), 1, %s3497_s25   ;;  %p508_p10 = scmp.lt.s32.totalorder (!%p459_p9), %s3509_s28, 1 }
  0x26   : > { %462 = sbr.rel (%p459_p9) target bundleno = 1412 (0x584), region = 109  ;;  %s3669_s10 = sshll.u32 (!%p459_p9), %s465_s27, 4 }
  0x27   : > { %s4211_s13 = sld [smem:[#allocation11_spill]] (!%p459_p9)  ;;  %s467_s25 = scalar_lea.vmem (!%p459_p9), [#allocation3], %s3669_s10 }
  0x28   : > { %s3682_s20 = smov (!%p459_p9), 0  }
  0x2b   : > { %vm513_vm0 = vcmask 523264   ;;  %v3527_v2 = vmov 0.0   ;;  %s4230_s28 = smov (!%p508_p10, %s3509_s28), 1 }
  0x2c   : > { %514 = vst.msk [vmem:[#allocation2] sm:$0xff] %vm513_vm0, %v3527_v2  ;;  %515 = vst.msk [vmem:[#allocation2 + $0x8] sm:$0xff] %vm513_vm0, %v3527_v2  ;;  %s2963_s12 = sshll.u32 %s4230_s28, 3 }
  0x2d   : > { %s3679_s19 = scalar_lea.vmem %s4211_s13, %s2963_s12 }
  0x2e LB: >> { %v3528_v3 = vmov 0.0   ;;  %vm3529_vm1 = vmmov 0   ;;  %s2966_s28 = sshll.u32 %s3525_s20, 2  ;;  %vm547_vm2 = vcmask 1043456   ;;  %s3186_s17 = sshll.u32 %s3525_s20, 9  ;;  %vm543_vm3 = vcmask 64512   ;;  %s3525_s20 = sphi %s3682_s20, %s521_s20  }
  0x2f   : >> { %3288 = vmatprep.subr.bf16.mxu0 %v3528_v3  ;;  %3290 = vmatprep.mubr.msk.bf16.mxu0 %vm3529_vm1, %v3528_v3  ;;  %s528_s24 = scalar_lea.vmem %s4186_s1, %s2966_s28  ;;  %s3695_s12 = scalar_lea.vmem %s4192_s7, %s3186_s17 }
  0x30   : >> { %3294 = vmatprep.subr.bf16.mxu1 %v3528_v3  ;;  %3302 = vmatprep.mubr.msk.bf16.mxu1 %vm3529_vm1, %v3528_v3  ;;  %v529_v4 = vld [vmem:[%s528_s24] sm:$0xf]  ;;  %s3184_s15 = sshll.u32 %s3525_s20, 3  ;;  %s3185_s0 = sshll.u32 %s3525_s20, 5 }
  0x31   : >> { %v549_v5 = vsel %vm547_vm2, %v529_v4, 0  ;;  %s524_s16 = scalar_lea.vmem %s467_s25, %s3184_s15 [#allocation3]  ;;  %s597_s28 = scalar_lea.vmem %s4188_s3, %s3185_s0 }
  0x32   : >> { %3289 = vmatpush3.bf16.msra.mxu0 %v549_v5  ;;  %v3390_v6 = vld [vmem:[%s524_s16] sm:$0xff]   ;;  %v3391_v7 = vld [vmem:[%s597_s28 + $0x18] sm:$0xff]   ;;  %v3392_v8 = vld [vmem:[%s597_s28 + $0x10] sm:$0xff]   ;;  %s3709_s24 = scalar_lea.vmem %s4190_s5, %s3186_s17  ;;  %s530_s30 = scalar_lea.vmem %s4187_s2, %s3525_s20 }
  0x33   : >> { %3295 = vmatpush3.bf16.msra.mxu1 %v3391_v7  ;;  %v3393_v9 = vld [vmem:[%s597_s28 + $0x8] sm:$0xff]   ;;  %v3394_v10 = vld [vmem:[%s597_s28] sm:$0xff]   ;;  %s606_s27 = scalar_lea.vmem %s4189_s4, %s3525_s20  ;;  %s752_s22 = scalar_lea.vmem %s4191_s6, %s3184_s15 }
  0x34   : >> { %3296 = vmatprep.subr.bf16.mxu1 %v3528_v3  ;;  %v744_v11 = vld [vmem:[%s3709_s24 + $0x1c0] sm:$0xff]  ;;  %v745_v13 = vld [vmem:[%s3709_s24 + $0x1c8] sm:$0xff]  ;;  %s521_s20 = sadd.s32 1, %s3525_s20  }
  0x35   : >> { %3291 = vmatmul.mubr.msk.bf16.vlgmr.msra.gmra.mxu0 %vm543_vm3, %v3390_v6  ;;  %v748_v12 = vld [vmem:[%s3709_s24 + $0x1e0] sm:$0xff]  ;;  %v749_v16 = vld [vmem:[%s3709_s24 + $0x1e8] sm:$0xff]  ;;  %p518_p11 = scmp.ge.s32.totalorder %s521_s20, 2  }
  0x36   : >> { %v3036_v14 = vcombine.low %v744_v11, %v748_v12  ;;  %v3037_v15 = vcombine.high %v744_v11, %v748_v12  ;;  %v736_v17 = vld [vmem:[%s3709_s24 + $0x180] sm:$0xff]  ;;  %v3038_v19 = vcombine.low %v745_v13, %v749_v16  ;;  %v3039_v20 = vcombine.high %v745_v13, %v749_v16  ;;  %v737_v46 = vld [vmem:[%s3709_s24 + $0x188] sm:$0xff]  ;;  %s4212_s20 = sld [smem:[#allocation9_spill]] (%p518_p11) }
  0x37   : >> { %3297 = vmatpush3.bf16.msra.mxu1 %v3392_v8  ;;  %v740_v18 = vld [vmem:[%s3709_s24 + $0x1a0] sm:$0xff]  ;;  %v741_v47 = vld [vmem:[%s3709_s24 + $0x1a8] sm:$0xff]  ;;  %vm3531_vm4 = vmmov (%p518_p11), 0  }
  0x38   : >> { %3298 = vmatprep.subr.bf16.mxu1 %v3528_v3  ;;  %v3029_v21 = vcombine.high %v736_v17, %v740_v18  ;;  %1115 = vmatprep.subr.bf16.mxu0 %v3037_v15  ;;  %v3028_v22 = vcombine.low %v736_v17, %v740_v18  ;;  %v728_v23 = vld [vmem:[%s3709_s24 + $0x140] sm:$0xff]  ;;  %v3031_v51 = vcombine.high %v737_v46, %v741_v47  ;;  %v729_v52 = vld [vmem:[%s3709_s24 + $0x148] sm:$0xff] }
  0x39   : >> { %1116 = vmatpush1.bf16.msra.mxu0 %v3036_v14  ;;  %v732_v24 = vld [vmem:[%s3709_s24 + $0x160] sm:$0xff]  ;;  %v733_v53 = vld [vmem:[%s3709_s24 + $0x168] sm:$0xff]  ;;  %v3030_v54 = vcombine.low %v737_v46, %v741_v47  ;;  %v730_v47 = vld [vmem:[%s3709_s24 + $0x150] sm:$0xff] }
  0x3a   : >> { %1117 = vmatprep.subr.bf16.mxu0 %v3029_v21  ;;  %v3021_v25 = vcombine.high %v728_v23, %v732_v24  ;;  %v3020_v26 = vcombine.low %v728_v23, %v732_v24  ;;  %v720_v27 = vld [vmem:[%s3709_s24 + $0x100] sm:$0xff]  ;;  %v3023_v55 = vcombine.high %v729_v52, %v733_v53  ;;  %v721_v56 = vld [vmem:[%s3709_s24 + $0x108] sm:$0xff]  ;;  %v3022_v58 = vcombine.low %v729_v52, %v733_v53  ;;  %v750_v23 = vld [vmem:[%s3709_s24 + $0x1f0] sm:$0xff] }
  0x3b   : >> { %3299 = vmatpush3.bf16.msra.mxu1 %v3393_v9  ;;  %v724_v28 = vld [vmem:[%s3709_s24 + $0x120] sm:$0xff]  ;;  %v725_v57 = vld [vmem:[%s3709_s24 + $0x128] sm:$0xff]  ;;  %v747_v24 = vld [vmem:[%s3709_s24 + $0x1d8] sm:$0xff] }
  0x3c   : >> { %3300 = vmatprep.subr.bf16.mxu1 %v3528_v3  ;;  %v3013_v29 = vcombine.high %v720_v27, %v724_v28  ;;  %v3012_v30 = vcombine.low %v720_v27, %v724_v28  ;;  %v712_v31 = vld [vmem:[%s3709_s24 + $0xc0] sm:$0xff]  ;;  %v3015_v59 = vcombine.high %v721_v56, %v725_v57  ;;  %v713_v60 = vld [vmem:[%s3709_s24 + $0xc8] sm:$0xff]  ;;  %v3014_v62 = vcombine.low %v721_v56, %v725_v57  ;;  %v726_v56 = vld [vmem:[%s3709_s24 + $0x130] sm:$0xff] }
  0x3d   : >> { %1118 = vmatpush1.bf16.msra.mxu0 %v3028_v22  ;;  %v716_v32 = vld [vmem:[%s3709_s24 + $0xe0] sm:$0xff]  ;;  %v717_v61 = vld [vmem:[%s3709_s24 + $0xe8] sm:$0xff]  ;;  %v746_v22 = vld [vmem:[%s3709_s24 + $0x1d0] sm:$0xff] }
  0x3e   : >> { %1119 = vmatprep.subr.bf16.mxu0 %v3021_v25  ;;  %v3005_v33 = vcombine.high %v712_v31, %v716_v32  ;;  %v3004_v34 = vcombine.low %v712_v31, %v716_v32  ;;  %v704_v35 = vld [vmem:[%s3709_s24 + $0x80] sm:$0xff]  ;;  %v3007_v63 = vcombine.high %v713_v60, %v717_v61  ;;  %v705_v0 = vld [vmem:[%s3709_s24 + $0x88] sm:$0xff]  ;;  %v3006_v3 = vcombine.low %v713_v60, %v717_v61  ;;  %v723_v57 = vld [vmem:[%s3709_s24 + $0x118] sm:$0xff] }
  0x3f   : >> { %3301 = vmatpush3.bf16.msra.mxu1 %v3394_v10  ;;  %v708_v36 = vld [vmem:[%s3709_s24 + $0xa0] sm:$0xff]  ;;  %v709_v1 = vld [vmem:[%s3709_s24 + $0xa8] sm:$0xff]  ;;  %v3041_v25 = vcombine.high %v746_v22, %v750_v23  ;;  %v3040_v27 = vcombine.low %v746_v22, %v750_v23 }
  0x40   : >> { %1158 = vmatprep.subr.bf16.mxu1 %v3039_v20  ;;  %v2997_v37 = vcombine.high %v704_v35, %v708_v36  ;;  %v2996_v38 = vcombine.low %v704_v35, %v708_v36  ;;  %v2967_v39 = vld [vmem:[%s530_s30] ss:$0 sm:$0xff]  ;;  %v2999_v4 = vcombine.high %v705_v0, %v709_v1  ;;  %v2998_v5 = vcombine.low %v705_v0, %v709_v1  ;;  %v697_v8 = vld [vmem:[%s3709_s24 + $0x48] sm:$0xff]  ;;  %v718_v0 = vld [vmem:[%s3709_s24 + $0xf0] sm:$0xff] }
  0x41   : >> { %1120 = vmatpush1.bf16.msra.mxu0 %v3020_v26  ;;  %v696_v6 = vld [vmem:[%s3709_s24 + $0x40] sm:$0xff]  ;;  %v701_v10 = vld [vmem:[%s3709_s24 + $0x68] sm:$0xff]  ;;  %v751_v26 = vld [vmem:[%s3709_s24 + $0x1f8] sm:$0xff] }
  0x42   : >> { %1121 = vmatprep.subr.bf16.mxu0 %v3013_v29  ;;  %v700_v7 = vld [vmem:[%s3709_s24 + $0x60] sm:$0xff]  ;;  %v2990_v12 = vcombine.low %v697_v8, %v701_v10  ;;  %v2991_v13 = vcombine.high %v697_v8, %v701_v10  ;;  %v689_v16 = vld [vmem:[%s3709_s24 + $0x8] sm:$0xff]  ;;  %v3042_v28 = vcombine.low %v747_v24, %v751_v26  ;;  %v3043_v29 = vcombine.high %v747_v24, %v751_v26  ;;  %v715_v1 = vld [vmem:[%s3709_s24 + $0xd8] sm:$0xff] }
  0x43   : >> { %v2989_v9 = vcombine.high %v696_v6, %v700_v7  ;;  %v2988_v11 = vcombine.low %v696_v6, %v700_v7  ;;  %v688_v14 = vld [vmem:[%s3709_s24] sm:$0xff]  ;;  %v693_v18 = vld [vmem:[%s3709_s24 + $0x28] sm:$0xff]  ;;  %v706_v8 = vld [vmem:[%s3709_s24 + $0x90] sm:$0xff] }
  0x44   : >> { %v692_v15 = vld [vmem:[%s3709_s24 + $0x20] sm:$0xff]  ;;  %v2982_v20 = vcombine.low %v689_v16, %v693_v18  ;;  %v2983_v21 = vcombine.high %v689_v16, %v693_v18  ;;  %v707_v10 = vld [vmem:[%s3709_s24 + $0x98] sm:$0xff]  ;;  %v698_v16 = vld [vmem:[%s3709_s24 + $0x50] sm:$0xff] }
  0x45   : >> { %1122 = vmatpush1.bf16.msra.mxu0 %v3012_v30  ;;  %v2981_v17 = vcombine.high %v688_v14, %v692_v15  ;;  %v3530_v30 = vmov 0   ;;  %v2972_v31 = vld [vmem:[%s606_s27] ss:$0 sm:$0xff]  ;;  %v699_v18 = vld [vmem:[%s3709_s24 + $0x58] sm:$0xff]  ;;  %v690_v24 = vld [vmem:[%s3709_s24 + $0x10] sm:$0xff] }
  0x46   : >> { %1123 = vmatprep.subr.bf16.mxu0 %v3005_v33  ;;  %1147 = vmatprep.mubr.bf16.mxu0 %v3530_v30  ;;  %v691_v26 = vld [vmem:[%s3709_s24 + $0x18] sm:$0xff] }
  0x49   : >> { %1124 = vmatpush1.bf16.msra.mxu0 %v3004_v34 }
  0x4a   : >> { %1125 = vmatprep.subr.bf16.mxu0 %v2997_v37  ;;  %v738_v37 = vld [vmem:[%s3709_s24 + $0x190] sm:$0xff] }
  0x4d   : >> { %1126 = vmatpush1.bf16.msra.mxu0 %v2996_v38 }
  0x4e   : >> { %1127 = vmatprep.subr.bf16.mxu0 %v2989_v9  ;;  %v710_v9 = vld [vmem:[%s3709_s24 + $0xb0] sm:$0xff] }
  0x51   : >> { %1128 = vmatpush1.bf16.msra.mxu0 %v2988_v11  ;;  %v711_v11 = vld [vmem:[%s3709_s24 + $0xb8] sm:$0xff] }
  0x52   : >> { %1129 = vmatprep.subr.bf16.mxu0 %v2981_v17  ;;  %v702_v17 = vld [vmem:[%s3709_s24 + $0x70] sm:$0xff] }
  0x53   : >> { %v2993_v22 = vcombine.high %v698_v16, %v702_v17 }
  0xf5   : >> { %v585_v40 = vpop.f32.mrf.mxu0 }
  0xf6   : >> { %v586_v42 = vadd.f32 %v2967_v39, %v585_v40  ;;  %v739_v40 = vld [vmem:[%s3709_s24 + $0x198] sm:$0xff] }
  0xf7   : >> { %v3292_v41 = vpop.f32.mrf.mxu0 }
  0xf8   : >> { %v592_v48 = vmax.f32 %v586_v42, 0.0  ;;  %v743_v41 = vld [vmem:[%s3709_s24 + $0x1b8] sm:$0xff] }
  0xf9   : >> { %v588_v43 = vpop.f32.mrf.mxu0  ;;  %v3035_v46 = vcombine.high %v739_v40, %v743_v41  ;;  %v3034_v52 = vcombine.low %v739_v40, %v743_v41  ;;  %v3401_v40 = vld [vmem:[%s3695_s12 + $0x30] sm:$0xff]  }
  0xfa   : >> { %v589_v44 = vadd.f32 %v2967_v39, %v588_v43  ;;  %v742_v39 = vld [vmem:[%s3709_s24 + $0x1b0] sm:$0xff] }
  0xfb   : >> { %v3293_v45 = vpop.f32.mrf.mxu0  ;;  %v3402_v41 = vld [vmem:[%s3695_s12 + $0xb0] sm:$0xff]  }
  0xfc   : >> { %v593_v49 = vmax.f32 %v589_v44, 0.0  ;;  %v3033_v45 = vcombine.high %v738_v37, %v742_v39 }
  0xfe   : >> { %v594_v50 = vpack.c.bf16 %v593_v49, %v592_v48  ;;  %v734_v48 = vld [vmem:[%s3709_s24 + $0x170] sm:$0xff]  ;;  %v731_v49 = vld [vmem:[%s3709_s24 + $0x158] sm:$0xff] }
  0xff   : >> { %v3025_v53 = vcombine.high %v730_v47, %v734_v48 }
 0x100   : >> { %3303 = vmatmul.mubr.msk.bf16.vlgmr.msra.gmra.mxu1 %vm513_vm0, %v594_v50  ;;  %v735_v50 = vld [vmem:[%s3709_s24 + $0x178] sm:$0xff] }
 0x101   : >> { %1159 = vmatpush1.bf16.msra.mxu1 %v3038_v19  ;;  %v2980_v19 = vcombine.low %v688_v14, %v692_v15  ;;  %1190 = vmatprep.mubr.bf16.mxu1 %v3530_v30  ;;  %v3026_v60 = vcombine.low %v731_v49, %v735_v50  ;;  %v3001_v14 = vcombine.high %v706_v8, %v710_v9 }
 0x102   : >> { %1160 = vmatprep.subr.bf16.mxu1 %v3031_v51  ;;  %v3032_v51 = vcombine.low %v738_v37, %v742_v39  ;;  %v3003_v15 = vcombine.high %v707_v10, %v711_v11  ;;  %v3398_v37 = vld [vmem:[%s3695_s12 + $0xb8] sm:$0xff]   ;;  %v3400_v39 = vld [vmem:[%s3695_s12 + $0xf0] sm:$0xff]  }
 0x103   : >> { %1130 = vmatpush1.bf16.msra.mxu0 %v2980_v19  ;;  %v703_v19 = vld [vmem:[%s3709_s24 + $0x78] sm:$0xff] }
 0x104   : >> { %1201 = vmatprep.subr.bf16.mxu0 %v3041_v25  ;;  %v2995_v23 = vcombine.high %v699_v18, %v703_v19  ;;  %v694_v25 = vld [vmem:[%s3709_s24 + $0x30] sm:$0xff] }
 0x105   : >> { %1161 = vmatpush1.bf16.msra.mxu1 %v3030_v54  ;;  %v3027_v54 = vcombine.high %v731_v49, %v735_v50  ;;  %v3410_v49 = vld [vmem:[%s3695_s12 + $0xa0] sm:$0xff]   ;;  %v3411_v50 = vld [vmem:[%s3695_s12 + $0x58] sm:$0xff]  }
 0x106   : >> { %1162 = vmatprep.subr.bf16.mxu1 %v3023_v55  ;;  %v722_v55 = vld [vmem:[%s3709_s24 + $0x110] sm:$0xff] }
 0x107   : >> { %v3017_v61 = vcombine.high %v722_v55, %v726_v56 }
 0x109   : >> { %1163 = vmatpush1.bf16.msra.mxu1 %v3022_v58  ;;  %v727_v58 = vld [vmem:[%s3709_s24 + $0x138] sm:$0xff] }
 0x10a   : >> { %1164 = vmatprep.subr.bf16.mxu1 %v3015_v59  ;;  %v3024_v59 = vcombine.low %v730_v47, %v734_v48  ;;  %v3408_v47 = vld [vmem:[%s3695_s12 + $0xe0] sm:$0xff]  }
 0x10b   : >> { %v3409_v48 = vld [vmem:[%s3695_s12 + $0x20] sm:$0xff]  }
 0x10d   : >> { %1165 = vmatpush1.bf16.msra.mxu1 %v3014_v62  ;;  %v3019_v62 = vcombine.high %v723_v57, %v727_v58 }
 0x10e   : >> { %1166 = vmatprep.subr.bf16.mxu1 %v3007_v63  ;;  %v714_v63 = vld [vmem:[%s3709_s24 + $0xd0] sm:$0xff] }
 0x10f   : >> { %v3009_v6 = vcombine.high %v714_v63, %v718_v0 }
 0x111   : >> { %1167 = vmatpush1.bf16.msra.mxu1 %v3006_v3  ;;  %v719_v3 = vld [vmem:[%s3709_s24 + $0xf8] sm:$0xff] }
 0x112   : >> { %1168 = vmatprep.subr.bf16.mxu1 %v2999_v4  ;;  %v3016_v4 = vcombine.low %v722_v55, %v726_v56  ;;  %v3011_v7 = vcombine.high %v715_v1, %v719_v3  ;;  %v3416_v55 = vld [vmem:[%s3695_s12 + $0xd0] sm:$0xff]  }
 0x113   : >> { %v3417_v56 = vld [vmem:[%s3695_s12 + $0x10] sm:$0xff]  }
 0x115   : >> { %1169 = vmatpush1.bf16.msra.mxu1 %v2998_v5  ;;  %v3018_v5 = vcombine.low %v723_v57, %v727_v58  ;;  %v3418_v57 = vld [vmem:[%s3695_s12 + $0x90] sm:$0xff]   ;;  %v3419_v58 = vld [vmem:[%s3695_s12 + $0x48] sm:$0xff]  }
 0x116   : >> { %1170 = vmatprep.subr.bf16.mxu1 %v2991_v13  ;;  %v3010_v13 = vcombine.low %v715_v1, %v719_v3  ;;  %v3426_v1 = vld [vmem:[%s3695_s12 + $0x80] sm:$0xff]   ;;  %v3427_v3 = vld [vmem:[%s3695_s12 + $0x178] sm:$0xff]  }
 0x119   : >> { %1171 = vmatpush1.bf16.msra.mxu1 %v2990_v12  ;;  %v3008_v12 = vcombine.low %v714_v63, %v718_v0  ;;  %v3424_v63 = vld [vmem:[%s3695_s12 + $0xc0] sm:$0xff]  }
 0x11a   : >> { %1172 = vmatprep.subr.bf16.mxu1 %v2983_v21  ;;  %v3002_v21 = vcombine.low %v707_v10, %v711_v11  ;;  %v3425_v0 = vld [vmem:[%s3695_s12] sm:$0xff]  }
 0x11d   : >> { %1173 = vmatpush1.bf16.msra.mxu1 %v2982_v20  ;;  %v3000_v20 = vcombine.low %v706_v8, %v710_v9 }
 0x11e   : >> { %1244 = vmatprep.subr.bf16.mxu1 %v3043_v29  ;;  %v2994_v29 = vcombine.low %v699_v18, %v703_v19 }
 0x1c0   : >> { %v675_v32 = vpop.f32.mrf.mxu1 }
 0x1c1   : >> { %v676_v34 = vadd.f32 %v2972_v31, %v675_v32  ;;  %v2984_v32 = vcombine.low %v690_v24, %v694_v25 }
 0x1c2   : >> { %v3304_v33 = vpop.f32.mrf.mxu1 }
 0x1c3   : >> { %v682_v42 = vmax.f32 %v676_v34, 0.0  ;;  %v3395_v34 = vld [vmem:[%s3695_s12 + $0x78] sm:$0xff]  }
 0x1c4   : >> { %v678_v35 = vpop.f32.mrf.mxu1 }
 0x1c5   : >> { %v679_v36 = vadd.f32 %v2972_v31, %v678_v35  ;;  %v3396_v35 = vld [vmem:[%s3695_s12 + $0xf8] sm:$0xff]  }
 0x1c6   : >> { %v3305_v38 = vpop.f32.mrf.mxu1 }
 0x1c7   : >> { %v683_v43 = vmax.f32 %v679_v36, 0.0  ;;  %v3397_v36 = vld [vmem:[%s3695_s12 + $0x38] sm:$0xff]   ;;  %v3399_v38 = vld [vmem:[%s3695_s12 + $0x70] sm:$0xff]  }
 0x1c9   : >> { %v3760_v44 = vpack.c.bf16 %v683_v43, %v682_v42  ;;  %v3403_v42 = vld [vmem:[%s3695_s12 + $0x68] sm:$0xff]  }
 0x1ca   : >> { %v3404_v43 = vld [vmem:[%s3695_s12 + $0xe8] sm:$0xff]  }
 0x1cb   : >> { %1148 = vmatmul.mubr.bf16.vlgmr.msra.gmra.mxu0 %v3760_v44  ;;  %1191 = vmatmul.mubr.bf16.vlgmr.msra.gmra.mxu1 %v3760_v44 }
 0x1cc   : >> { %1202 = vmatpush1.bf16.msra.mxu0 %v3040_v27  ;;  %1245 = vmatpush1.bf16.msra.mxu1 %v3042_v28  ;;  %v695_v27 = vld [vmem:[%s3709_s24 + $0x38] sm:$0xff]  ;;  %v2992_v28 = vcombine.low %v698_v16, %v702_v17 }
 0x1cd   : >> { %1203 = vmatprep.subr.bf16.mxu0 %v3033_v45  ;;  %1246 = vmatprep.subr.bf16.mxu1 %v3035_v46  ;;  %v2987_v31 = vcombine.high %v691_v26, %v695_v27  ;;  %v2986_v33 = vcombine.low %v691_v26, %v695_v27  ;;  %v3405_v45 = vld [vmem:[%s3695_s12 + $0x28] sm:$0xff]  }
 0x1ce   : >> { %1233 = vmatprep.mubr.bf16.mxu0 %v3530_v30  ;;  %1276 = vmatprep.mubr.bf16.mxu1 %v3530_v30  ;;  %v2985_v30 = vcombine.high %v690_v24, %v694_v25  ;;  %v3406_v46 = vld [vmem:[%s3695_s12 + $0xa8] sm:$0xff]  }
 0x1d0   : >> { %1204 = vmatpush1.bf16.msra.mxu0 %v3032_v51  ;;  %1247 = vmatpush1.bf16.msra.mxu1 %v3034_v52  ;;  %v3412_v51 = vld [vmem:[%s3695_s12 + $0xd8] sm:$0xff]  }
 0x1d1   : >> { %1205 = vmatprep.subr.bf16.mxu0 %v3025_v53  ;;  %1248 = vmatprep.subr.bf16.mxu1 %v3027_v54  ;;  %v3413_v52 = vld [vmem:[%s3695_s12 + $0x18] sm:$0xff]   ;;  %v3415_v54 = vld [vmem:[%s3695_s12 + $0x50] sm:$0xff]  }
 0x1d2   : >> { %v3414_v53 = vld [vmem:[%s3695_s12 + $0x98] sm:$0xff]  }
 0x1d4   : >> { %1206 = vmatpush1.bf16.msra.mxu0 %v3024_v59  ;;  %1249 = vmatpush1.bf16.msra.mxu1 %v3026_v60  ;;  %v3420_v59 = vld [vmem:[%s3695_s12 + $0xc8] sm:$0xff]  }
 0x1d5   : >> { %1207 = vmatprep.subr.bf16.mxu0 %v3017_v61  ;;  %1250 = vmatprep.subr.bf16.mxu1 %v3019_v62  ;;  %v3421_v60 = vld [vmem:[%s3695_s12 + $0x8] sm:$0xff]   ;;  %v3423_v62 = vld [vmem:[%s3695_s12 + $0x40] sm:$0xff]  }
 0x1d6   : >> { %v3422_v61 = vld [vmem:[%s3695_s12 + $0x88] sm:$0xff]  }
 0x1d8   : >> { %1208 = vmatpush1.bf16.msra.mxu0 %v3016_v4  ;;  %1251 = vmatpush1.bf16.msra.mxu1 %v3018_v5  ;;  %v3428_v4 = vld [vmem:[%s3695_s12 + $0x1f8] sm:$0xff]   ;;  %v755_v5 = vlaneseq }
 0x1d9   : >> { %1209 = vmatprep.subr.bf16.mxu0 %v3009_v6  ;;  %1252 = vmatprep.subr.bf16.mxu1 %v3011_v7 }
 0x1da   : >> { %v3824_v6 = vshrl.u32 %v755_v5, 7 }
 0x1dc   : >> { %1210 = vmatpush1.bf16.msra.mxu0 %v3008_v12  ;;  %1253 = vmatpush1.bf16.msra.mxu1 %v3010_v13  ;;  %v761_v7 = vsub.s32 1, %v3824_v6  ;;  %v769_v8 = vsub.s32 3, %v3824_v6  ;;  %v757_v9 = vsub.s32 0, %v3824_v6  ;;  %v765_v11 = vsub.s32 2, %v3824_v6  ;;  %v3835_v13 = vld [vmem:[%s752_s22] sm:$0xff]  ;;  %s4213_s22 = sld [smem:[#allocation10_spill]] (%p518_p11) }
 0x1dd   : >> { %1211 = vmatprep.subr.bf16.mxu0 %v3001_v14  ;;  %1254 = vmatprep.subr.bf16.mxu1 %v3003_v15 }
 0x1de   : >> { %v762_v16 = vrot.slane %v3835_v13, %v761_v7  ;;  %v770_v17 = vrot.slane %v3835_v13, %v769_v8  ;;  %v758_v18 = vrot.slane %v3835_v13, %v757_v9  ;;  %v766_v19 = vrot.slane %v3835_v13, %v765_v11 }
 0x1e0   : >> { %1212 = vmatpush1.bf16.msra.mxu0 %v3000_v20  ;;  %1255 = vmatpush1.bf16.msra.mxu1 %v3002_v21 }
 0x1e1   : >> { %1213 = vmatprep.subr.bf16.mxu0 %v2993_v22  ;;  %1256 = vmatprep.subr.bf16.mxu1 %v2995_v23 }
 0x1e4   : >> { %1214 = vmatpush1.bf16.msra.mxu0 %v2992_v28  ;;  %1257 = vmatpush1.bf16.msra.mxu1 %v2994_v29 }
 0x1e5   : >> { %1215 = vmatprep.subr.bf16.mxu0 %v2985_v30  ;;  %1258 = vmatprep.subr.bf16.mxu1 %v2987_v31 }
 0x1e8   : >> { %1216 = vmatpush1.bf16.msra.mxu0 %v2984_v32  ;;  %1259 = vmatpush1.bf16.msra.mxu1 %v2986_v33 }
 0x1e9   : >> { %3195 = vmatprep.subr.bf16.mxu0 %v3395_v34  ;;  %3217 = vmatprep.subr.bf16.mxu1 %v3396_v35  ;;  %v3429_v34 = vld [vmem:[%s3695_s12 + $0x138] sm:$0xff]  }
 0x1ea   : >> { %v3430_v35 = vld [vmem:[%s3695_s12 + $0x1b8] sm:$0xff]  }
 0x1eb   : >> { %1234 = vmatmul.mubr.bf16.vlgmr.msra.gmra.mxu0 %v3760_v44  ;;  %1277 = vmatmul.mubr.bf16.vlgmr.msra.gmra.mxu1 %v3760_v44  ;;  %v3407_v44 = vld [vmem:[%s3695_s12 + $0x60] sm:$0xff]  }
 0x1ec   : >> { %3196 = vmatpush3.bf16.msra.mxu0 %v3397_v36  ;;  %3218 = vmatpush3.bf16.msra.mxu1 %v3398_v37 }
 0x1ed   : >> { %3197 = vmatprep.subr.bf16.mxu0 %v3399_v38  ;;  %3219 = vmatprep.subr.bf16.mxu1 %v3400_v39  ;;  %v3431_v38 = vld [vmem:[%s3695_s12 + $0x170] sm:$0xff]  }
 0x1ee   : >> { %v3432_v39 = vld [vmem:[%s3695_s12 + $0x1f0] sm:$0xff]  }
 0x1f0   : >> { %3198 = vmatpush3.bf16.msra.mxu0 %v3401_v40  ;;  %3220 = vmatpush3.bf16.msra.mxu1 %v3402_v41  ;;  %v3433_v40 = vld [vmem:[%s3695_s12 + $0x130] sm:$0xff]  }
 0x1f1   : >> { %3199 = vmatprep.subr.bf16.mxu0 %v3403_v42  ;;  %3221 = vmatprep.subr.bf16.mxu1 %v3404_v43  ;;  %v3434_v41 = vld [vmem:[%s3695_s12 + $0x1b0] sm:$0xff]   ;;  %v3435_v42 = vld [vmem:[%s3695_s12 + $0x168] sm:$0xff]  }
 0x1f2   : >> { %v3436_v43 = vld [vmem:[%s3695_s12 + $0x1e8] sm:$0xff]  }
 0x1f4   : >> { %3200 = vmatpush3.bf16.msra.mxu0 %v3405_v45  ;;  %3222 = vmatpush3.bf16.msra.mxu1 %v3406_v46  ;;  %v3437_v45 = vld [vmem:[%s3695_s12 + $0x128] sm:$0xff]  }
 0x1f5   : >> { %3201 = vmatprep.subr.bf16.mxu0 %v3407_v44  ;;  %3223 = vmatprep.subr.bf16.mxu1 %v3408_v47  ;;  %v3438_v46 = vld [vmem:[%s3695_s12 + $0x1a8] sm:$0xff]   ;;  %v3439_v44 = vld [vmem:[%s3695_s12 + $0x160] sm:$0xff]  }
 0x1f6   : >> { %v3440_v47 = vld [vmem:[%s3695_s12 + $0x1e0] sm:$0xff]  }
 0x1f8   : >> { %3202 = vmatpush3.bf16.msra.mxu0 %v3409_v48  ;;  %3224 = vmatpush3.bf16.msra.mxu1 %v3410_v49  ;;  %v3441_v48 = vld [vmem:[%s3695_s12 + $0x120] sm:$0xff]  }
 0x1f9   : >> { %3203 = vmatprep.subr.bf16.mxu0 %v3411_v50  ;;  %3225 = vmatprep.subr.bf16.mxu1 %v3412_v51  ;;  %v3442_v49 = vld [vmem:[%s3695_s12 + $0x1a0] sm:$0xff]   ;;  %v3443_v50 = vld [vmem:[%s3695_s12 + $0x158] sm:$0xff]  }
 0x1fa   : >> { %v3444_v51 = vld [vmem:[%s3695_s12 + $0x1d8] sm:$0xff]  }
 0x1fc   : >> { %3204 = vmatpush3.bf16.msra.mxu0 %v3413_v52  ;;  %3226 = vmatpush3.bf16.msra.mxu1 %v3414_v53  ;;  %v3445_v52 = vld [vmem:[%s3695_s12 + $0x118] sm:$0xff]  }
 0x1fd   : >> { %3205 = vmatprep.subr.bf16.mxu0 %v3415_v54  ;;  %3227 = vmatprep.subr.bf16.mxu1 %v3416_v55  ;;  %v3446_v53 = vld [vmem:[%s3695_s12 + $0x198] sm:$0xff]   ;;  %v3447_v54 = vld [vmem:[%s3695_s12 + $0x150] sm:$0xff]  }
 0x1fe   : >> { %v3448_v55 = vld [vmem:[%s3695_s12 + $0x1d0] sm:$0xff]  }
 0x200   : >> { %3206 = vmatpush3.bf16.msra.mxu0 %v3417_v56  ;;  %3228 = vmatpush3.bf16.msra.mxu1 %v3418_v57  ;;  %v3449_v56 = vld [vmem:[%s3695_s12 + $0x110] sm:$0xff]  }
 0x201   : >> { %3207 = vmatprep.subr.bf16.mxu0 %v3419_v58  ;;  %3229 = vmatprep.subr.bf16.mxu1 %v3420_v59  ;;  %v3450_v57 = vld [vmem:[%s3695_s12 + $0x190] sm:$0xff]   ;;  %v3451_v58 = vld [vmem:[%s3695_s12 + $0x148] sm:$0xff]  }
 0x202   : >> { %v3452_v59 = vld [vmem:[%s3695_s12 + $0x1c8] sm:$0xff]  }
 0x204   : >> { %3208 = vmatpush3.bf16.msra.mxu0 %v3421_v60  ;;  %3230 = vmatpush3.bf16.msra.mxu1 %v3422_v61  ;;  %v777_v60 = vsub.s32 5, %v3824_v6  ;;  %v785_v61 = vsub.s32 7, %v3824_v6 }
 0x205   : >> { %3209 = vmatprep.subr.bf16.mxu0 %v3423_v62  ;;  %3231 = vmatprep.subr.bf16.mxu1 %v3424_v63  ;;  %v773_v62 = vsub.s32 4, %v3824_v6 }
 0x208   : >> { %3210 = vmatpush3.bf16.msra.mxu0 %v3425_v0  ;;  %3232 = vmatpush3.bf16.msra.mxu1 %v3426_v1  ;;  %v781_v0 = vsub.s32 6, %v3824_v6 }
 0x209   : >> { %3239 = vmatprep.subr.bf16.mxu0 %v3427_v3  ;;  %3261 = vmatprep.subr.bf16.mxu1 %v3428_v4  ;;  %v3453_v3 = vld [vmem:[%s3695_s12 + $0x108] sm:$0xff]  }
 0x20a   : >> { %v3454_v4 = vld [vmem:[%s3695_s12 + $0x188] sm:$0xff]  }
 0x28b   : >> { %v1149_v10 = vpop.f32.mrf.mxu0  ;;  %v1192_v12 = vpop.f32.mrf.mxu1 }
 0x28c   : >> { %v1150_v30 = vadd.f32 %v1149_v10, %v758_v18  ;;  %v1193_v31 = vadd.f32 %v1192_v12, %v766_v19  ;;  %v3455_v12 = vld [vmem:[%s3695_s12 + $0x140] sm:$0xff]  }
 0x28d   : >> { %v1151_v14 = vpop.f32.mrf.mxu0  ;;  %v1194_v15 = vpop.f32.mrf.mxu1 }
 0x28e   : >> { %v1152_v26 = vadd.f32 %v1151_v14, %v762_v16  ;;  %v1195_v27 = vadd.f32 %v1194_v15, %v770_v17  ;;  %v3456_v14 = vld [vmem:[%s3695_s12 + $0x1c0] sm:$0xff]   ;;  %v778_v15 = vrot.slane %v3835_v13, %v777_v60 }
 0x28f   : >> { %v1153_v20 = vpop.f32.mrf.mxu0  ;;  %v1196_v21 = vpop.f32.mrf.mxu1 }
 0x290   : >> { %v1154_v22 = vadd.f32 %v1153_v20, %v758_v18  ;;  %v1197_v23 = vadd.f32 %v1196_v21, %v766_v19  ;;  %v782_v18 = vrot.slane %v3835_v13, %v781_v0  ;;  %v3457_v21 = vld [vmem:[%s3695_s12 + $0x100] sm:$0xff]  }
 0x291   : >> { %v1155_v24 = vpop.f32.mrf.mxu0  ;;  %v1198_v25 = vpop.f32.mrf.mxu1 }
 0x292   : >> { %v1156_v28 = vadd.f32 %v1155_v24, %v762_v16  ;;  %v1199_v29 = vadd.f32 %v1198_v25, %v770_v17  ;;  %v1289_v36 = vpack.c.bf16 %v1154_v22, %v1150_v30  ;;  %v1291_v37 = vpack.c.bf16 %v1197_v23, %v1193_v31  ;;  %v3458_v22 = vld [vmem:[%s3695_s12 + $0x180] sm:$0xff]   ;;  %s4214_s12 = sld [smem:[#allocation4_spill]] (%p518_p11) }
 0x293   : >> { %v786_v16 = vrot.slane %v3835_v13, %v785_v61  ;;  %v774_v17 = vrot.slane %v3835_v13, %v773_v62 }
 0x294   : >> { %v1290_v32 = vpack.c.bf16 %v1156_v28, %v1152_v26  ;;  %v1292_v33 = vpack.c.bf16 %v1199_v29, %v1195_v27 }
 0x296   : >> { %1843 = vmatprep.mubr.bf16.mxu0 %v1290_v32  ;;  %1884 = vmatprep.mubr.bf16.mxu1 %v1292_v33 }
 0x297   : >> { %1844 = vmatmul.mubr.bf16.vlgmr.msra.gmra.mxu0 %v1289_v36  ;;  %1885 = vmatmul.mubr.bf16.vlgmr.msra.gmra.mxu1 %v1291_v37 }
 0x298   : >> { %3240 = vmatpush3.bf16.msra.mxu0 %v3429_v34  ;;  %3262 = vmatpush3.bf16.msra.mxu1 %v3430_v35  ;;  %p3180_p12 = scmp.ne.s32.totalorder (%p518_p11), %s4214_s12, 0 }
 0x299   : >> { %3241 = vmatprep.subr.bf16.mxu0 %v3431_v38  ;;  %3263 = vmatprep.subr.bf16.mxu1 %v3432_v39 }
 0x29c   : >> { %3242 = vmatpush3.bf16.msra.mxu0 %v3433_v40  ;;  %3264 = vmatpush3.bf16.msra.mxu1 %v3434_v41 }
 0x29d   : >> { %3243 = vmatprep.subr.bf16.mxu0 %v3435_v42  ;;  %3265 = vmatprep.subr.bf16.mxu1 %v3436_v43 }
 0x2a0   : >> { %3244 = vmatpush3.bf16.msra.mxu0 %v3437_v45  ;;  %3266 = vmatpush3.bf16.msra.mxu1 %v3438_v46 }
 0x2a1   : >> { %3245 = vmatprep.subr.bf16.mxu0 %v3439_v44  ;;  %3267 = vmatprep.subr.bf16.mxu1 %v3440_v47 }
 0x2a4   : >> { %3246 = vmatpush3.bf16.msra.mxu0 %v3441_v48  ;;  %3268 = vmatpush3.bf16.msra.mxu1 %v3442_v49 }
 0x2a5   : >> { %3247 = vmatprep.subr.bf16.mxu0 %v3443_v50  ;;  %3269 = vmatprep.subr.bf16.mxu1 %v3444_v51 }
 0x2a8   : >> { %3248 = vmatpush3.bf16.msra.mxu0 %v3445_v52  ;;  %3270 = vmatpush3.bf16.msra.mxu1 %v3446_v53 }
 0x2a9   : >> { %3249 = vmatprep.subr.bf16.mxu0 %v3447_v54  ;;  %3271 = vmatprep.subr.bf16.mxu1 %v3448_v55 }
 0x2ab   : >> { %v1235_v63 = vpop.f32.mrf.mxu0  ;;  %v1278_v1 = vpop.f32.mrf.mxu1 }
 0x2ac   : >> { %3250 = vmatpush3.bf16.msra.mxu0 %v3449_v56  ;;  %3272 = vmatpush3.bf16.msra.mxu1 %v3450_v57  ;;  %v1236_v31 = vadd.f32 %v1235_v63, %v774_v17  ;;  %v1279_v32 = vadd.f32 %v1278_v1, %v782_v18 }
 0x2ad   : >> { %v1237_v5 = vpop.f32.mrf.mxu0  ;;  %v1280_v10 = vpop.f32.mrf.mxu1  ;;  %3251 = vmatprep.subr.bf16.mxu0 %v3451_v58  ;;  %3273 = vmatprep.subr.bf16.mxu1 %v3452_v59  ;;  %v1287_v58 = vld [vmem:[#allocation2] sm:$0xff] }
 0x2ae   : >> { %v1238_v27 = vadd.f32 %v1237_v5, %v778_v15  ;;  %v1281_v28 = vadd.f32 %v1280_v10, %v786_v16 }
 0x2af   : >> { %v1239_v19 = vpop.f32.mrf.mxu0  ;;  %v1282_v20 = vpop.f32.mrf.mxu1 }
 0x2b0   : >> { %3252 = vmatpush3.bf16.msra.mxu0 %v3453_v3  ;;  %3274 = vmatpush3.bf16.msra.mxu1 %v3454_v4  ;;  %v1240_v23 = vadd.f32 %v1239_v19, %v774_v17  ;;  %v1283_v24 = vadd.f32 %v1282_v20, %v782_v18  ;;  %v3459_v17 = vld [vmem:[%s4194_s9 + $0x18] sm:$0xff] (%p518_p11)   ;;  %v3460_v18 = vld [vmem:[%s4194_s9 + $0x10] sm:$0xff] (%p518_p11)  }
 0x2b1   : >> { %v1241_v25 = vpop.f32.mrf.mxu0  ;;  %v1284_v26 = vpop.f32.mrf.mxu1  ;;  %3253 = vmatprep.subr.bf16.mxu0 %v3455_v12  ;;  %3275 = vmatprep.subr.bf16.mxu1 %v3456_v14  ;;  %v1288_v14 = vld [vmem:[#allocation2 + $0x8] sm:$0xff] }
 0x2b2   : >> { %v1242_v29 = vadd.f32 %v1241_v25, %v778_v15  ;;  %v1285_v30 = vadd.f32 %v1284_v26, %v786_v16  ;;  %v1293_v34 = vpack.c.bf16 %v1240_v23, %v1236_v31  ;;  %v1295_v35 = vpack.c.bf16 %v1283_v24, %v1279_v32  ;;  %v2135_v24 = vld [vmem:[%s4196_s11 + $0x1c0] sm:$0xff] (%p518_p11)  ;;  %v3461_v26 = vld [vmem:[%s4194_s9 + $0x8] sm:$0xff] (%p518_p11)  }
 0x2b3   : > { %v2139_v25 = vld [vmem:[%s4196_s11 + $0x1e0] sm:$0xff] (%p518_p11)  ;;  %v2136_v32 = vld [vmem:[%s4196_s11 + $0x1c8] sm:$0xff] (%p518_p11) }
 0x2b4   : >> { %v1294_v33 = vpack.c.bf16 %v1242_v29, %v1238_v27  ;;  %v1296_v13 = vpack.c.bf16 %v1285_v30, %v1281_v28  ;;  %3254 = vmatpush3.bf16.msra.mxu0 %v3457_v21  ;;  %3276 = vmatpush3.bf16.msra.mxu1 %v3458_v22  ;;  %v3109_v21 = vld [vmem:[%s4193_s8] ss:$0 sm:$0xff] (%p518_p11)  ;;  %v3173_v27 = vcombine.high (%p518_p11), %v2135_v24, %v2139_v25 }
 0x2b5   : > { %3306 = vmatprep.subr.bf16.mxu0 (%p518_p11), %v3527_v2  ;;  %v3172_v28 = vcombine.low (%p518_p11), %v2135_v24, %v2139_v25  ;;  %v2127_v29 = vld [vmem:[%s4196_s11 + $0x180] sm:$0xff] (%p518_p11)  ;;  %v2088_v24 = vld [vmem:[%s4196_s11 + $0x48] sm:$0xff] (%p518_p11) }
 0x2b6   : >> { %1925 = vmatprep.mubr.bf16.mxu0 %v1294_v33  ;;  %1966 = vmatprep.mubr.bf16.mxu1 %v1296_v13  ;;  %v2131_v30 = vld [vmem:[%s4196_s11 + $0x1a0] sm:$0xff] (%p518_p11)  ;;  %v2140_v33 = vld [vmem:[%s4196_s11 + $0x1e8] sm:$0xff] (%p518_p11) }
 0x2b7   : >> { %1926 = vmatmul.mubr.bf16.vlgmr.msra.gmra.mxu0 %v1293_v34  ;;  %1967 = vmatmul.mubr.bf16.vlgmr.msra.gmra.mxu1 %v1295_v35  ;;  %v2119_v31 = vld [vmem:[%s4196_s11 + $0x140] sm:$0xff] (%p518_p11)  ;;  %v3165_v13 = vcombine.high (%p518_p11), %v2127_v29, %v2131_v30 }
 0x2b8   : > { %3314 = vmatprep.mubr.msk.bf16.mxu0 (%p518_p11), %vm3531_vm4, %v3527_v2  ;;  %3307 = vmatpush3.bf16.msra.mxu0 (%p518_p11), %v3459_v17  ;;  %v2123_v34 = vld [vmem:[%s4196_s11 + $0x160] sm:$0xff] (%p518_p11)  ;;  %v2096_v17 = vld [vmem:[%s4196_s11 + $0x88] sm:$0xff] (%p518_p11) }
 0x2b9   : > { %3308 = vmatprep.subr.bf16.mxu0 (%p518_p11), %v3527_v2  ;;  %2505 = vmatprep.subr.bf16.mxu1 (%p518_p11), %v3173_v27 }
 0x2ba   : > { %2506 = vmatpush1.bf16.msra.mxu1 (%p518_p11), %v3172_v28 }
 0x2bb   : > { %2507 = vmatprep.subr.bf16.mxu1 (%p518_p11), %v3165_v13  ;;  %v2084_v13 = vld [vmem:[%s4196_s11 + $0x28] sm:$0xff] (%p518_p11) }
 0x2bc   : > { %3309 = vmatpush3.bf16.msra.mxu0 (%p518_p11), %v3460_v18  ;;  %v2100_v18 = vld [vmem:[%s4196_s11 + $0xa8] sm:$0xff] (%p518_p11) }
 0x2bd   : > { %3310 = vmatprep.subr.bf16.mxu0 (%p518_p11), %v3527_v2 }
 0x2c0   : > { %3311 = vmatpush3.bf16.msra.mxu0 (%p518_p11), %v3461_v26  ;;  %v2092_v26 = vld [vmem:[%s4196_s11 + $0x68] sm:$0xff] (%p518_p11) }
 0x2c1   : > { %3312 = vmatprep.subr.bf16.mxu0 (%p518_p11), %v3527_v2  ;;  %v3156_v2 = vcombine.low (%p518_p11), %v2119_v31, %v2123_v34  ;;  %v3126_v27 = vcombine.low (%p518_p11), %v2088_v24, %v2092_v26  ;;  %v3127_v28 = vcombine.high (%p518_p11), %v2088_v24, %v2092_v26  ;;  %v2105_v24 = vld [vmem:[%s4196_s11 + $0xd0] sm:$0xff] (%p518_p11)  ;;  %v2106_v26 = vld [vmem:[%s4196_s11 + $0xd8] sm:$0xff] (%p518_p11) }
 0x357   : >> { %v3211_v36 = vpop.f32.mrf.mxu0  ;;  %v3233_v37 = vpop.f32.mrf.mxu1 }
 0x359   : >> { %v3212_v38 = vpop.f32.mrf.mxu0  ;;  %v3234_v39 = vpop.f32.mrf.mxu1 }
 0x35a   : >> { %v3213_v45 = vadd.f32 %v3212_v38, %v3211_v36  ;;  %v3235_v46 = vadd.f32 %v3234_v39, %v3233_v37  ;;  %v3164_v37 = vcombine.low (%p518_p11), %v2127_v29, %v2131_v30  ;;  %v3462_v38 = vld [vmem:[%s4194_s9] sm:$0xff] (%p518_p11)   ;;  %v3157_v39 = vcombine.high (%p518_p11), %v2119_v31, %v2123_v34 }
 0x35b   : >> { %v3214_v40 = vpop.f32.mrf.mxu0  ;;  %v3236_v41 = vpop.f32.mrf.mxu1  ;;  %3313 = vmatpush3.bf16.msra.mxu0 (%p518_p11), %v3462_v38  ;;  %v2079_v30 = vld [vmem:[%s4196_s11] sm:$0xff] (%p518_p11)  ;;  %v2141_v38 = vld [vmem:[%s4196_s11 + $0x1f0] sm:$0xff] (%p518_p11) }
 0x35c   : >> { %v1887_v50 = vadd.f32 %v3235_v46, %v3213_v45  ;;  %v2132_v45 = vld [vmem:[%s4196_s11 + $0x1a8] sm:$0xff] (%p518_p11)  ;;  %2508 = vmatpush1.bf16.msra.mxu1 (%p518_p11), %v3164_v37  ;;  %v2083_v31 = vld [vmem:[%s4196_s11 + $0x20] sm:$0xff] (%p518_p11)  ;;  %v2137_v37 = vld [vmem:[%s4196_s11 + $0x1d0] sm:$0xff] (%p518_p11) }
 0x35d   : >> { %v3215_v42 = vpop.f32.mrf.mxu0  ;;  %v3237_v43 = vpop.f32.mrf.mxu1  ;;  %2509 = vmatprep.subr.bf16.mxu1 (%p518_p11), %v3157_v39  ;;  %v2138_v39 = vld [vmem:[%s4196_s11 + $0x1d8] sm:$0xff] (%p518_p11) }
 0x35e   : >> { %v3216_v51 = vadd.f32 %v3215_v42, %v3214_v40  ;;  %v3238_v52 = vadd.f32 %v3237_v43, %v3236_v41  ;;  %v3175_v40 = vcombine.high (%p518_p11), %v2136_v32, %v2140_v33  ;;  %v2111_v41 = vld [vmem:[%s4196_s11 + $0x100] sm:$0xff] (%p518_p11)  ;;  %v2128_v43 = vld [vmem:[%s4196_s11 + $0x188] sm:$0xff] (%p518_p11) }
 0x35f   : > { %v2115_v42 = vld [vmem:[%s4196_s11 + $0x120] sm:$0xff] (%p518_p11) }
 0x360   : >> { %v1890_v1 = vadd.f32 %v3238_v52, %v3216_v51  ;;  %2548 = vmatprep.subr.bf16.mxu0 (%p518_p11), %v3175_v40  ;;  %v2120_v51 = vld [vmem:[%s4196_s11 + $0x148] sm:$0xff] (%p518_p11)  ;;  %2510 = vmatpush1.bf16.msra.mxu1 (%p518_p11), %v3156_v2  ;;  %v3177_v40 = vcombine.high (%p518_p11), %v2137_v37, %v2141_v38  ;;  %v3110_v2 = vld [vmem:[%s4212_s20] ss:$0 sm:$0xff] (%p518_p11) }
 0x361   : > { %v2124_v52 = vld [vmem:[%s4196_s11 + $0x168] sm:$0xff] (%p518_p11) }
 0x377   : >> { %v3255_v44 = vpop.f32.mrf.mxu0  ;;  %v3277_v47 = vpop.f32.mrf.mxu1 }
 0x379   : >> { %v3256_v48 = vpop.f32.mrf.mxu0  ;;  %v3278_v49 = vpop.f32.mrf.mxu1 }
 0x37a   : >> { %v3257_v53 = vadd.f32 %v3256_v48, %v3255_v44  ;;  %v3279_v57 = vadd.f32 %v3278_v49, %v3277_v47  ;;  %v3174_v44 = vcombine.low (%p518_p11), %v2136_v32, %v2140_v33  ;;  %v3149_v47 = vcombine.high (%p518_p11), %v2111_v41, %v2115_v42  ;;  %v2103_v49 = vld [vmem:[%s4196_s11 + $0xc0] sm:$0xff] (%p518_p11)  ;;  %v2080_v32 = vld [vmem:[%s4196_s11 + $0x8] sm:$0xff] (%p518_p11) }
 0x37b   : >> { %v3258_v54 = vpop.f32.mrf.mxu0  ;;  %v3280_v55 = vpop.f32.mrf.mxu1  ;;  %v3167_v48 = vcombine.high (%p518_p11), %v2128_v43, %v2132_v45  ;;  %v3117_v33 = vcombine.high (%p518_p11), %v2079_v30, %v2083_v31  ;;  %v3118_v34 = vcombine.low (%p518_p11), %v2080_v32, %v2084_v13 }
 0x37c   : >> { %v1928_v56 = vadd.f32 %v3257_v53, %v1887_v50  ;;  %v2107_v50 = vld [vmem:[%s4196_s11 + $0xe0] sm:$0xff] (%p518_p11)  ;;  %v3148_v53 = vcombine.low (%p518_p11), %v2111_v41, %v2115_v42  ;;  %2511 = vmatprep.subr.bf16.mxu1 (%p518_p11), %v3149_v47  ;;  %v2142_v41 = vld [vmem:[%s4196_s11 + $0x1f8] sm:$0xff] (%p518_p11)  ;;  %v3176_v42 = vcombine.low (%p518_p11), %v2137_v37, %v2141_v38 }
 0x37d   : >> { %v3259_v59 = vpop.f32.mrf.mxu0  ;;  %v3281_v63 = vpop.f32.mrf.mxu1 }
 0x37e   : >> { %v1969_v3 = vadd.f32 %v3279_v57, %v1928_v56  ;;  %v3260_v4 = vadd.f32 %v3259_v59, %v3258_v54  ;;  %v3282_v12 = vadd.f32 %v3281_v63, %v3280_v55  ;;  %v3166_v54 = vcombine.low (%p518_p11), %v2128_v43, %v2132_v45  ;;  %v2095_v57 = vld [vmem:[%s4196_s11 + $0x80] sm:$0xff] (%p518_p11)  ;;  %v2112_v59 = vld [vmem:[%s4196_s11 + $0x108] sm:$0xff] (%p518_p11)  ;;  %2512 = vmatpush1.bf16.msra.mxu1 (%p518_p11), %v3148_v53  ;;  %v2133_v53 = vld [vmem:[%s4196_s11 + $0x1b0] sm:$0xff] (%p518_p11) }
 0x37f   : > { %v3141_v55 = vcombine.high (%p518_p11), %v2103_v49, %v2107_v50  ;;  %v3159_v56 = vcombine.high (%p518_p11), %v2120_v51, %v2124_v52  ;;  %v2116_v63 = vld [vmem:[%s4196_s11 + $0x128] sm:$0xff] (%p518_p11)  ;;  %v3178_v43 = vcombine.low (%p518_p11), %v2138_v39, %v2142_v41  ;;  %v3179_v45 = vcombine.high (%p518_p11), %v2138_v39, %v2142_v41  ;;  %v2089_v39 = vld [vmem:[%s4196_s11 + $0x50] sm:$0xff] (%p518_p11)  ;;  %v2090_v41 = vld [vmem:[%s4196_s11 + $0x58] sm:$0xff] (%p518_p11) }
 0x380   : >> { %v1975_v5 = vadd.f32 %v1969_v3, %v1287_v58  ;;  %v1931_v10 = vadd.f32 %v3260_v4, %v1890_v1  ;;  %v2099_v58 = vld [vmem:[%s4196_s11 + $0xa0] sm:$0xff] (%p518_p11)  ;;  %v3140_v1 = vcombine.low (%p518_p11), %v2103_v49, %v2107_v50  ;;  %v3158_v3 = vcombine.low (%p518_p11), %v2120_v51, %v2124_v52  ;;  %v2129_v51 = vld [vmem:[%s4196_s11 + $0x190] sm:$0xff] (%p518_p11) }
 0x381   : > { %2513 = vmatprep.subr.bf16.mxu1 (%p518_p11), %v3141_v55  ;;  %v3133_v4 = vcombine.high (%p518_p11), %v2095_v57, %v2099_v58  ;;  %v2134_v55 = vld [vmem:[%s4196_s11 + $0x1b8] sm:$0xff] (%p518_p11) }
 0x382   : >> { %1977 = vst.msk [vmem:[#allocation2] sm:$0xff] %vm513_vm0, %v1975_v5  ;;  %v1972_v15 = vadd.f32 %v3282_v12, %v1931_v10  ;;  %520 = sbr.rel (!%p518_p11) target bundleno = 46 (0x2e), region = 171  ;;  %v3151_v5 = vcombine.high (%p518_p11), %v2112_v59, %v2116_v63  ;;  %v2104_v10 = vld [vmem:[%s4196_s11 + $0xc8] sm:$0xff] (%p518_p11)  ;;  %2514 = vmatpush1.bf16.msra.mxu1 (%p518_p11), %v3140_v1  ;;  %v2121_v1 = vld [vmem:[%s4196_s11 + $0x150] sm:$0xff] (%p518_p11) }
 0x383   : > { %v2108_v12 = vld [vmem:[%s4196_s11 + $0xe8] sm:$0xff] (%p518_p11)  ;;  %2515 = vmatprep.subr.bf16.mxu1 (%p518_p11), %v3133_v4  ;;  %v2122_v4 = vld [vmem:[%s4196_s11 + $0x158] sm:$0xff] (%p518_p11) }
 0x384   : >> { %v1976_v16 = vadd.f32 %v1972_v15, %v1288_v14  ;;  %v3132_v14 = vcombine.low (%p518_p11), %v2095_v57, %v2099_v58  ;;  %v3150_v15 = vcombine.low (%p518_p11), %v2112_v59, %v2116_v63  ;;  %v3169_v59 = vcombine.high (%p518_p11), %v2129_v51, %v2133_v53 }
 0x386   : >> { %1978 = vst.msk [vmem:[#allocation2 + $0x8] sm:$0xff] %vm513_vm0, %v1976_v16  ;;  %v3143_v16 = vcombine.high (%p518_p11), %v2104_v10, %v2108_v12  ;;  %2516 = vmatpush1.bf16.msra.mxu1 (%p518_p11), %v3132_v14 }
 0x389   : > { %v1979_v19 = vld [vmem:[#allocation2] sm:$0xff] }
 0x38a   : > { %v1988_v22 = vadd.f32 %v3109_v21, %v1979_v19  ;;  %v3142_v19 = vcombine.low %v2104_v10, %v2108_v12  ;;  %v3168_v10 = vcombine.low %v2129_v51, %v2133_v53 }
 0x38c   : > { %v1990_v35 = vmax.f32 %v1988_v22, 0.0  ;;  %v2087_v22 = vld [vmem:[%s4196_s11 + $0x40] sm:$0xff] }
 0x38d   : > { %v1980_v20 = vld [vmem:[#allocation2 + $0x8] sm:$0xff] }
 0x38e   : > { %v1989_v23 = vadd.f32 %v3109_v21, %v1980_v20  ;;  %v3135_v20 = vcombine.high %v2096_v17, %v2100_v18  ;;  %v3134_v21 = vcombine.low %v2096_v17, %v2100_v18  ;;  %v2117_v17 = vld [vmem:[%s4196_s11 + $0x130] sm:$0xff]  ;;  %v2114_v18 = vld [vmem:[%s4196_s11 + $0x118] sm:$0xff] }
 0x390   : > { %v1991_v36 = vmax.f32 %v1989_v23, 0.0  ;;  %v2091_v23 = vld [vmem:[%s4196_s11 + $0x60] sm:$0xff] }
 0x391   : > { %v3125_v25 = vcombine.high %v2087_v22, %v2091_v23  ;;  %v3124_v29 = vcombine.low %v2087_v22, %v2091_v23 }
 0x392   : > { %v1992_v46 = vpack.c.bf16 %v1991_v36, %v1990_v35  ;;  %v3119_v35 = vcombine.high %v2080_v32, %v2084_v13  ;;  %v3116_v36 = vcombine.low %v2079_v30, %v2083_v31  ;;  %v2097_v32 = vld [vmem:[%s4196_s11 + $0x90] sm:$0xff]  ;;  %v2098_v13 = vld [vmem:[%s4196_s11 + $0x98] sm:$0xff] }
 0x393   : > { %2517 = vmatprep.subr.bf16.mxu1 %v3125_v25  ;;  %v2109_v25 = vld [vmem:[%s4196_s11 + $0xf0] sm:$0xff] }
 0x394   : > { %3315 = vmatmul.mubr.msk.bf16.vlgmr.msra.gmra.mxu0 %vm513_vm0, %v1992_v46  ;;  %2518 = vmatpush1.bf16.msra.mxu1 %v3124_v29  ;;  %v3532_v46 = vmov 0   ;;  %v3145_v30 = vcombine.high %v2105_v24, %v2109_v25 }
 0x395   : > { %2549 = vmatpush1.bf16.msra.mxu0 %v3174_v44  ;;  %2519 = vmatprep.subr.bf16.mxu1 %v3117_v33  ;;  %v2101_v33 = vld [vmem:[%s4196_s11 + $0xb0] sm:$0xff] }
 0x396   : > { %2550 = vmatprep.subr.bf16.mxu0 %v3167_v48  ;;  %2537 = vmatprep.mubr.bf16.mxu1 %v3532_v46  ;;  %v3137_v37 = vcombine.high %v2097_v32, %v2101_v33 }
 0x397   : > { %2580 = vmatprep.mubr.bf16.mxu0 %v3532_v46 }
 0x398   : > { %2520 = vmatpush1.bf16.msra.mxu1 %v3116_v36 }
 0x399   : > { %2551 = vmatpush1.bf16.msra.mxu0 %v3166_v54  ;;  %2591 = vmatprep.subr.bf16.mxu1 %v3177_v40  ;;  %v2130_v54 = vld [vmem:[%s4196_s11 + $0x198] sm:$0xff]  ;;  %v2093_v40 = vld [vmem:[%s4196_s11 + $0x70] sm:$0xff] }
 0x39a   : > { %2552 = vmatprep.subr.bf16.mxu0 %v3159_v56  ;;  %v3171_v63 = vcombine.high %v2130_v54, %v2134_v55  ;;  %v3170_v12 = vcombine.low %v2130_v54, %v2134_v55 }
 0x39d   : > { %2553 = vmatpush1.bf16.msra.mxu0 %v3158_v3  ;;  %v2125_v3 = vld [vmem:[%s4196_s11 + $0x170] sm:$0xff] }
 0x39e   : > { %2554 = vmatprep.subr.bf16.mxu0 %v3151_v5  ;;  %v2126_v5 = vld [vmem:[%s4196_s11 + $0x178] sm:$0xff]  ;;  %v3161_v14 = vcombine.high %v2121_v1, %v2125_v3 }
 0x3a1   : > { %2555 = vmatpush1.bf16.msra.mxu0 %v3150_v15  ;;  %v3163_v15 = vcombine.high %v2122_v4, %v2126_v5 }
 0x3a2   : > { %2556 = vmatprep.subr.bf16.mxu0 %v3143_v16  ;;  %v2113_v16 = vld [vmem:[%s4196_s11 + $0x110] sm:$0xff] }
 0x3a3   : > { %v3153_v22 = vcombine.high %v2113_v16, %v2117_v17 }
 0x3a5   : > { %2557 = vmatpush1.bf16.msra.mxu0 %v3142_v19  ;;  %v2118_v19 = vld [vmem:[%s4196_s11 + $0x138] sm:$0xff] }
 0x3a6   : > { %2558 = vmatprep.subr.bf16.mxu0 %v3135_v20  ;;  %v3160_v20 = vcombine.low %v2121_v1, %v2125_v3  ;;  %v3155_v23 = vcombine.high %v2114_v18, %v2118_v19  ;;  %v3154_v29 = vcombine.low %v2114_v18, %v2118_v19 }
 0x3a9   : > { %2559 = vmatpush1.bf16.msra.mxu0 %v3134_v21  ;;  %v3162_v21 = vcombine.low %v2122_v4, %v2126_v5 }
 0x3aa   : > { %2560 = vmatprep.subr.bf16.mxu0 %v3127_v28  ;;  %v3152_v28 = vcombine.low %v2113_v16, %v2117_v17 }
 0x3ad   : > { %2561 = vmatpush1.bf16.msra.mxu0 %v3126_v27  ;;  %v2110_v27 = vld [vmem:[%s4196_s11 + $0xf8] sm:$0xff] }
 0x3ae   : > { %2562 = vmatprep.subr.bf16.mxu0 %v3119_v35  ;;  %v3147_v31 = vcombine.high %v2106_v26, %v2110_v27  ;;  %v3144_v35 = vcombine.low %v2105_v24, %v2109_v25  ;;  %v3146_v36 = vcombine.low %v2106_v26, %v2110_v27 }
 0x3b1   : > { %2563 = vmatpush1.bf16.msra.mxu0 %v3118_v34  ;;  %v2102_v34 = vld [vmem:[%s4196_s11 + $0xb8] sm:$0xff] }
 0x3b2   : > { %2634 = vmatprep.subr.bf16.mxu0 %v3179_v45  ;;  %v3139_v38 = vcombine.high %v2098_v13, %v2102_v34  ;;  %v3138_v45 = vcombine.low %v2098_v13, %v2102_v34 }
 0x454   : > { %v2069_v44 = vpop.f32.mrf.mxu0 }
 0x455   : > { %v2070_v48 = vadd.f32 %v3110_v2, %v2069_v44  ;;  %v2081_v44 = vld [vmem:[%s4196_s11 + $0x10] sm:$0xff] }
 0x456   : > { %v3316_v47 = vpop.f32.mrf.mxu0 }
 0x457   : > { %v2076_v56 = vmax.f32 %v2070_v48, 0.0  ;;  %v2085_v47 = vld [vmem:[%s4196_s11 + $0x30] sm:$0xff]  ;;  %v2082_v48 = vld [vmem:[%s4196_s11 + $0x18] sm:$0xff] }
 0x458   : > { %v2072_v49 = vpop.f32.mrf.mxu0  ;;  %v3120_v54 = vcombine.low %v2081_v44, %v2085_v47 }
 0x459   : > { %v2073_v50 = vadd.f32 %v3110_v2, %v2072_v49  ;;  %v2086_v49 = vld [vmem:[%s4196_s11 + $0x38] sm:$0xff] }
 0x45a   : > { %v3317_v52 = vpop.f32.mrf.mxu0  ;;  %v3123_v53 = vcombine.high %v2082_v48, %v2086_v49  ;;  %v3122_v55 = vcombine.low %v2082_v48, %v2086_v49 }
 0x45b   : > { %v2077_v57 = vmax.f32 %v2073_v50, 0.0  ;;  %v3128_v50 = vcombine.low %v2089_v39, %v2093_v40  ;;  %v3121_v52 = vcombine.high %v2081_v44, %v2085_v47 }
 0x45d   : > { %v4044_v58 = vpack.c.bf16 %v2077_v57, %v2076_v56  ;;  %v2143_v56 = vld [vmem:[%s4213_s22] sm:$0xff] }
 0x45e   : > { %v2156_v1 = vrot.slane %v2143_v56, %v765_v11  ;;  %v2152_v3 = vrot.slane %v2143_v56, %v761_v7  ;;  %v2160_v5 = vrot.slane %v2143_v56, %v769_v8  ;;  %v2164_v48 = vrot.slane %v2143_v56, %v773_v62 }
 0x45f   : > { %2538 = vmatmul.mubr.bf16.vlgmr.msra.gmra.mxu1 %v4044_v58  ;;  %2581 = vmatmul.mubr.bf16.vlgmr.msra.gmra.mxu0 %v4044_v58  ;;  %v2172_v49 = vrot.slane %v2143_v56, %v781_v0 }
 0x460   : > { %2592 = vmatpush1.bf16.msra.mxu1 %v3176_v42  ;;  %2635 = vmatpush1.bf16.msra.mxu0 %v3178_v43  ;;  %v2094_v42 = vld [vmem:[%s4196_s11 + $0x78] sm:$0xff]  ;;  %v3136_v43 = vcombine.low %v2097_v32, %v2101_v33 }
 0x461   : > { %2593 = vmatprep.subr.bf16.mxu1 %v3169_v59  ;;  %2636 = vmatprep.subr.bf16.mxu0 %v3171_v63  ;;  %v3131_v2 = vcombine.high %v2090_v41, %v2094_v42  ;;  %v3130_v51 = vcombine.low %v2090_v41, %v2094_v42  ;;  %v2148_v63 = vrot.slane %v2143_v56, %v757_v9 }
 0x462   : > { %2623 = vmatprep.mubr.bf16.mxu1 %v3532_v46  ;;  %2666 = vmatprep.mubr.bf16.mxu0 %v3532_v46  ;;  %v3129_v46 = vcombine.high %v2089_v39, %v2093_v40 }
 0x464   : > { %2594 = vmatpush1.bf16.msra.mxu1 %v3168_v10  ;;  %2637 = vmatpush1.bf16.msra.mxu0 %v3170_v12 }
 0x465   : > { %2595 = vmatprep.subr.bf16.mxu1 %v3161_v14  ;;  %2638 = vmatprep.subr.bf16.mxu0 %v3163_v15 }
 0x468   : > { %2596 = vmatpush1.bf16.msra.mxu1 %v3160_v20  ;;  %2639 = vmatpush1.bf16.msra.mxu0 %v3162_v21 }
 0x469   : > { %2597 = vmatprep.subr.bf16.mxu1 %v3153_v22  ;;  %2640 = vmatprep.subr.bf16.mxu0 %v3155_v23 }
 0x46c   : > { %2598 = vmatpush1.bf16.msra.mxu1 %v3152_v28  ;;  %2641 = vmatpush1.bf16.msra.mxu0 %v3154_v29 }
 0x46d   : > { %2599 = vmatprep.subr.bf16.mxu1 %v3145_v30  ;;  %2642 = vmatprep.subr.bf16.mxu0 %v3147_v31 }
 0x470   : > { %2600 = vmatpush1.bf16.msra.mxu1 %v3144_v35  ;;  %2643 = vmatpush1.bf16.msra.mxu0 %v3146_v36 }
 0x471   : > { %2601 = vmatprep.subr.bf16.mxu1 %v3137_v37  ;;  %2644 = vmatprep.subr.bf16.mxu0 %v3139_v38 }
 0x474   : > { %2602 = vmatpush1.bf16.msra.mxu1 %v3136_v43  ;;  %2645 = vmatpush1.bf16.msra.mxu0 %v3138_v45 }
 0x475   : > { %2603 = vmatprep.subr.bf16.mxu1 %v3129_v46  ;;  %2646 = vmatprep.subr.bf16.mxu0 %v3131_v2 }
 0x478   : > { %2604 = vmatpush1.bf16.msra.mxu1 %v3128_v50  ;;  %2647 = vmatpush1.bf16.msra.mxu0 %v3130_v51  ;;  %v2168_v50 = vrot.slane %v2143_v56, %v777_v60 }
 0x479   : > { %2605 = vmatprep.subr.bf16.mxu1 %v3121_v52  ;;  %2648 = vmatprep.subr.bf16.mxu0 %v3123_v53  ;;  %v2176_v52 = vrot.slane %v2143_v56, %v785_v61 }
 0x47c   : > { %2606 = vmatpush1.bf16.msra.mxu1 %v3120_v54  ;;  %2649 = vmatpush1.bf16.msra.mxu0 %v3122_v55 }
 0x47f   : > { %2624 = vmatmul.mubr.bf16.vlgmr.msra.gmra.mxu1 %v4044_v58  ;;  %2667 = vmatmul.mubr.bf16.vlgmr.msra.gmra.mxu0 %v4044_v58 }
 0x51f   : > { %v2539_v57 = vpop.f32.mrf.mxu1  ;;  %v2582_v59 = vpop.f32.mrf.mxu0 }
 0x520   : > { %v2540_v14 = vadd.f32 %v2539_v57, %v2148_v63  ;;  %v2583_v15 = vadd.f32 %v2582_v59, %v2156_v1 }
 0x521   : > { %v2541_v4 = vpop.f32.mrf.mxu1  ;;  %v2584_v58 = vpop.f32.mrf.mxu0 }
 0x522   : > { %v2542_v18 = vadd.f32 %v2541_v4, %v2152_v3  ;;  %v2585_v19 = vadd.f32 %v2584_v58, %v2160_v5 }
 0x523   : > { %v2543_v10 = vpop.f32.mrf.mxu1  ;;  %v2586_v12 = vpop.f32.mrf.mxu0 }
 0x524   : > { %v2544_v16 = vadd.f32 %v2543_v10, %v2148_v63  ;;  %v2587_v17 = vadd.f32 %v2586_v12, %v2156_v1 }
 0x525   : > { %v2545_v9 = vpop.f32.mrf.mxu1  ;;  %v2588_v20 = vpop.f32.mrf.mxu0 }
 0x526   : > { %v2677_v21 = vmax.f32 %v2540_v14, %v2544_v16  ;;  %v2691_v11 = vmax.f32 %v2583_v15, %v2587_v17  ;;  %v2546_v22 = vadd.f32 %v2545_v9, %v2152_v3  ;;  %v2589_v23 = vadd.f32 %v2588_v20, %v2160_v5 }
 0x528   : > { %v2678_v7 = vrot.slane %v2677_v21, 4  ;;  %v2692_v24 = vrot.slane %v2691_v11, 4  ;;  %v2684_v25 = vmax.f32 %v2542_v18, %v2546_v22  ;;  %v2698_v26 = vmax.f32 %v2585_v19, %v2589_v23 }
 0x52a   : > { %v2679_v8 = vmax.f32 %v2677_v21, %v2678_v7  ;;  %v2693_v27 = vmax.f32 %v2691_v11, %v2692_v24  ;;  %v2685_v28 = vrot.slane %v2684_v25, 4  ;;  %v2699_v29 = vrot.slane %v2698_v26, 4 }
 0x52c   : > { %v2680_v30 = vrot.slane %v2679_v8, 2  ;;  %v2694_v31 = vrot.slane %v2693_v27, 2  ;;  %v2686_v32 = vmax.f32 %v2684_v25, %v2685_v28  ;;  %v2700_v33 = vmax.f32 %v2698_v26, %v2699_v29 }
 0x52e   : > { %v2681_v13 = vmax.f32 %v2679_v8, %v2680_v30  ;;  %v2695_v34 = vmax.f32 %v2693_v27, %v2694_v31  ;;  %v2687_v35 = vrot.slane %v2686_v32, 2  ;;  %v2701_v36 = vrot.slane %v2700_v33, 2 }
 0x530   : > { %v2682_v37 = vrot.slane %v2681_v13, 1  ;;  %v2696_v38 = vrot.slane %v2695_v34, 1  ;;  %v2688_v39 = vmax.f32 %v2686_v32, %v2687_v35  ;;  %v2702_v40 = vmax.f32 %v2700_v33, %v2701_v36 }
 0x532   : > { %v4133_v41 = vmax.f32 %v2681_v13, %v2682_v37  ;;  %v4135_v42 = vmax.f32 %v2695_v34, %v2696_v38  ;;  %v2689_v43 = vrot.slane %v2688_v39, 1  ;;  %v2703_v45 = vrot.slane %v2702_v40, 1 }
 0x534   : > { %v4137_v46 = vmax.f32 %v2688_v39, %v2689_v43  ;;  %v4139_v2 = vmax.f32 %v2702_v40, %v2703_v45 }
 0x53f   : > { %v2625_v44 = vpop.f32.mrf.mxu1  ;;  %v2668_v47 = vpop.f32.mrf.mxu0 }
 0x540   : > { %v2626_v57 = vadd.f32 %v2625_v44, %v2164_v48  ;;  %v2669_v59 = vadd.f32 %v2668_v47, %v2172_v49 }
 0x541   : > { %v2627_v51 = vpop.f32.mrf.mxu1  ;;  %v2670_v53 = vpop.f32.mrf.mxu0 }
 0x542   : > { %v2628_v3 = vadd.f32 %v2627_v51, %v2168_v50  ;;  %v2671_v4 = vadd.f32 %v2670_v53, %v2176_v52 }
 0x543   : > { %v2629_v54 = vpop.f32.mrf.mxu1  ;;  %v2672_v55 = vpop.f32.mrf.mxu0 }
 0x544   : > { %v2630_v63 = vadd.f32 %v2629_v54, %v2164_v48  ;;  %v2673_v1 = vadd.f32 %v2672_v55, %v2172_v49 }
 0x545   : > { %v2631_v62 = vpop.f32.mrf.mxu1  ;;  %v2674_v5 = vpop.f32.mrf.mxu0 }
 0x546   : > { %v2705_v58 = vmax.f32 %v2626_v57, %v2630_v63  ;;  %v2719_v0 = vmax.f32 %v2669_v59, %v2673_v1  ;;  %v2632_v10 = vadd.f32 %v2631_v62, %v2168_v50  ;;  %v2675_v12 = vadd.f32 %v2674_v5, %v2176_v52 }
 0x548   : > { %v2706_v60 = vrot.slane %v2705_v58, 4  ;;  %v2720_v14 = vrot.slane %v2719_v0, 4  ;;  %v2712_v15 = vmax.f32 %v2628_v3, %v2632_v10  ;;  %v2726_v16 = vmax.f32 %v2671_v4, %v2675_v12 }
 0x54a   : > { %v2707_v61 = vmax.f32 %v2705_v58, %v2706_v60  ;;  %v2721_v56 = vmax.f32 %v2719_v0, %v2720_v14  ;;  %v2713_v17 = vrot.slane %v2712_v15, 4  ;;  %v2727_v18 = vrot.slane %v2726_v16, 4 }
 0x54c   : > { %v2708_v19 = vrot.slane %v2707_v61, 2  ;;  %v2722_v9 = vrot.slane %v2721_v56, 2  ;;  %v2714_v20 = vmax.f32 %v2712_v15, %v2713_v17  ;;  %v2728_v21 = vmax.f32 %v2726_v16, %v2727_v18 }
 0x54e   : > { %v2709_v11 = vmax.f32 %v2707_v61, %v2708_v19  ;;  %v2723_v22 = vmax.f32 %v2721_v56, %v2722_v9  ;;  %v2715_v23 = vrot.slane %v2714_v20, 2  ;;  %v2729_v7 = vrot.slane %v2728_v21, 2 }
 0x550   : > { %v2710_v24 = vrot.slane %v2709_v11, 1  ;;  %v2724_v25 = vrot.slane %v2723_v22, 1  ;;  %v2716_v26 = vmax.f32 %v2714_v20, %v2715_v23  ;;  %v2730_v8 = vmax.f32 %v2728_v21, %v2729_v7  ;;  %2736 = sbr.rel (%p3180_p12) target bundleno = 1381 (0x565), region = 124 }
 0x552   : > { %v2711_v27 = vmax.f32 %v2709_v11, %v2710_v24  ;;  %v2725_v28 = vmax.f32 %v2723_v22, %v2724_v25  ;;  %v2717_v29 = vrot.slane %v2716_v26, 1  ;;  %v2731_v30 = vrot.slane %v2730_v8, 1 }
 0x554   : > { %v2718_v31 = vmax.f32 %v2716_v26, %v2717_v29  ;;  %v2732_v32 = vmax.f32 %v2730_v8, %v2731_v30 }
 0x555   : > { %v3533_v33 = vmov 1966171168   ;;  %v2745_v34 = vcombine.low %v4133_v41, %v4137_v46  ;;  %v2746_v35 = vcombine.low %v4135_v42, %v4139_v2 }
 0x556   : > { %v2750_v13 = vunpack.c.l.s4 %v3533_v33  ;;  %v2747_v36 = vcombine.low %v2711_v27, %v2718_v31  ;;  %v2748_v37 = vcombine.low %v2725_v28, %v2732_v32 }
 0x558   : > { %v2751_v38 = vunpack.c.0.s8 %v2750_v13 }
 0x55a   : > { %v2754_v39 = vsub.s32 %v2751_v38, %v3824_v6 }
 0x55c   : > { %v2755_v40 = vrot.slane %v2745_v34, %v2754_v39  ;;  %v2762_v43 = vrot.slane %v2746_v35, %v2754_v39  ;;  %v2769_v45 = vrot.slane %v2747_v36, %v2754_v39  ;;  %v2776_v44 = vrot.slane %v2748_v37, %v2754_v39 }
 0x55e   : > { %v2777_v47 = vcombine.low %v2755_v40, %v2762_v43  ;;  %v2778_v48 = vcombine.low %v2769_v45, %v2776_v44 }
 0x560   : > { %v2785_v49 = vrot.slane %v2777_v47, %v2754_v39  ;;  %v2792_v50 = vrot.slane %v2778_v48, %v2754_v39 }
 0x562   : > { %v2793_v51 = vcombine.low %v2785_v49, %v2792_v50 }
 0x564   : > { %2795 = vst [vmem:[%s3679_s19] sm:$0xff] %v2793_v51 }
 0x565 PF: > { %s4215_s15 = sld [smem:[#allocation4_spill]] }
 0x56b   : > { %p3181_p13 = scmp.le.s32.totalorder %s4215_s15, 0 }
 0x56d   : > { %2799 = sbr.rel (%p3181_p13) target bundleno = 1412 (0x584), region = 128 }
 0x572   : > { %v3534_v52 = vmov 1966171168   ;;  %v2809_v54 = vcombine.low %v4133_v41, %v4137_v46  ;;  %v2810_v55 = vcombine.low %v4135_v42, %v4139_v2  ;;  %v2811_v57 = vcombine.low %v2711_v27, %v2718_v31  ;;  %v2800_v60 = vld [vmem:[%s3679_s19] sm:$0xff] }
 0x573   : > { %v2814_v53 = vunpack.c.l.s4 %v3534_v52  ;;  %v2812_v59 = vcombine.low %v2725_v28, %v2732_v32 }
 0x575   : > { %v2815_v63 = vunpack.c.0.s8 %v2814_v53 }
 0x577   : > { %v2818_v1 = vsub.s32 %v2815_v63, %v3824_v6 }
 0x579   : > { %v2819_v3 = vrot.slane %v2809_v54, %v2818_v1  ;;  %v2826_v4 = vrot.slane %v2810_v55, %v2818_v1  ;;  %v2833_v62 = vrot.slane %v2811_v57, %v2818_v1  ;;  %v2840_v5 = vrot.slane %v2812_v59, %v2818_v1 }
 0x57b   : > { %v2841_v58 = vcombine.low %v2819_v3, %v2826_v4  ;;  %v2842_v0 = vcombine.low %v2833_v62, %v2840_v5 }
 0x57d   : > { %v2849_v10 = vrot.slane %v2841_v58, %v2818_v1  ;;  %v2856_v12 = vrot.slane %v2842_v0, %v2818_v1 }
 0x57f   : > { %v2857_v14 = vcombine.low %v2849_v10, %v2856_v12 }
 0x581   : > { %v2859_v41 = vmax.f32 %v2800_v60, %v2857_v14 }
 0x583   : > { %2860 = vst [vmem:[%s3679_s19] sm:$0xff] %v2859_v41 }
 0x584 PF: > { %s23_s14 = sadd.s32 1, %s3521_s14   ;;  %s4216_s28 = sld [smem:[#allocation5_spill]] }
 0x585   : > { %p20_p0 = scmp.ge.s32.totalorder %s23_s14, 6   ;;  %s4217_s23 = sld [smem:[#allocation6_spill]] }
 0x586   : > { %s4218_s30 = sld [smem:[#allocation7_spill]]  ;;  %s4219_s25 = smov %s3501_s26 }
 0x587   : > { %s4220_s26 = smov %s3656_s21  ;;  %s4221_s27 = smov %s3513_s29 }
 0x588   :  { %22 = sbr.rel (!%p20_p0) target bundleno = 9 (0x9), region = 182 }
 0x58b   : > { %s4222_s29 = smov %s4217_s23 }

// kernel: pointnet_cls_forward.3
= control target key start
LH: loop header
LB: loop body
LE: loop exit
PB: predicated region body
PF: predicated region fallthrough
CT: control target
= control target key end

     0   :  { %v3555_v36 = vmov 1983009808   ;;  %v36_v38 = vlaneseq  ;;  %s4706_s0 = inlined_call_operand.vmem [shape: f32[2,1024], index: 0, kind: input, shape index: {}]   ;;  %s4707_s1 = inlined_call_operand.vmem [shape: bf16[1024,512], index: 1, kind: input, shape index: {}]   ;;  %s4708_s2 = inlined_call_operand.vmem [shape: f32[1,512], index: 2, kind: input, shape index: {}]   ;;  %s4709_s3 = inlined_call_operand.vmem [shape: bf16[512,256], index: 3, kind: input, shape index: {}]   ;;  %s4710_s4 = inlined_call_operand.vmem [shape: f32[1,256], index: 4, kind: input, shape index: {}]   ;;  %s4711_s5 = inlined_call_operand.vmem [shape: bf16[256,128], index: 5, kind: input, shape index: {}]   ;;  %s4712_s6 = inlined_call_operand.vmem [shape: f32[1,128], index: 6, kind: input, shape index: {}]   ;;  %s4713_s7 = inlined_call_operand.hbm [shape: f32[2,128], index: 7, kind: output, shape index: {}]  }
   0x1   :  { %v3031_v0 = vld [vmem:[%s4707_s1 + $0xe4] ss:$16 sps:$4 sm:$0xff]   ;;  %v3035_v2 = vld [vmem:[%s4707_s1 + $0xe0] ss:$16 sps:$4 sm:$0xff]   ;;  %v34_v37 = vunpack.c.l.s4 %v3555_v36 }
   0x2   :  { %v3033_v1 = vld [vmem:[%s4707_s1 + $0x2e4] ss:$16 sps:$4 sm:$0xff]   ;;  %1640 = vmatprep.subr.bf16.mxu0 %v3031_v0  ;;  %v3036_v3 = vld [vmem:[%s4707_s1 + $0x2e0] ss:$16 sps:$4 sm:$0xff]   ;;  %v3714_v43 = vshrl.u32 %v36_v38, 7 }
   0x3   :  { %1681 = vmatprep.subr.bf16.mxu1 %v3033_v1  ;;  %v3037_v4 = vld [vmem:[%s4707_s1 + $0xc4] ss:$16 sps:$4 sm:$0xff]   ;;  %1641 = vmatpush1.bf16.msra.mxu0 %v3035_v2  ;;  %v3041_v6 = vld [vmem:[%s4707_s1 + $0xc0] ss:$16 sps:$4 sm:$0xff]   ;;  %v35_v42 = vunpack.c.0.s8 %v34_v37 }
   0x4   :  { %1682 = vmatpush1.bf16.msra.mxu1 %v3036_v3  ;;  %v3039_v5 = vld [vmem:[%s4707_s1 + $0x2c4] ss:$16 sps:$4 sm:$0xff]   ;;  %1642 = vmatprep.subr.bf16.mxu0 %v3037_v4  ;;  %v3042_v7 = vld [vmem:[%s4707_s1 + $0x2c0] ss:$16 sps:$4 sm:$0xff]  }
   0x5   :  { %1683 = vmatprep.subr.bf16.mxu1 %v3039_v5  ;;  %v3043_v8 = vld [vmem:[%s4707_s1 + $0xa4] ss:$16 sps:$4 sm:$0xff]   ;;  %v3047_v10 = vld [vmem:[%s4707_s1 + $0xa0] ss:$16 sps:$4 sm:$0xff]   ;;  %v3732_v49 = vsub.s32 %v35_v42, %v3714_v43  ;;  %v29_v42 = vld [vmem:[%s4706_s0 + $0x8] sm:$0xff] }
   0x6   :  { %v3045_v9 = vld [vmem:[%s4707_s1 + $0x2a4] ss:$16 sps:$4 sm:$0xff]   ;;  %v3048_v11 = vld [vmem:[%s4707_s1 + $0x2a0] ss:$16 sps:$4 sm:$0xff]  }
   0x7   :  { %1643 = vmatpush1.bf16.msra.mxu0 %v3041_v6  ;;  %v3049_v12 = vld [vmem:[%s4707_s1 + $0x84] ss:$16 sps:$4 sm:$0xff]   ;;  %v3053_v14 = vld [vmem:[%s4707_s1 + $0x80] ss:$16 sps:$4 sm:$0xff]  }
   0x8   :  { %1684 = vmatpush1.bf16.msra.mxu1 %v3042_v7  ;;  %1644 = vmatprep.subr.bf16.mxu0 %v3043_v8  ;;  %v3051_v13 = vld [vmem:[%s4707_s1 + $0x284] ss:$16 sps:$4 sm:$0xff]   ;;  %v3054_v15 = vld [vmem:[%s4707_s1 + $0x280] ss:$16 sps:$4 sm:$0xff]  }
   0x9   :  { %1685 = vmatprep.subr.bf16.mxu1 %v3045_v9  ;;  %v3055_v16 = vld [vmem:[%s4707_s1 + $0x64] ss:$16 sps:$4 sm:$0xff]   ;;  %v3059_v18 = vld [vmem:[%s4707_s1 + $0x60] ss:$16 sps:$4 sm:$0xff]  }
   0xa   :  { %v3057_v17 = vld [vmem:[%s4707_s1 + $0x264] ss:$16 sps:$4 sm:$0xff]   ;;  %v3060_v19 = vld [vmem:[%s4707_s1 + $0x260] ss:$16 sps:$4 sm:$0xff]  }
   0xb   :  { %1645 = vmatpush1.bf16.msra.mxu0 %v3047_v10  ;;  %v3061_v20 = vld [vmem:[%s4707_s1 + $0x44] ss:$16 sps:$4 sm:$0xff]   ;;  %v3065_v22 = vld [vmem:[%s4707_s1 + $0x40] ss:$16 sps:$4 sm:$0xff]  }
   0xc   :  { %1686 = vmatpush1.bf16.msra.mxu1 %v3048_v11  ;;  %1646 = vmatprep.subr.bf16.mxu0 %v3049_v12  ;;  %v3063_v21 = vld [vmem:[%s4707_s1 + $0x244] ss:$16 sps:$4 sm:$0xff]   ;;  %v3066_v23 = vld [vmem:[%s4707_s1 + $0x240] ss:$16 sps:$4 sm:$0xff]  }
   0xd   :  { %1687 = vmatprep.subr.bf16.mxu1 %v3051_v13  ;;  %v3067_v24 = vld [vmem:[%s4707_s1 + $0x24] ss:$16 sps:$4 sm:$0xff]   ;;  %v3071_v26 = vld [vmem:[%s4707_s1 + $0x20] ss:$16 sps:$4 sm:$0xff]  }
   0xe   :  { %v3069_v25 = vld [vmem:[%s4707_s1 + $0x224] ss:$16 sps:$4 sm:$0xff]   ;;  %v3072_v27 = vld [vmem:[%s4707_s1 + $0x220] ss:$16 sps:$4 sm:$0xff]  }
   0xf   :  { %1647 = vmatpush1.bf16.msra.mxu0 %v3053_v14  ;;  %v3073_v28 = vld [vmem:[%s4707_s1 + $0x4] ss:$16 sps:$4 sm:$0xff]   ;;  %v3077_v30 = vld [vmem:[%s4707_s1] ss:$16 sps:$4 sm:$0xff]  }
  0x10   :  { %1688 = vmatpush1.bf16.msra.mxu1 %v3054_v15  ;;  %1648 = vmatprep.subr.bf16.mxu0 %v3055_v16  ;;  %v3075_v29 = vld [vmem:[%s4707_s1 + $0x204] ss:$16 sps:$4 sm:$0xff]   ;;  %v3078_v31 = vld [vmem:[%s4707_s1 + $0x200] ss:$16 sps:$4 sm:$0xff]  }
  0x11   :  { %1689 = vmatprep.subr.bf16.mxu1 %v3057_v17  ;;  %v3079_v32 = vld [vmem:[%s4707_s1 + $0x1e4] ss:$16 sps:$4 sm:$0xff]   ;;  %v3083_v34 = vld [vmem:[%s4707_s1 + $0x1e0] ss:$16 sps:$4 sm:$0xff]  }
  0x12   :  { %v3081_v33 = vld [vmem:[%s4707_s1 + $0x3e4] ss:$16 sps:$4 sm:$0xff]   ;;  %v3084_v35 = vld [vmem:[%s4707_s1 + $0x3e0] ss:$16 sps:$4 sm:$0xff]  }
  0x13   :  { %1649 = vmatpush1.bf16.msra.mxu0 %v3059_v18  ;;  %v3085_v39 = vld [vmem:[%s4707_s1 + $0x1c4] ss:$16 sps:$4 sm:$0xff]   ;;  %v3089_v41 = vld [vmem:[%s4707_s1 + $0x1c0] ss:$16 sps:$4 sm:$0xff]  }
  0x14   :  { %1690 = vmatpush1.bf16.msra.mxu1 %v3060_v19  ;;  %1650 = vmatprep.subr.bf16.mxu0 %v3061_v20  ;;  %v3087_v40 = vld [vmem:[%s4707_s1 + $0x3c4] ss:$16 sps:$4 sm:$0xff]   ;;  %v3090_v44 = vld [vmem:[%s4707_s1 + $0x3c0] ss:$16 sps:$4 sm:$0xff]  }
  0x15   :  { %1691 = vmatprep.subr.bf16.mxu1 %v3063_v21  ;;  %v3091_v45 = vld [vmem:[%s4707_s1 + $0x1a4] ss:$16 sps:$4 sm:$0xff]   ;;  %v3095_v47 = vld [vmem:[%s4707_s1 + $0x1a0] ss:$16 sps:$4 sm:$0xff]  }
  0x16   :  { %v3093_v46 = vld [vmem:[%s4707_s1 + $0x3a4] ss:$16 sps:$4 sm:$0xff]   ;;  %v3096_v48 = vld [vmem:[%s4707_s1 + $0x3a0] ss:$16 sps:$4 sm:$0xff]  }
  0x17   :  { %1651 = vmatpush1.bf16.msra.mxu0 %v3065_v22  ;;  %v3097_v50 = vld [vmem:[%s4707_s1 + $0x184] ss:$16 sps:$4 sm:$0xff]   ;;  %v3101_v53 = vld [vmem:[%s4707_s1 + $0x180] ss:$16 sps:$4 sm:$0xff]  }
  0x18   :  { %1692 = vmatpush1.bf16.msra.mxu1 %v3066_v23  ;;  %1652 = vmatprep.subr.bf16.mxu0 %v3067_v24  ;;  %v3099_v51 = vld [vmem:[%s4707_s1 + $0x384] ss:$16 sps:$4 sm:$0xff]   ;;  %v3102_v56 = vld [vmem:[%s4707_s1 + $0x380] ss:$16 sps:$4 sm:$0xff]  }
  0x19   :  { %1693 = vmatprep.subr.bf16.mxu1 %v3069_v25  ;;  %v28_v52 = vld [vmem:[%s4706_s0] sm:$0xff] }
  0x1a   :  { %v39_v54 = vrot.slane %v28_v52, %v3732_v49  ;;  %v32_v55 = vcombine.high %v28_v52, %v28_v52  ;;  %v3103_v57 = vld [vmem:[%s4707_s1 + $0x164] ss:$16 sps:$4 sm:$0xff]   ;;  %v3107_v61 = vld [vmem:[%s4707_s1 + $0x160] ss:$16 sps:$4 sm:$0xff]  }
  0x1b   :  { %1653 = vmatpush1.bf16.msra.mxu0 %v3071_v26  ;;  %v3105_v58 = vld [vmem:[%s4707_s1 + $0x364] ss:$16 sps:$4 sm:$0xff]   ;;  %v3108_v0 = vld [vmem:[%s4707_s1 + $0x360] ss:$16 sps:$4 sm:$0xff]  }
  0x1c   :  { %1694 = vmatpush1.bf16.msra.mxu1 %v3072_v27  ;;  %1654 = vmatprep.subr.bf16.mxu0 %v3073_v28  ;;  %v47_v59 = vcombine.high %v39_v54, %v39_v54  ;;  %v46_v60 = vrot.slane %v32_v55, %v3732_v49  ;;  %v3109_v1 = vld [vmem:[%s4707_s1 + $0x144] ss:$16 sps:$4 sm:$0xff]   ;;  %v3113_v4 = vld [vmem:[%s4707_s1 + $0x140] ss:$16 sps:$4 sm:$0xff]   ;;  %v3811_v16 = vpack.c.bf16 %v39_v54, %v39_v54 }
  0x1d   :  { %1695 = vmatprep.subr.bf16.mxu1 %v3075_v29  ;;  %v3111_v2 = vld [vmem:[%s4707_s1 + $0x344] ss:$16 sps:$4 sm:$0xff]   ;;  %v3114_v5 = vld [vmem:[%s4707_s1 + $0x340] ss:$16 sps:$4 sm:$0xff]  }
  0x1e   :  { %v3760_v62 = vpack.c.bf16 %v47_v59, %v47_v59  ;;  %v48_v63 = vcombine.high %v46_v60, %v46_v60  ;;  %v3115_v6 = vld [vmem:[%s4707_s1 + $0x124] ss:$16 sps:$4 sm:$0xff]   ;;  %v3119_v8 = vld [vmem:[%s4707_s1 + $0x120] ss:$16 sps:$4 sm:$0xff]   ;;  %v3813_v17 = vpack.c.bf16 %v46_v60, %v46_v60 }
  0x1f   :  { %1655 = vmatpush1.bf16.msra.mxu0 %v3077_v30  ;;  %v3117_v7 = vld [vmem:[%s4707_s1 + $0x324] ss:$16 sps:$4 sm:$0xff]   ;;  %v3120_v9 = vld [vmem:[%s4707_s1 + $0x320] ss:$16 sps:$4 sm:$0xff]  }
  0x20   :  { %1696 = vmatpush1.bf16.msra.mxu1 %v3078_v31  ;;  %1656 = vmatprep.subr.bf16.mxu0 %v3079_v32  ;;  %v3771_v3 = vpack.c.bf16 %v48_v63, %v48_v63  ;;  %v3121_v10 = vld [vmem:[%s4707_s1 + $0x104] ss:$16 sps:$4 sm:$0xff]   ;;  %v3125_v12 = vld [vmem:[%s4707_s1 + $0x100] ss:$16 sps:$4 sm:$0xff]  }
  0x21   :  { %1697 = vmatprep.subr.bf16.mxu1 %v3081_v33  ;;  %1672 = vmatprep.mubr.bf16.mxu0 %v3760_v62  ;;  %v3123_v11 = vld [vmem:[%s4707_s1 + $0x304] ss:$16 sps:$4 sm:$0xff]   ;;  %v3126_v13 = vld [vmem:[%s4707_s1 + $0x300] ss:$16 sps:$4 sm:$0xff]  }
  0x22   :  { %1713 = vmatprep.mubr.bf16.mxu1 %v3771_v3  ;;  %v3130_v14 = vld [vmem:[%s4707_s1 + $0x4e4] ss:$16 sps:$4 sm:$0xff]   ;;  %v3128_v18 = vld [vmem:[%s4707_s1 + $0x4e0] ss:$16 sps:$4 sm:$0xff]  }
  0x23   :  { %1657 = vmatpush2.bf16.msra.mxu0 %v3083_v34  ;;  %v3133_v15 = vld [vmem:[%s4707_s1 + $0x6e4] ss:$16 sps:$4 sm:$0xff]   ;;  %v3131_v19 = vld [vmem:[%s4707_s1 + $0x6e0] ss:$16 sps:$4 sm:$0xff]  }
  0x24   :  { %1698 = vmatpush2.bf16.msra.mxu1 %v3084_v35  ;;  %1658 = vmatprep.subr.bf16.mxu0 %v3085_v39  ;;  %v3136_v20 = vld [vmem:[%s4707_s1 + $0x4c4] ss:$16 sps:$4 sm:$0xff]   ;;  %v3134_v22 = vld [vmem:[%s4707_s1 + $0x4c0] ss:$16 sps:$4 sm:$0xff]  }
  0x25   :  { %1699 = vmatprep.subr.bf16.mxu1 %v3087_v40  ;;  %v3139_v21 = vld [vmem:[%s4707_s1 + $0x6c4] ss:$16 sps:$4 sm:$0xff]   ;;  %v3137_v23 = vld [vmem:[%s4707_s1 + $0x6c0] ss:$16 sps:$4 sm:$0xff]  }
  0x26   :  { %v3142_v24 = vld [vmem:[%s4707_s1 + $0x4a4] ss:$16 sps:$4 sm:$0xff]   ;;  %v3140_v26 = vld [vmem:[%s4707_s1 + $0x4a0] ss:$16 sps:$4 sm:$0xff]  }
  0x27   :  { %1659 = vmatpush2.bf16.msra.mxu0 %v3089_v41  ;;  %v3145_v25 = vld [vmem:[%s4707_s1 + $0x6a4] ss:$16 sps:$4 sm:$0xff]   ;;  %v3143_v27 = vld [vmem:[%s4707_s1 + $0x6a0] ss:$16 sps:$4 sm:$0xff]  }
  0x28   :  { %1700 = vmatpush2.bf16.msra.mxu1 %v3090_v44  ;;  %1660 = vmatprep.subr.bf16.mxu0 %v3091_v45  ;;  %v3148_v28 = vld [vmem:[%s4707_s1 + $0x484] ss:$16 sps:$4 sm:$0xff]   ;;  %v3146_v30 = vld [vmem:[%s4707_s1 + $0x480] ss:$16 sps:$4 sm:$0xff]   ;;  %v3893_v44 = vrot.slane %v29_v42, %v3732_v49  ;;  %v49_v45 = vcombine.high %v29_v42, %v29_v42  ;;  %v3240_v42 = vld [vmem:[%s4707_s1 + $0x2a8] ss:$16 sps:$4 sm:$0xff]  }
  0x29   :  { %1701 = vmatprep.subr.bf16.mxu1 %v3093_v46  ;;  %v3151_v29 = vld [vmem:[%s4707_s1 + $0x684] ss:$16 sps:$4 sm:$0xff]   ;;  %v3149_v31 = vld [vmem:[%s4707_s1 + $0x680] ss:$16 sps:$4 sm:$0xff]  }
  0x2a   :  { %v3154_v32 = vld [vmem:[%s4707_s1 + $0x464] ss:$16 sps:$4 sm:$0xff]   ;;  %v3152_v34 = vld [vmem:[%s4707_s1 + $0x460] ss:$16 sps:$4 sm:$0xff]  }
  0x2b   :  { %1661 = vmatpush2.bf16.msra.mxu0 %v3095_v47  ;;  %v3157_v33 = vld [vmem:[%s4707_s1 + $0x664] ss:$16 sps:$4 sm:$0xff]   ;;  %v3155_v35 = vld [vmem:[%s4707_s1 + $0x660] ss:$16 sps:$4 sm:$0xff]  }
  0x2c   :  { %1702 = vmatpush2.bf16.msra.mxu1 %v3096_v48  ;;  %1662 = vmatprep.subr.bf16.mxu0 %v3097_v50  ;;  %v3160_v36 = vld [vmem:[%s4707_s1 + $0x444] ss:$16 sps:$4 sm:$0xff]   ;;  %v3158_v38 = vld [vmem:[%s4707_s1 + $0x440] ss:$16 sps:$4 sm:$0xff]   ;;  %v64_v48 = vcombine.high %v3893_v44, %v3893_v44  ;;  %v3904_v50 = vrot.slane %v49_v45, %v3732_v49  ;;  %v3246_v45 = vld [vmem:[%s4707_s1 + $0x288] ss:$16 sps:$4 sm:$0xff]  }
  0x2d   :  { %1703 = vmatprep.subr.bf16.mxu1 %v3099_v51  ;;  %v3163_v37 = vld [vmem:[%s4707_s1 + $0x644] ss:$16 sps:$4 sm:$0xff]   ;;  %v3161_v39 = vld [vmem:[%s4707_s1 + $0x640] ss:$16 sps:$4 sm:$0xff]  }
  0x2e   :  { %v3166_v40 = vld [vmem:[%s4707_s1 + $0x424] ss:$16 sps:$4 sm:$0xff]   ;;  %v3164_v46 = vld [vmem:[%s4707_s1 + $0x420] ss:$16 sps:$4 sm:$0xff]   ;;  %v65_v54 = vcombine.high %v3904_v50, %v3904_v50 }
  0x2f   :  { %1663 = vmatpush2.bf16.msra.mxu0 %v3101_v53  ;;  %v3169_v41 = vld [vmem:[%s4707_s1 + $0x624] ss:$16 sps:$4 sm:$0xff]   ;;  %v3167_v47 = vld [vmem:[%s4707_s1 + $0x620] ss:$16 sps:$4 sm:$0xff]   ;;  %v3912_v53 = vpack.c.bf16 %v64_v48, %v64_v48  ;;  %v3249_v48 = vld [vmem:[%s4707_s1 + $0x68] ss:$16 sps:$4 sm:$0xff]  }
  0x30   :  { %1704 = vmatpush2.bf16.msra.mxu1 %v3102_v56  ;;  %1664 = vmatprep.subr.bf16.mxu0 %v3103_v57  ;;  %v3172_v51 = vld [vmem:[%s4707_s1 + $0x404] ss:$16 sps:$4 sm:$0xff]   ;;  %v3170_v49 = vld [vmem:[%s4707_s1 + $0x400] ss:$16 sps:$4 sm:$0xff]   ;;  %v3922_v56 = vpack.c.bf16 %v65_v54, %v65_v54  ;;  %v3255_v54 = vld [vmem:[%s4707_s1 + $0x48] ss:$16 sps:$4 sm:$0xff]  }
  0x31   :  { %1705 = vmatprep.subr.bf16.mxu1 %v3105_v58  ;;  %v3175_v52 = vld [vmem:[%s4707_s1 + $0x604] ss:$16 sps:$4 sm:$0xff]   ;;  %v3173_v55 = vld [vmem:[%s4707_s1 + $0x600] ss:$16 sps:$4 sm:$0xff]  }
  0x32   :  { %v3178_v57 = vld [vmem:[%s4707_s1 + $0x5e4] ss:$16 sps:$4 sm:$0xff]   ;;  %v3176_v59 = vld [vmem:[%s4707_s1 + $0x5e0] ss:$16 sps:$4 sm:$0xff]  }
  0x33   :  { %1665 = vmatpush2.bf16.msra.mxu0 %v3107_v61  ;;  %v3181_v58 = vld [vmem:[%s4707_s1 + $0x7e4] ss:$16 sps:$4 sm:$0xff]   ;;  %v3179_v60 = vld [vmem:[%s4707_s1 + $0x7e0] ss:$16 sps:$4 sm:$0xff]  }
  0x34   :  { %1706 = vmatpush2.bf16.msra.mxu1 %v3108_v0  ;;  %1666 = vmatprep.subr.bf16.mxu0 %v3109_v1  ;;  %v3184_v61 = vld [vmem:[%s4707_s1 + $0x5c4] ss:$16 sps:$4 sm:$0xff]   ;;  %v3182_v0 = vld [vmem:[%s4707_s1 + $0x5c0] ss:$16 sps:$4 sm:$0xff]  }
  0x35   :  { %1707 = vmatprep.subr.bf16.mxu1 %v3111_v2  ;;  %v3187_v63 = vld [vmem:[%s4707_s1 + $0x7c4] ss:$16 sps:$4 sm:$0xff]   ;;  %v3185_v1 = vld [vmem:[%s4707_s1 + $0x7c0] ss:$16 sps:$4 sm:$0xff]  }
  0x36   :  { %v3190_v2 = vld [vmem:[%s4707_s1 + $0x5a4] ss:$16 sps:$4 sm:$0xff]  }
  0x37   :  { %1667 = vmatpush2.bf16.msra.mxu0 %v3113_v4  ;;  %v3193_v4 = vld [vmem:[%s4707_s1 + $0x7a4] ss:$16 sps:$4 sm:$0xff]  }
  0x38   :  { %1708 = vmatpush2.bf16.msra.mxu1 %v3114_v5  ;;  %1668 = vmatprep.subr.bf16.mxu0 %v3115_v6  ;;  %v3188_v5 = vld [vmem:[%s4707_s1 + $0x5a0] ss:$16 sps:$4 sm:$0xff]  }
  0x39   :  { %1709 = vmatprep.subr.bf16.mxu1 %v3117_v7  ;;  %v3191_v6 = vld [vmem:[%s4707_s1 + $0x7a0] ss:$16 sps:$4 sm:$0xff]   ;;  %v3196_v7 = vld [vmem:[%s4707_s1 + $0x584] ss:$16 sps:$4 sm:$0xff]  }
  0x3b   :  { %1669 = vmatpush2.bf16.msra.mxu0 %v3119_v8  ;;  %v3199_v8 = vld [vmem:[%s4707_s1 + $0x784] ss:$16 sps:$4 sm:$0xff]  }
  0x3c   :  { %1710 = vmatpush2.bf16.msra.mxu1 %v3120_v9  ;;  %1670 = vmatprep.subr.bf16.mxu0 %v3121_v10  ;;  %v3194_v9 = vld [vmem:[%s4707_s1 + $0x580] ss:$16 sps:$4 sm:$0xff]  }
  0x3d   :  { %1711 = vmatprep.subr.bf16.mxu1 %v3123_v11  ;;  %v3197_v10 = vld [vmem:[%s4707_s1 + $0x780] ss:$16 sps:$4 sm:$0xff]   ;;  %v3202_v11 = vld [vmem:[%s4707_s1 + $0x564] ss:$16 sps:$4 sm:$0xff]  }
  0x3f   :  { %1671 = vmatpush2.bf16.msra.mxu0 %v3125_v12  ;;  %v3205_v12 = vld [vmem:[%s4707_s1 + $0x764] ss:$16 sps:$4 sm:$0xff]  }
  0x40   :  { %1712 = vmatpush2.bf16.msra.mxu1 %v3126_v13  ;;  %1722 = vmatprep.subr.bf16.mxu0 %v3130_v14  ;;  %v3200_v13 = vld [vmem:[%s4707_s1 + $0x560] ss:$16 sps:$4 sm:$0xff]  }
  0x41   :  { %1763 = vmatprep.subr.bf16.mxu1 %v3133_v15  ;;  %v3203_v14 = vld [vmem:[%s4707_s1 + $0x760] ss:$16 sps:$4 sm:$0xff]   ;;  %v3208_v15 = vld [vmem:[%s4707_s1 + $0x544] ss:$16 sps:$4 sm:$0xff]  }
  0x42   :  { %1673 = vmatmul.mubr.bf16.vlgmr.msra.gmra.mxu0 %v3811_v16 }
  0x43   :  { %1714 = vmatmul.mubr.bf16.vlgmr.msra.gmra.mxu1 %v3813_v17  ;;  %1723 = vmatpush1.bf16.msra.mxu0 %v3128_v18  ;;  %v3211_v18 = vld [vmem:[%s4707_s1 + $0x744] ss:$16 sps:$4 sm:$0xff]  }
  0x44   :  { %1764 = vmatpush1.bf16.msra.mxu1 %v3131_v19  ;;  %1724 = vmatprep.subr.bf16.mxu0 %v3136_v20  ;;  %v3206_v19 = vld [vmem:[%s4707_s1 + $0x540] ss:$16 sps:$4 sm:$0xff]  }
  0x45   :  { %1765 = vmatprep.subr.bf16.mxu1 %v3139_v21  ;;  %1754 = vmatprep.mubr.bf16.mxu0 %v3912_v53  ;;  %v3209_v20 = vld [vmem:[%s4707_s1 + $0x740] ss:$16 sps:$4 sm:$0xff]   ;;  %v3214_v21 = vld [vmem:[%s4707_s1 + $0x524] ss:$16 sps:$4 sm:$0xff]  }
  0x46   :  { %1795 = vmatprep.mubr.bf16.mxu1 %v3922_v56 }
  0x47   :  { %1725 = vmatpush1.bf16.msra.mxu0 %v3134_v22  ;;  %v3217_v22 = vld [vmem:[%s4707_s1 + $0x724] ss:$16 sps:$4 sm:$0xff]  }
  0x48   :  { %1766 = vmatpush1.bf16.msra.mxu1 %v3137_v23  ;;  %1726 = vmatprep.subr.bf16.mxu0 %v3142_v24  ;;  %v3212_v23 = vld [vmem:[%s4707_s1 + $0x520] ss:$16 sps:$4 sm:$0xff]  }
  0x49   :  { %1767 = vmatprep.subr.bf16.mxu1 %v3145_v25  ;;  %v3215_v24 = vld [vmem:[%s4707_s1 + $0x720] ss:$16 sps:$4 sm:$0xff]   ;;  %v3220_v25 = vld [vmem:[%s4707_s1 + $0x504] ss:$16 sps:$4 sm:$0xff]  }
  0x4b   :  { %1727 = vmatpush1.bf16.msra.mxu0 %v3140_v26  ;;  %v3223_v26 = vld [vmem:[%s4707_s1 + $0x704] ss:$16 sps:$4 sm:$0xff]  }
  0x4c   :  { %1768 = vmatpush1.bf16.msra.mxu1 %v3143_v27  ;;  %1728 = vmatprep.subr.bf16.mxu0 %v3148_v28  ;;  %v3218_v27 = vld [vmem:[%s4707_s1 + $0x500] ss:$16 sps:$4 sm:$0xff]  }
  0x4d   :  { %1769 = vmatprep.subr.bf16.mxu1 %v3151_v29  ;;  %v3221_v28 = vld [vmem:[%s4707_s1 + $0x700] ss:$16 sps:$4 sm:$0xff]   ;;  %v3227_v29 = vld [vmem:[%s4707_s1 + $0xec] ss:$16 sps:$4 sm:$0xff]  }
  0x4f   :  { %1729 = vmatpush1.bf16.msra.mxu0 %v3146_v30  ;;  %v3230_v30 = vld [vmem:[%s4707_s1 + $0x2ec] ss:$16 sps:$4 sm:$0xff]  }
  0x50   :  { %1770 = vmatpush1.bf16.msra.mxu1 %v3149_v31  ;;  %1730 = vmatprep.subr.bf16.mxu0 %v3154_v32  ;;  %v4030_v31 = vpack.c.bf16 %v3893_v44, %v3893_v44  ;;  %v4034_v32 = vpack.c.bf16 %v3904_v50, %v3904_v50  ;;  %v3245_v44 = vld [vmem:[%s4707_s1 + $0x8c] ss:$16 sps:$4 sm:$0xff]   ;;  %v3252_v50 = vld [vmem:[%s4707_s1 + $0x268] ss:$16 sps:$4 sm:$0xff]  }
  0x51   :  { %1771 = vmatprep.subr.bf16.mxu1 %v3157_v33  ;;  %v3225_v33 = vld [vmem:[%s4707_s1 + $0xe8] ss:$16 sps:$4 sm:$0xff]  }
  0x53   :  { %1731 = vmatpush1.bf16.msra.mxu0 %v3152_v34  ;;  %v3228_v34 = vld [vmem:[%s4707_s1 + $0x2e8] ss:$16 sps:$4 sm:$0xff]  }
  0x54   :  { %1772 = vmatpush1.bf16.msra.mxu1 %v3155_v35  ;;  %1732 = vmatprep.subr.bf16.mxu0 %v3160_v36  ;;  %v3233_v35 = vld [vmem:[%s4707_s1 + $0xcc] ss:$16 sps:$4 sm:$0xff]  }
  0x55   :  { %1773 = vmatprep.subr.bf16.mxu1 %v3163_v37  ;;  %v3236_v36 = vld [vmem:[%s4707_s1 + $0x2cc] ss:$16 sps:$4 sm:$0xff]   ;;  %v3231_v37 = vld [vmem:[%s4707_s1 + $0xc8] ss:$16 sps:$4 sm:$0xff]  }
  0x57   :  { %1733 = vmatpush1.bf16.msra.mxu0 %v3158_v38  ;;  %v3234_v38 = vld [vmem:[%s4707_s1 + $0x2c8] ss:$16 sps:$4 sm:$0xff]  }
  0x58   :  { %1774 = vmatpush1.bf16.msra.mxu1 %v3161_v39  ;;  %1734 = vmatprep.subr.bf16.mxu0 %v3166_v40  ;;  %v3239_v39 = vld [vmem:[%s4707_s1 + $0xac] ss:$16 sps:$4 sm:$0xff]  }
  0x59   :  { %1775 = vmatprep.subr.bf16.mxu1 %v3169_v41  ;;  %v3242_v40 = vld [vmem:[%s4707_s1 + $0x2ac] ss:$16 sps:$4 sm:$0xff]   ;;  %v3237_v41 = vld [vmem:[%s4707_s1 + $0xa8] ss:$16 sps:$4 sm:$0xff]  }
  0x5b   :  { %1735 = vmatpush1.bf16.msra.mxu0 %v3164_v46  ;;  %v3251_v46 = vld [vmem:[%s4707_s1 + $0x6c] ss:$16 sps:$4 sm:$0xff]  }
  0x5c   :  { %1776 = vmatpush1.bf16.msra.mxu1 %v3167_v47  ;;  %1736 = vmatprep.subr.bf16.mxu0 %v3172_v51  ;;  %v3254_v47 = vld [vmem:[%s4707_s1 + $0x26c] ss:$16 sps:$4 sm:$0xff]  }
  0x5d   :  { %1777 = vmatprep.subr.bf16.mxu1 %v3175_v52  ;;  %v3257_v51 = vld [vmem:[%s4707_s1 + $0x4c] ss:$16 sps:$4 sm:$0xff]  }
  0x5e   :  { %v3260_v52 = vld [vmem:[%s4707_s1 + $0x24c] ss:$16 sps:$4 sm:$0xff]  }
  0x5f   :  { %1737 = vmatpush1.bf16.msra.mxu0 %v3170_v49  ;;  %v3258_v49 = vld [vmem:[%s4707_s1 + $0x248] ss:$16 sps:$4 sm:$0xff]  }
  0x60   :  { %1778 = vmatpush1.bf16.msra.mxu1 %v3173_v55  ;;  %1738 = vmatprep.subr.bf16.mxu0 %v3178_v57  ;;  %v3263_v55 = vld [vmem:[%s4707_s1 + $0x2c] ss:$16 sps:$4 sm:$0xff]  }
  0x61   :  { %1779 = vmatprep.subr.bf16.mxu1 %v3181_v58  ;;  %v3266_v57 = vld [vmem:[%s4707_s1 + $0x22c] ss:$16 sps:$4 sm:$0xff]   ;;  %v3261_v58 = vld [vmem:[%s4707_s1 + $0x28] ss:$16 sps:$4 sm:$0xff]  }
  0x63   :  { %1739 = vmatpush2.bf16.msra.mxu0 %v3176_v59  ;;  %v3264_v59 = vld [vmem:[%s4707_s1 + $0x228] ss:$16 sps:$4 sm:$0xff]  }
  0x64   :  { %1780 = vmatpush2.bf16.msra.mxu1 %v3179_v60  ;;  %1740 = vmatprep.subr.bf16.mxu0 %v3184_v61  ;;  %v3269_v60 = vld [vmem:[%s4707_s1 + $0xc] ss:$16 sps:$4 sm:$0xff]  }
  0x65   :  { %1781 = vmatprep.subr.bf16.mxu1 %v3187_v63  ;;  %v3272_v61 = vld [vmem:[%s4707_s1 + $0x20c] ss:$16 sps:$4 sm:$0xff]   ;;  %v3267_v63 = vld [vmem:[%s4707_s1 + $0x8] ss:$16 sps:$4 sm:$0xff]  }
  0x67   :  { %1741 = vmatpush2.bf16.msra.mxu0 %v3182_v0  ;;  %v3270_v0 = vld [vmem:[%s4707_s1 + $0x208] ss:$16 sps:$4 sm:$0xff]  }
  0x68   :  { %1782 = vmatpush2.bf16.msra.mxu1 %v3185_v1  ;;  %1742 = vmatprep.subr.bf16.mxu0 %v3190_v2  ;;  %v3275_v1 = vld [vmem:[%s4707_s1 + $0x1ec] ss:$16 sps:$4 sm:$0xff]  }
  0x69   :  { %1783 = vmatprep.subr.bf16.mxu1 %v3193_v4  ;;  %v3278_v2 = vld [vmem:[%s4707_s1 + $0x3ec] ss:$16 sps:$4 sm:$0xff]   ;;  %v3273_v4 = vld [vmem:[%s4707_s1 + $0x1e8] ss:$16 sps:$4 sm:$0xff]  }
  0x6b   :  { %1743 = vmatpush2.bf16.msra.mxu0 %v3188_v5  ;;  %v3276_v5 = vld [vmem:[%s4707_s1 + $0x3e8] ss:$16 sps:$4 sm:$0xff]  }
  0x6c   :  { %1784 = vmatpush2.bf16.msra.mxu1 %v3191_v6  ;;  %1744 = vmatprep.subr.bf16.mxu0 %v3196_v7  ;;  %v3281_v6 = vld [vmem:[%s4707_s1 + $0x1cc] ss:$16 sps:$4 sm:$0xff]  }
  0x6d   :  { %1785 = vmatprep.subr.bf16.mxu1 %v3199_v8  ;;  %v3284_v7 = vld [vmem:[%s4707_s1 + $0x3cc] ss:$16 sps:$4 sm:$0xff]   ;;  %v3279_v8 = vld [vmem:[%s4707_s1 + $0x1c8] ss:$16 sps:$4 sm:$0xff]  }
  0x6f   :  { %1745 = vmatpush2.bf16.msra.mxu0 %v3194_v9  ;;  %v3282_v9 = vld [vmem:[%s4707_s1 + $0x3c8] ss:$16 sps:$4 sm:$0xff]  }
  0x70   :  { %1786 = vmatpush2.bf16.msra.mxu1 %v3197_v10  ;;  %1746 = vmatprep.subr.bf16.mxu0 %v3202_v11  ;;  %v3287_v10 = vld [vmem:[%s4707_s1 + $0x1ac] ss:$16 sps:$4 sm:$0xff]  }
  0x71   :  { %1787 = vmatprep.subr.bf16.mxu1 %v3205_v12  ;;  %v3290_v11 = vld [vmem:[%s4707_s1 + $0x3ac] ss:$16 sps:$4 sm:$0xff]   ;;  %v3285_v12 = vld [vmem:[%s4707_s1 + $0x1a8] ss:$16 sps:$4 sm:$0xff]  }
  0x73   :  { %1747 = vmatpush2.bf16.msra.mxu0 %v3200_v13  ;;  %v3288_v13 = vld [vmem:[%s4707_s1 + $0x3a8] ss:$16 sps:$4 sm:$0xff]  }
  0x74   :  { %1788 = vmatpush2.bf16.msra.mxu1 %v3203_v14  ;;  %1748 = vmatprep.subr.bf16.mxu0 %v3208_v15  ;;  %v3293_v14 = vld [vmem:[%s4707_s1 + $0x18c] ss:$16 sps:$4 sm:$0xff]  }
  0x75   :  { %1789 = vmatprep.subr.bf16.mxu1 %v3211_v18  ;;  %v3296_v15 = vld [vmem:[%s4707_s1 + $0x38c] ss:$16 sps:$4 sm:$0xff]   ;;  %v3291_v18 = vld [vmem:[%s4707_s1 + $0x188] ss:$16 sps:$4 sm:$0xff]  }
  0x77   :  { %1749 = vmatpush2.bf16.msra.mxu0 %v3206_v19  ;;  %v3294_v19 = vld [vmem:[%s4707_s1 + $0x388] ss:$16 sps:$4 sm:$0xff]  }
  0x78   :  { %1790 = vmatpush2.bf16.msra.mxu1 %v3209_v20  ;;  %1750 = vmatprep.subr.bf16.mxu0 %v3214_v21  ;;  %v3299_v20 = vld [vmem:[%s4707_s1 + $0x16c] ss:$16 sps:$4 sm:$0xff]  }
  0x79   :  { %1791 = vmatprep.subr.bf16.mxu1 %v3217_v22  ;;  %v3302_v21 = vld [vmem:[%s4707_s1 + $0x36c] ss:$16 sps:$4 sm:$0xff]   ;;  %v3297_v22 = vld [vmem:[%s4707_s1 + $0x168] ss:$16 sps:$4 sm:$0xff]  }
  0x7b   :  { %1751 = vmatpush2.bf16.msra.mxu0 %v3212_v23  ;;  %v3300_v23 = vld [vmem:[%s4707_s1 + $0x368] ss:$16 sps:$4 sm:$0xff]  }
  0x7c   :  { %1792 = vmatpush2.bf16.msra.mxu1 %v3215_v24  ;;  %1752 = vmatprep.subr.bf16.mxu0 %v3220_v25  ;;  %v3305_v24 = vld [vmem:[%s4707_s1 + $0x14c] ss:$16 sps:$4 sm:$0xff]  }
  0x7d   :  { %1793 = vmatprep.subr.bf16.mxu1 %v3223_v26  ;;  %v3308_v25 = vld [vmem:[%s4707_s1 + $0x34c] ss:$16 sps:$4 sm:$0xff]   ;;  %v3303_v26 = vld [vmem:[%s4707_s1 + $0x148] ss:$16 sps:$4 sm:$0xff]  }
  0x7f   :  { %1753 = vmatpush2.bf16.msra.mxu0 %v3218_v27  ;;  %v3306_v27 = vld [vmem:[%s4707_s1 + $0x348] ss:$16 sps:$4 sm:$0xff]  }
  0x80   :  { %1794 = vmatpush2.bf16.msra.mxu1 %v3221_v28  ;;  %1804 = vmatprep.subr.bf16.mxu0 %v3227_v29  ;;  %v3311_v28 = vld [vmem:[%s4707_s1 + $0x12c] ss:$16 sps:$4 sm:$0xff]  }
  0x81   :  { %1845 = vmatprep.subr.bf16.mxu1 %v3230_v30  ;;  %v3314_v29 = vld [vmem:[%s4707_s1 + $0x32c] ss:$16 sps:$4 sm:$0xff]   ;;  %v3309_v30 = vld [vmem:[%s4707_s1 + $0x128] ss:$16 sps:$4 sm:$0xff]  }
  0x82   :  { %1755 = vmatmul.mubr.bf16.vlgmr.msra.gmra.mxu0 %v4030_v31 }
  0x83   :  { %1796 = vmatmul.mubr.bf16.vlgmr.msra.gmra.mxu1 %v4034_v32  ;;  %1805 = vmatpush1.bf16.msra.mxu0 %v3225_v33  ;;  %v3312_v33 = vld [vmem:[%s4707_s1 + $0x328] ss:$16 sps:$4 sm:$0xff]  }
  0x84   :  { %1846 = vmatpush1.bf16.msra.mxu1 %v3228_v34  ;;  %1806 = vmatprep.subr.bf16.mxu0 %v3233_v35  ;;  %v3317_v34 = vld [vmem:[%s4707_s1 + $0x10c] ss:$16 sps:$4 sm:$0xff]  }
  0x85   :  { %1847 = vmatprep.subr.bf16.mxu1 %v3236_v36  ;;  %1836 = vmatprep.mubr.bf16.mxu0 %v3760_v62  ;;  %v3248_v62 = vld [vmem:[%s4707_s1 + $0x28c] ss:$16 sps:$4 sm:$0xff]   ;;  %v3315_v36 = vld [vmem:[%s4707_s1 + $0x108] ss:$16 sps:$4 sm:$0xff]  }
  0x86   :  { %1877 = vmatprep.mubr.bf16.mxu1 %v3771_v3  ;;  %v3243_v3 = vld [vmem:[%s4707_s1 + $0x88] ss:$16 sps:$4 sm:$0xff]   ;;  %v3320_v35 = vld [vmem:[%s4707_s1 + $0x30c] ss:$16 sps:$4 sm:$0xff]  }
  0x87   :  { %1807 = vmatpush1.bf16.msra.mxu0 %v3231_v37  ;;  %v3318_v37 = vld [vmem:[%s4707_s1 + $0x308] ss:$16 sps:$4 sm:$0xff]  }
  0x88   :  { %1848 = vmatpush1.bf16.msra.mxu1 %v3234_v38  ;;  %1808 = vmatprep.subr.bf16.mxu0 %v3239_v39  ;;  %v3323_v38 = vld [vmem:[%s4707_s1 + $0x4ec] ss:$16 sps:$4 sm:$0xff]  }
  0x89   :  { %1849 = vmatprep.subr.bf16.mxu1 %v3242_v40  ;;  %v3326_v39 = vld [vmem:[%s4707_s1 + $0x6ec] ss:$16 sps:$4 sm:$0xff]   ;;  %v3321_v40 = vld [vmem:[%s4707_s1 + $0x4e8] ss:$16 sps:$4 sm:$0xff]  }
  0x8b   :  { %1809 = vmatpush1.bf16.msra.mxu0 %v3237_v41  ;;  %v3324_v41 = vld [vmem:[%s4707_s1 + $0x6e8] ss:$16 sps:$4 sm:$0xff]  }
  0x8c   :  { %1850 = vmatpush1.bf16.msra.mxu1 %v3240_v42  ;;  %1810 = vmatprep.subr.bf16.mxu0 %v3245_v44  ;;  %v3329_v42 = vld [vmem:[%s4707_s1 + $0x4cc] ss:$16 sps:$4 sm:$0xff]  }
  0x8d   :  { %1851 = vmatprep.subr.bf16.mxu1 %v3248_v62  ;;  %v3332_v44 = vld [vmem:[%s4707_s1 + $0x6cc] ss:$16 sps:$4 sm:$0xff]   ;;  %v3327_v62 = vld [vmem:[%s4707_s1 + $0x4c8] ss:$16 sps:$4 sm:$0xff]  }
  0x8f   :  { %1811 = vmatpush1.bf16.msra.mxu0 %v3243_v3  ;;  %v3330_v3 = vld [vmem:[%s4707_s1 + $0x6c8] ss:$16 sps:$4 sm:$0xff]  }
  0x90   :  { %1852 = vmatpush1.bf16.msra.mxu1 %v3246_v45  ;;  %1812 = vmatprep.subr.bf16.mxu0 %v3251_v46  ;;  %v3335_v45 = vld [vmem:[%s4707_s1 + $0x4ac] ss:$16 sps:$4 sm:$0xff]  }
  0x91   :  { %1853 = vmatprep.subr.bf16.mxu1 %v3254_v47  ;;  %v3338_v46 = vld [vmem:[%s4707_s1 + $0x6ac] ss:$16 sps:$4 sm:$0xff]   ;;  %v3333_v47 = vld [vmem:[%s4707_s1 + $0x4a8] ss:$16 sps:$4 sm:$0xff]  }
  0x93   :  { %1813 = vmatpush1.bf16.msra.mxu0 %v3249_v48  ;;  %v3344_v48 = vld [vmem:[%s4707_s1 + $0x68c] ss:$16 sps:$4 sm:$0xff]  }
  0x94   :  { %1854 = vmatpush1.bf16.msra.mxu1 %v3252_v50  ;;  %1814 = vmatprep.subr.bf16.mxu0 %v3257_v51  ;;  %v3339_v50 = vld [vmem:[%s4707_s1 + $0x488] ss:$16 sps:$4 sm:$0xff]   ;;  %v3350_v51 = vld [vmem:[%s4707_s1 + $0x66c] ss:$16 sps:$4 sm:$0xff]  }
  0x95   :  { %1855 = vmatprep.subr.bf16.mxu1 %v3260_v52  ;;  %v3345_v52 = vld [vmem:[%s4707_s1 + $0x468] ss:$16 sps:$4 sm:$0xff]  }
  0x97   :  { %1815 = vmatpush1.bf16.msra.mxu0 %v3255_v54  ;;  %v3348_v54 = vld [vmem:[%s4707_s1 + $0x668] ss:$16 sps:$4 sm:$0xff]  }
  0x98   :  { %1856 = vmatpush1.bf16.msra.mxu1 %v3258_v49  ;;  %1816 = vmatprep.subr.bf16.mxu0 %v3263_v55  ;;  %v3353_v49 = vld [vmem:[%s4707_s1 + $0x44c] ss:$16 sps:$4 sm:$0xff]  }
  0x99   :  { %1857 = vmatprep.subr.bf16.mxu1 %v3266_v57  ;;  %v3356_v55 = vld [vmem:[%s4707_s1 + $0x64c] ss:$16 sps:$4 sm:$0xff]   ;;  %v3351_v57 = vld [vmem:[%s4707_s1 + $0x448] ss:$16 sps:$4 sm:$0xff]  }
  0x9b   :  { %1817 = vmatpush1.bf16.msra.mxu0 %v3261_v58  ;;  %v3354_v58 = vld [vmem:[%s4707_s1 + $0x648] ss:$16 sps:$4 sm:$0xff]  }
  0x9c   :  { %1858 = vmatpush1.bf16.msra.mxu1 %v3264_v59  ;;  %1818 = vmatprep.subr.bf16.mxu0 %v3269_v60  ;;  %v3359_v59 = vld [vmem:[%s4707_s1 + $0x42c] ss:$16 sps:$4 sm:$0xff]  }
  0x9d   :  { %1859 = vmatprep.subr.bf16.mxu1 %v3272_v61  ;;  %v3362_v60 = vld [vmem:[%s4707_s1 + $0x62c] ss:$16 sps:$4 sm:$0xff]  }
  0x9f   :  { %1819 = vmatpush1.bf16.msra.mxu0 %v3267_v63 }
  0xa0   :  { %1860 = vmatpush1.bf16.msra.mxu1 %v3270_v0  ;;  %1820 = vmatprep.subr.bf16.mxu0 %v3275_v1 }
  0xa1   :  { %1861 = vmatprep.subr.bf16.mxu1 %v3278_v2 }
  0xa3   :  { %1821 = vmatpush2.bf16.msra.mxu0 %v3273_v4 }
  0xa4   :  { %1862 = vmatpush2.bf16.msra.mxu1 %v3276_v5  ;;  %1822 = vmatprep.subr.bf16.mxu0 %v3281_v6 }
  0xa5   :  { %1863 = vmatprep.subr.bf16.mxu1 %v3284_v7 }
  0xa7   :  { %1823 = vmatpush2.bf16.msra.mxu0 %v3279_v8 }
  0xa8   :  { %1864 = vmatpush2.bf16.msra.mxu1 %v3282_v9  ;;  %1824 = vmatprep.subr.bf16.mxu0 %v3287_v10 }
  0xa9   :  { %1865 = vmatprep.subr.bf16.mxu1 %v3290_v11 }
  0xab   :  { %1825 = vmatpush2.bf16.msra.mxu0 %v3285_v12 }
  0xac   :  { %1866 = vmatpush2.bf16.msra.mxu1 %v3288_v13  ;;  %1826 = vmatprep.subr.bf16.mxu0 %v3293_v14 }
  0xad   :  { %1867 = vmatprep.subr.bf16.mxu1 %v3296_v15 }
  0xaf   :  { %1827 = vmatpush2.bf16.msra.mxu0 %v3291_v18 }
  0xb0   :  { %1868 = vmatpush2.bf16.msra.mxu1 %v3294_v19  ;;  %1828 = vmatprep.subr.bf16.mxu0 %v3299_v20 }
  0xb1   :  { %1869 = vmatprep.subr.bf16.mxu1 %v3302_v21 }
  0xb3   :  { %1829 = vmatpush2.bf16.msra.mxu0 %v3297_v22 }
  0xb4   :  { %1870 = vmatpush2.bf16.msra.mxu1 %v3300_v23  ;;  %1830 = vmatprep.subr.bf16.mxu0 %v3305_v24 }
  0xb5   :  { %1871 = vmatprep.subr.bf16.mxu1 %v3308_v25 }
  0xb7   :  { %1831 = vmatpush2.bf16.msra.mxu0 %v3303_v26 }
  0xb8   :  { %1872 = vmatpush2.bf16.msra.mxu1 %v3306_v27  ;;  %1832 = vmatprep.subr.bf16.mxu0 %v3311_v28 }
  0xb9   :  { %1873 = vmatprep.subr.bf16.mxu1 %v3314_v29 }
  0xbb   :  { %1833 = vmatpush2.bf16.msra.mxu0 %v3309_v30 }
  0xbc   :  { %1874 = vmatpush2.bf16.msra.mxu1 %v3312_v33  ;;  %1834 = vmatprep.subr.bf16.mxu0 %v3317_v34 }
  0xbd   :  { %1875 = vmatprep.subr.bf16.mxu1 %v3320_v35 }
  0xbf   :  { %1835 = vmatpush2.bf16.msra.mxu0 %v3315_v36 }
  0xc0   :  { %1876 = vmatpush2.bf16.msra.mxu1 %v3318_v37  ;;  %1886 = vmatprep.subr.bf16.mxu0 %v3323_v38 }
  0xc1   :  { %1927 = vmatprep.subr.bf16.mxu1 %v3326_v39 }
  0xc2   :  { %1837 = vmatmul.mubr.bf16.vlgmr.msra.gmra.mxu0 %v3811_v16  ;;  %v3336_v16 = vld [vmem:[%s4707_s1 + $0x6a8] ss:$16 sps:$4 sm:$0xff]  }
  0xc3   :  { %1878 = vmatmul.mubr.bf16.vlgmr.msra.gmra.mxu1 %v3813_v17  ;;  %1887 = vmatpush1.bf16.msra.mxu0 %v3321_v40  ;;  %v3341_v17 = vld [vmem:[%s4707_s1 + $0x48c] ss:$16 sps:$4 sm:$0xff]  }
  0xc4   :  { %1928 = vmatpush1.bf16.msra.mxu1 %v3324_v41  ;;  %1888 = vmatprep.subr.bf16.mxu0 %v3329_v42 }
  0xc5   :  { %1929 = vmatprep.subr.bf16.mxu1 %v3332_v44  ;;  %1918 = vmatprep.mubr.bf16.mxu0 %v3912_v53  ;;  %v3342_v53 = vld [vmem:[%s4707_s1 + $0x688] ss:$16 sps:$4 sm:$0xff]  }
  0xc6   :  { %1959 = vmatprep.mubr.bf16.mxu1 %v3922_v56  ;;  %v3347_v56 = vld [vmem:[%s4707_s1 + $0x46c] ss:$16 sps:$4 sm:$0xff]  }
  0xc7   :  { %1889 = vmatpush1.bf16.msra.mxu0 %v3327_v62 }
  0xc8   :  { %1930 = vmatpush1.bf16.msra.mxu1 %v3330_v3  ;;  %1890 = vmatprep.subr.bf16.mxu0 %v3335_v45 }
  0xc9   :  { %1931 = vmatprep.subr.bf16.mxu1 %v3338_v46 }
  0xcb   :  { %1891 = vmatpush1.bf16.msra.mxu0 %v3333_v47 }
  0xcc   :  { %1932 = vmatpush1.bf16.msra.mxu1 %v3336_v16  ;;  %1892 = vmatprep.subr.bf16.mxu0 %v3341_v17 }
  0xcd   :  { %1933 = vmatprep.subr.bf16.mxu1 %v3344_v48 }
  0xcf   :  { %1893 = vmatpush1.bf16.msra.mxu0 %v3339_v50 }
  0xd0   :  { %1934 = vmatpush1.bf16.msra.mxu1 %v3342_v53  ;;  %1894 = vmatprep.subr.bf16.mxu0 %v3347_v56 }
  0xd1   :  { %1935 = vmatprep.subr.bf16.mxu1 %v3350_v51 }
  0xd3   :  { %1895 = vmatpush1.bf16.msra.mxu0 %v3345_v52 }
  0xd4   :  { %1936 = vmatpush1.bf16.msra.mxu1 %v3348_v54  ;;  %1896 = vmatprep.subr.bf16.mxu0 %v3353_v49 }
  0xd5   :  { %1937 = vmatprep.subr.bf16.mxu1 %v3356_v55 }
  0xd6   :  { %12 = vsyncpa [#allocation3], 0  ;;  %v3357_v61 = vld [vmem:[%s4707_s1 + $0x428] ss:$16 sps:$4 sm:$0xff]   ;;  %v3365_v0 = vld [vmem:[%s4707_s1 + $0x40c] ss:$16 sps:$4 sm:$0xff]  }
  0xd7   :  { %1897 = vmatpush1.bf16.msra.mxu0 %v3351_v57  ;;  %v3360_v63 = vld [vmem:[%s4707_s1 + $0x628] ss:$16 sps:$4 sm:$0xff]   ;;  %v3368_v1 = vld [vmem:[%s4707_s1 + $0x60c] ss:$16 sps:$4 sm:$0xff]   ;;  %vm2633_vm0 = vcmask 1041408  }
  0xd8   :  { %1938 = vmatpush1.bf16.msra.mxu1 %v3354_v58  ;;  %1898 = vmatprep.subr.bf16.mxu0 %v3359_v59  ;;  %v3363_v2 = vld [vmem:[%s4707_s1 + $0x408] ss:$16 sps:$4 sm:$0xff]   ;;  %v3371_v5 = vld [vmem:[%s4707_s1 + $0x5ec] ss:$16 sps:$4 sm:$0xff]  }
  0xd9   :  { %1939 = vmatprep.subr.bf16.mxu1 %v3362_v60  ;;  %v3366_v4 = vld [vmem:[%s4707_s1 + $0x608] ss:$16 sps:$4 sm:$0xff]   ;;  %v3374_v6 = vld [vmem:[%s4707_s1 + $0x7ec] ss:$16 sps:$4 sm:$0xff]  }
  0xda   :  { %v3369_v7 = vld [vmem:[%s4707_s1 + $0x5e8] ss:$16 sps:$4 sm:$0xff]   ;;  %v3377_v9 = vld [vmem:[%s4707_s1 + $0x5cc] ss:$16 sps:$4 sm:$0xff]  }
  0xdb   :  { %1899 = vmatpush1.bf16.msra.mxu0 %v3357_v61  ;;  %v3372_v8 = vld [vmem:[%s4707_s1 + $0x7e8] ss:$16 sps:$4 sm:$0xff]   ;;  %v3380_v10 = vld [vmem:[%s4707_s1 + $0x7cc] ss:$16 sps:$4 sm:$0xff]  }
  0xdc   :  { %1940 = vmatpush1.bf16.msra.mxu1 %v3360_v63  ;;  %1900 = vmatprep.subr.bf16.mxu0 %v3365_v0  ;;  %v3375_v11 = vld [vmem:[%s4707_s1 + $0x5c8] ss:$16 sps:$4 sm:$0xff]   ;;  %v3383_v13 = vld [vmem:[%s4707_s1 + $0x5ac] ss:$16 sps:$4 sm:$0xff]  }
  0xdd   :  { %1941 = vmatprep.subr.bf16.mxu1 %v3368_v1  ;;  %v3378_v12 = vld [vmem:[%s4707_s1 + $0x7c8] ss:$16 sps:$4 sm:$0xff]   ;;  %v3386_v14 = vld [vmem:[%s4707_s1 + $0x7ac] ss:$16 sps:$4 sm:$0xff]  }
  0xde   :  { %v3381_v15 = vld [vmem:[%s4707_s1 + $0x5a8] ss:$16 sps:$4 sm:$0xff]   ;;  %v3389_v19 = vld [vmem:[%s4707_s1 + $0x58c] ss:$16 sps:$4 sm:$0xff]  }
  0xdf   :  { %1901 = vmatpush1.bf16.msra.mxu0 %v3363_v2  ;;  %v3384_v18 = vld [vmem:[%s4707_s1 + $0x7a8] ss:$16 sps:$4 sm:$0xff]   ;;  %v3392_v20 = vld [vmem:[%s4707_s1 + $0x78c] ss:$16 sps:$4 sm:$0xff]  }
  0xe0   :  { %1942 = vmatpush1.bf16.msra.mxu1 %v3366_v4  ;;  %1902 = vmatprep.subr.bf16.mxu0 %v3371_v5  ;;  %v3387_v21 = vld [vmem:[%s4707_s1 + $0x588] ss:$16 sps:$4 sm:$0xff]   ;;  %v3395_v23 = vld [vmem:[%s4707_s1 + $0x56c] ss:$16 sps:$4 sm:$0xff]  }
  0xe1   :  { %1943 = vmatprep.subr.bf16.mxu1 %v3374_v6  ;;  %v3390_v22 = vld [vmem:[%s4707_s1 + $0x788] ss:$16 sps:$4 sm:$0xff]   ;;  %v3398_v24 = vld [vmem:[%s4707_s1 + $0x76c] ss:$16 sps:$4 sm:$0xff]  }
  0xe2   :  { %v3393_v25 = vld [vmem:[%s4707_s1 + $0x568] ss:$16 sps:$4 sm:$0xff]   ;;  %v3401_v27 = vld [vmem:[%s4707_s1 + $0x54c] ss:$16 sps:$4 sm:$0xff]  }
  0xe3   :  { %1903 = vmatpush2.bf16.msra.mxu0 %v3369_v7  ;;  %v3396_v26 = vld [vmem:[%s4707_s1 + $0x768] ss:$16 sps:$4 sm:$0xff]   ;;  %v3404_v28 = vld [vmem:[%s4707_s1 + $0x74c] ss:$16 sps:$4 sm:$0xff]  }
  0xe4   :  { %1944 = vmatpush2.bf16.msra.mxu1 %v3372_v8  ;;  %1904 = vmatprep.subr.bf16.mxu0 %v3377_v9  ;;  %v3399_v29 = vld [vmem:[%s4707_s1 + $0x548] ss:$16 sps:$4 sm:$0xff]   ;;  %v3407_v33 = vld [vmem:[%s4707_s1 + $0x52c] ss:$16 sps:$4 sm:$0xff]  }
  0xe5   :  { %1945 = vmatprep.subr.bf16.mxu1 %v3380_v10  ;;  %v3402_v30 = vld [vmem:[%s4707_s1 + $0x748] ss:$16 sps:$4 sm:$0xff]   ;;  %v3410_v34 = vld [vmem:[%s4707_s1 + $0x72c] ss:$16 sps:$4 sm:$0xff]  }
  0xe6   :  { %v3405_v35 = vld [vmem:[%s4707_s1 + $0x528] ss:$16 sps:$4 sm:$0xff]   ;;  %v3413_v37 = vld [vmem:[%s4707_s1 + $0x50c] ss:$16 sps:$4 sm:$0xff]  }
  0xe7   :  { %1905 = vmatpush2.bf16.msra.mxu0 %v3375_v11  ;;  %v3408_v36 = vld [vmem:[%s4707_s1 + $0x728] ss:$16 sps:$4 sm:$0xff]   ;;  %v3416_v38 = vld [vmem:[%s4707_s1 + $0x70c] ss:$16 sps:$4 sm:$0xff]  }
  0xe8   :  { %1946 = vmatpush2.bf16.msra.mxu1 %v3378_v12  ;;  %1906 = vmatprep.subr.bf16.mxu0 %v3383_v13  ;;  %v3411_v39 = vld [vmem:[%s4707_s1 + $0x508] ss:$16 sps:$4 sm:$0xff]   ;;  %v3419_v41 = vld [vmem:[%s4709_s3 + $0x74] ss:$8 sps:$4 sm:$0xff]   ;;  %v3422_v44 = vld [vmem:[%s4709_s3 + $0x64] ss:$8 sps:$4 sm:$0xff]  }
  0xe9   :  { %1947 = vmatprep.subr.bf16.mxu1 %v3386_v14  ;;  %v3414_v40 = vld [vmem:[%s4707_s1 + $0x708] ss:$16 sps:$4 sm:$0xff]   ;;  %v3425_v16 = vld [vmem:[%s4709_s3 + $0x54] ss:$8 sps:$4 sm:$0xff]   ;;  %v3428_v53 = vld [vmem:[%s4709_s3 + $0x44] ss:$8 sps:$4 sm:$0xff]  }
  0xea   :  { %v3417_v42 = vld [vmem:[%s4709_s3 + $0x70] ss:$8 sps:$4 sm:$0xff]   ;;  %v3420_v45 = vld [vmem:[%s4709_s3 + $0x60] ss:$8 sps:$4 sm:$0xff]   ;;  %v3467_v51 = vld [vmem:[%s4709_s3 + $0x174] ss:$8 sps:$4 sm:$0xff]  }
  0xeb   :  { %1907 = vmatpush2.bf16.msra.mxu0 %v3381_v15  ;;  %v3465_v56 = vld [vmem:[%s4709_s3 + $0x170] ss:$8 sps:$4 sm:$0xff]   ;;  %v3470_v52 = vld [vmem:[%s4709_s3 + $0x164] ss:$8 sps:$4 sm:$0xff]   ;;  %v3426_v54 = vld [vmem:[%s4709_s3 + $0x40] ss:$8 sps:$4 sm:$0xff]  }
  0xec   :  { %1948 = vmatpush2.bf16.msra.mxu1 %v3384_v18  ;;  %1908 = vmatprep.subr.bf16.mxu0 %v3389_v19  ;;  %v3468_v49 = vld [vmem:[%s4709_s3 + $0x160] ss:$8 sps:$4 sm:$0xff]   ;;  %v3431_v55 = vld [vmem:[%s4709_s3 + $0x34] ss:$8 sps:$4 sm:$0xff]   ;;  %v3429_v58 = vld [vmem:[%s4709_s3 + $0x30] ss:$8 sps:$4 sm:$0xff]  }
  0xed   :  { %1949 = vmatprep.subr.bf16.mxu1 %v3392_v20  ;;  %v3473_v57 = vld [vmem:[%s4709_s3 + $0x154] ss:$8 sps:$4 sm:$0xff]   ;;  %v3471_v59 = vld [vmem:[%s4709_s3 + $0x150] ss:$8 sps:$4 sm:$0xff]   ;;  %v3434_v60 = vld [vmem:[%s4709_s3 + $0x24] ss:$8 sps:$4 sm:$0xff]  }
  0xee   :  { %v3476_v61 = vld [vmem:[%s4709_s3 + $0x144] ss:$8 sps:$4 sm:$0xff]   ;;  %v3432_v63 = vld [vmem:[%s4709_s3 + $0x20] ss:$8 sps:$4 sm:$0xff]   ;;  %v3437_v1 = vld [vmem:[%s4709_s3 + $0x14] ss:$8 sps:$4 sm:$0xff]  }
  0xef   :  { %1909 = vmatpush2.bf16.msra.mxu0 %v3387_v21  ;;  %v3474_v0 = vld [vmem:[%s4709_s3 + $0x140] ss:$8 sps:$4 sm:$0xff]   ;;  %v3479_v2 = vld [vmem:[%s4709_s3 + $0x134] ss:$8 sps:$4 sm:$0xff]   ;;  %v3435_v4 = vld [vmem:[%s4709_s3 + $0x10] ss:$8 sps:$4 sm:$0xff]  }
  0xf0   :  { %1950 = vmatpush2.bf16.msra.mxu1 %v3390_v22  ;;  %1910 = vmatprep.subr.bf16.mxu0 %v3395_v23  ;;  %v3477_v5 = vld [vmem:[%s4709_s3 + $0x130] ss:$8 sps:$4 sm:$0xff]   ;;  %v3440_v6 = vld [vmem:[%s4709_s3 + $0x4] ss:$8 sps:$4 sm:$0xff]   ;;  %v3438_v8 = vld [vmem:[%s4709_s3] ss:$8 sps:$4 sm:$0xff]  }
  0xf1   :  { %1951 = vmatprep.subr.bf16.mxu1 %v3398_v24  ;;  %v3482_v7 = vld [vmem:[%s4709_s3 + $0x124] ss:$8 sps:$4 sm:$0xff]   ;;  %v3480_v9 = vld [vmem:[%s4709_s3 + $0x120] ss:$8 sps:$4 sm:$0xff]   ;;  %v3443_v10 = vld [vmem:[%s4709_s3 + $0xf4] ss:$8 sps:$4 sm:$0xff]  }
  0xf2   :  { %v3485_v11 = vld [vmem:[%s4709_s3 + $0x114] ss:$8 sps:$4 sm:$0xff]   ;;  %v3441_v12 = vld [vmem:[%s4709_s3 + $0xf0] ss:$8 sps:$4 sm:$0xff]   ;;  %v3446_v14 = vld [vmem:[%s4709_s3 + $0xe4] ss:$8 sps:$4 sm:$0xff]  }
  0xf3   :  { %1911 = vmatpush2.bf16.msra.mxu0 %v3393_v25  ;;  %v3483_v13 = vld [vmem:[%s4709_s3 + $0x110] ss:$8 sps:$4 sm:$0xff]   ;;  %v3488_v15 = vld [vmem:[%s4709_s3 + $0x104] ss:$8 sps:$4 sm:$0xff]   ;;  %v3444_v18 = vld [vmem:[%s4709_s3 + $0xe0] ss:$8 sps:$4 sm:$0xff]  }
  0xf4   :  { %1952 = vmatpush2.bf16.msra.mxu1 %v3396_v26  ;;  %1912 = vmatprep.subr.bf16.mxu0 %v3401_v27  ;;  %v3486_v19 = vld [vmem:[%s4709_s3 + $0x100] ss:$8 sps:$4 sm:$0xff]   ;;  %v3449_v20 = vld [vmem:[%s4709_s3 + $0xd4] ss:$8 sps:$4 sm:$0xff]   ;;  %v3447_v22 = vld [vmem:[%s4709_s3 + $0xd0] ss:$8 sps:$4 sm:$0xff]  }
  0xf5   :  { %1953 = vmatprep.subr.bf16.mxu1 %v3404_v28  ;;  %v3491_v21 = vld [vmem:[%s4709_s3 + $0x1f4] ss:$8 sps:$4 sm:$0xff]   ;;  %v3489_v23 = vld [vmem:[%s4709_s3 + $0x1f0] ss:$8 sps:$4 sm:$0xff]   ;;  %v3452_v24 = vld [vmem:[%s4709_s3 + $0xc4] ss:$8 sps:$4 sm:$0xff]  }
  0xf6   :  { %v3494_v25 = vld [vmem:[%s4709_s3 + $0x1e4] ss:$8 sps:$4 sm:$0xff]   ;;  %v3450_v26 = vld [vmem:[%s4709_s3 + $0xc0] ss:$8 sps:$4 sm:$0xff]   ;;  %v3455_v28 = vld [vmem:[%s4709_s3 + $0xb4] ss:$8 sps:$4 sm:$0xff]  }
  0xf7   :  { %1913 = vmatpush2.bf16.msra.mxu0 %v3399_v29  ;;  %v3492_v27 = vld [vmem:[%s4709_s3 + $0x1e0] ss:$8 sps:$4 sm:$0xff]   ;;  %v3497_v29 = vld [vmem:[%s4709_s3 + $0x1d4] ss:$8 sps:$4 sm:$0xff]  }
  0xf8   :  { %1954 = vmatpush2.bf16.msra.mxu1 %v3402_v30  ;;  %1914 = vmatprep.subr.bf16.mxu0 %v3407_v33  ;;  %v3453_v30 = vld [vmem:[%s4709_s3 + $0xb0] ss:$8 sps:$4 sm:$0xff]  }
  0xf9   :  { %1955 = vmatprep.subr.bf16.mxu1 %v3410_v34  ;;  %v3495_v33 = vld [vmem:[%s4709_s3 + $0x1d0] ss:$8 sps:$4 sm:$0xff]   ;;  %v3458_v34 = vld [vmem:[%s4709_s3 + $0xa4] ss:$8 sps:$4 sm:$0xff]  }
  0xfb   :  { %1915 = vmatpush2.bf16.msra.mxu0 %v3405_v35  ;;  %v3500_v35 = vld [vmem:[%s4709_s3 + $0x1c4] ss:$8 sps:$4 sm:$0xff]  }
  0xfc   :  { %1956 = vmatpush2.bf16.msra.mxu1 %v3408_v36  ;;  %1916 = vmatprep.subr.bf16.mxu0 %v3413_v37  ;;  %v3456_v36 = vld [vmem:[%s4709_s3 + $0xa0] ss:$8 sps:$4 sm:$0xff]  }
  0xfd   :  { %1957 = vmatprep.subr.bf16.mxu1 %v3416_v38  ;;  %v3498_v37 = vld [vmem:[%s4709_s3 + $0x1c0] ss:$8 sps:$4 sm:$0xff]   ;;  %v3461_v38 = vld [vmem:[%s4709_s3 + $0x94] ss:$8 sps:$4 sm:$0xff]  }
  0xff   :  { %1917 = vmatpush2.bf16.msra.mxu0 %v3411_v39  ;;  %v3503_v39 = vld [vmem:[%s4709_s3 + $0x1b4] ss:$8 sps:$4 sm:$0xff]  }
 0x100   :  { %1958 = vmatpush2.bf16.msra.mxu1 %v3414_v40  ;;  %2372 = vmatprep.subr.bf16.mxu0 %v3419_v41  ;;  %v342_v40 = vsub.s32 0, %v3714_v43  ;;  %v4598_v41 = vld [vmem:[%s4708_s2] sm:$0xf] }
 0x101   :  { %2413 = vmatprep.subr.bf16.mxu1 %v3467_v51  ;;  %v3504_v51 = vld [vmem:[%s4709_s3 + $0x1a0] ss:$8 sps:$4 sm:$0xff]  }
 0x102   :  { %v4431_v62 = vpop.f32.mrf.mxu0  ;;  %1919 = vmatmul.mubr.bf16.vlgmr.msra.gmra.mxu0 %v4030_v31  ;;  %v3423_v31 = vld [vmem:[%s4709_s3 + $0x50] ss:$8 sps:$4 sm:$0xff]  }
 0x103   :  { %v4433_v3 = vpop.f32.mrf.mxu1  ;;  %1960 = vmatmul.mubr.bf16.vlgmr.msra.gmra.mxu1 %v4034_v32  ;;  %2373 = vmatpush1.bf16.msra.mxu0 %v3417_v42  ;;  %v346_v42 = vsub.s32 1, %v3714_v43 }
 0x104   :  { %v4440_v46 = vpop.f32.mrf.mxu0  ;;  %2374 = vmatprep.subr.bf16.mxu0 %v3422_v44  ;;  %2414 = vmatpush1.bf16.msra.mxu1 %v3465_v56  ;;  %v3459_v44 = vld [vmem:[%s4709_s3 + $0x90] ss:$8 sps:$4 sm:$0xff]  }
 0x105   :  { %v4442_v47 = vpop.f32.mrf.mxu1  ;;  %2415 = vmatprep.subr.bf16.mxu1 %v3470_v52 }
 0x106   :  { %v1678_v17 = vpop.f32.mrf.mxu0 }
 0x107   :  { %v1719_v48 = vpop.f32.mrf.mxu1  ;;  %2375 = vmatpush1.bf16.msra.mxu0 %v3420_v45  ;;  %v3501_v45 = vld [vmem:[%s4709_s3 + $0x1b0] ss:$8 sps:$4 sm:$0xff]   ;;  %v343_v17 = vrot.slane %v4598_v41, %v342_v40 }
 0x108   :  { %v1679_v32 = vpop.f32.mrf.mxu0  ;;  %2376 = vmatprep.subr.bf16.mxu0 %v3425_v16  ;;  %2416 = vmatpush1.bf16.msra.mxu1 %v3468_v49  ;;  %v3464_v16 = vld [vmem:[%s4709_s3 + $0x84] ss:$8 sps:$4 sm:$0xff]   ;;  %v347_v48 = vrot.slane %v4598_v41, %v346_v42 }
 0x109   :  { %v1720_v50 = vpop.f32.mrf.mxu1  ;;  %2417 = vmatprep.subr.bf16.mxu1 %v3473_v57  ;;  %v1675_v32 = vadd.f32 %v4431_v62, %v343_v17  ;;  %v3509_v57 = vld [vmem:[%s4709_s3 + $0x194] ss:$8 sps:$4 sm:$0xff]  }
 0x10a   :  { %v1677_v50 = vadd.f32 %v4440_v46, %v347_v48 }
 0x10b   :  { %2377 = vmatpush1.bf16.msra.mxu0 %v3423_v31  ;;  %v3462_v31 = vld [vmem:[%s4709_s3 + $0x80] ss:$8 sps:$4 sm:$0xff]   ;;  %v1716_v56 = vadd.f32 %v4433_v3, %v1675_v32  ;;  %v3507_v3 = vld [vmem:[%s4709_s3 + $0x190] ss:$8 sps:$4 sm:$0xff]  }
 0x10c   :  { %2378 = vmatprep.subr.bf16.mxu0 %v3428_v53  ;;  %2418 = vmatpush1.bf16.msra.mxu1 %v3471_v59  ;;  %v3506_v53 = vld [vmem:[%s4709_s3 + $0x1a4] ss:$8 sps:$4 sm:$0xff]   ;;  %v1718_v49 = vadd.f32 %v4442_v47, %v1677_v50 }
 0x10d   :  { %2419 = vmatprep.subr.bf16.mxu1 %v3476_v61 }
 0x10f   :  { %2379 = vmatpush1.bf16.msra.mxu0 %v3426_v54 }
 0x110   :  { %2380 = vmatprep.subr.bf16.mxu0 %v3431_v55  ;;  %2420 = vmatpush1.bf16.msra.mxu1 %v3474_v0 }
 0x111   :  { %2421 = vmatprep.subr.bf16.mxu1 %v3479_v2  ;;  %v3512_v2 = vld [vmem:[%s4709_s3 + $0x184] ss:$8 sps:$4 sm:$0xff]  }
 0x113   :  { %2381 = vmatpush1.bf16.msra.mxu0 %v3429_v58 }
 0x114   :  { %2382 = vmatprep.subr.bf16.mxu0 %v3434_v60  ;;  %2422 = vmatpush1.bf16.msra.mxu1 %v3477_v5  ;;  %v3510_v5 = vld [vmem:[%s4709_s3 + $0x180] ss:$8 sps:$4 sm:$0xff]  }
 0x115   :  { %2423 = vmatprep.subr.bf16.mxu1 %v3482_v7 }
 0x117   :  { %2383 = vmatpush1.bf16.msra.mxu0 %v3432_v63 }
 0x118   :  { %2384 = vmatprep.subr.bf16.mxu0 %v3437_v1  ;;  %2424 = vmatpush1.bf16.msra.mxu1 %v3480_v9 }
 0x119   :  { %2425 = vmatprep.subr.bf16.mxu1 %v3485_v11 }
 0x11b   :  { %2385 = vmatpush1.bf16.msra.mxu0 %v3435_v4 }
 0x11c   :  { %2386 = vmatprep.subr.bf16.mxu0 %v3440_v6  ;;  %2426 = vmatpush1.bf16.msra.mxu1 %v3483_v13 }
 0x11d   :  { %2427 = vmatprep.subr.bf16.mxu1 %v3488_v15 }
 0x11f   :  { %2387 = vmatpush1.bf16.msra.mxu0 %v3438_v8 }
 0x120   :  { %2388 = vmatprep.subr.bf16.mxu0 %v3443_v10  ;;  %2428 = vmatpush1.bf16.msra.mxu1 %v3486_v19  ;;  %v3514_v19 = vld [vmem:[%s4711_s5 + $0x38] sm:$0xff]  }
 0x121   :  { %2429 = vmatprep.subr.bf16.mxu1 %v3491_v21  ;;  %v3516_v21 = vld [vmem:[%s4711_s5 + $0x30] sm:$0xff]  }
 0x123   :  { %2389 = vmatpush2.bf16.msra.mxu0 %v3441_v12 }
 0x124   :  { %2390 = vmatprep.subr.bf16.mxu0 %v3446_v14  ;;  %2430 = vmatpush2.bf16.msra.mxu1 %v3489_v23  ;;  %v3518_v23 = vld [vmem:[%s4711_s5 + $0x28] sm:$0xff]  }
 0x125   :  { %2431 = vmatprep.subr.bf16.mxu1 %v3494_v25  ;;  %v3520_v25 = vld [vmem:[%s4711_s5 + $0x20] sm:$0xff]  }
 0x127   :  { %2391 = vmatpush2.bf16.msra.mxu0 %v3444_v18  ;;  %v3513_v18 = vld [vmem:[%s4711_s5 + $0x78] sm:$0xff]  }
 0x128   :  { %2392 = vmatprep.subr.bf16.mxu0 %v3449_v20  ;;  %2432 = vmatpush2.bf16.msra.mxu1 %v3492_v27  ;;  %v3515_v20 = vld [vmem:[%s4711_s5 + $0x70] sm:$0xff]   ;;  %v3522_v27 = vld [vmem:[%s4711_s5 + $0x18] sm:$0xff]  }
 0x129   :  { %2433 = vmatprep.subr.bf16.mxu1 %v3497_v29  ;;  %v3524_v29 = vld [vmem:[%s4711_s5 + $0x10] sm:$0xff]  }
 0x12b   :  { %2393 = vmatpush2.bf16.msra.mxu0 %v3447_v22  ;;  %v3517_v22 = vld [vmem:[%s4711_s5 + $0x68] sm:$0xff]  }
 0x12c   :  { %2394 = vmatprep.subr.bf16.mxu0 %v3452_v24  ;;  %2434 = vmatpush2.bf16.msra.mxu1 %v3495_v33  ;;  %v3519_v24 = vld [vmem:[%s4711_s5 + $0x60] sm:$0xff]   ;;  %v354_v33 = vsub.s32 3, %v3714_v43 }
 0x12d   :  { %2435 = vmatprep.subr.bf16.mxu1 %v3500_v35 }
 0x12e   :  { %v355_v35 = vrot.slane %v4598_v41, %v354_v33 }
 0x12f   :  { %2395 = vmatpush2.bf16.msra.mxu0 %v3450_v26  ;;  %v3521_v26 = vld [vmem:[%s4711_s5 + $0x58] sm:$0xff]  }
 0x130   :  { %2396 = vmatprep.subr.bf16.mxu0 %v3455_v28  ;;  %2436 = vmatpush2.bf16.msra.mxu1 %v3498_v37  ;;  %v3523_v28 = vld [vmem:[%s4711_s5 + $0x50] sm:$0xff]  }
 0x131   :  { %2437 = vmatprep.subr.bf16.mxu1 %v3503_v39 }
 0x133   :  { %2397 = vmatpush2.bf16.msra.mxu0 %v3453_v30  ;;  %v350_v30 = vsub.s32 2, %v3714_v43  ;;  %v2990_v43 = vld [vmem:[%s4712_s6] ss:$0 sm:$0xff]  ;;  %s3556_s6 = smov [#allocation2]  }
 0x134   :  { %2398 = vmatprep.subr.bf16.mxu0 %v3458_v34  ;;  %2438 = vmatpush2.bf16.msra.mxu1 %v3501_v45  ;;  %s2662_s28 = sshll.u32 %s3556_s6, 4  ;;  %s2663_s28 = int_to_ptr.vmem [resolvable:$true] %s2662_s28 }
 0x135   :  { %2439 = vmatprep.subr.bf16.mxu1 %v3506_v53  ;;  %v351_v34 = vrot.slane %v4598_v41, %v350_v30  ;;  %s3533_s29 = scalar_lea.vmem %s2663_s28, 32  ;;  %p3538_p1 = scmp.lt.s32.totalorder %s2663_s28, %s2663_s28 }
 0x136   :  { %p3534_p0 = scmp.ne.s32.totalorder %s2663_s28, %s3533_s29  ;;  %p3539_p2 = scmp.lt.s32.totalorder %s3533_s29, %s3533_s29 }
 0x137   :  { %2399 = vmatpush2.bf16.msra.mxu0 %v3456_v36 }
 0x138   :  { %2400 = vmatprep.subr.bf16.mxu0 %v3461_v38  ;;  %2440 = vmatpush2.bf16.msra.mxu1 %v3504_v51  ;;  %p3540_p3 = por %p3539_p2, %p3538_p1 }
 0x139   :  { %2441 = vmatprep.subr.bf16.mxu1 %v3509_v57  ;;  %v3526_v57 = vld [vmem:[%s4711_s5 + $0x8] sm:$0xff]  }
 0x13a   :  { %p3541_p4 = pnand %p3540_p3, %p3534_p0 }
 0x13b   :  { %2401 = vmatpush2.bf16.msra.mxu0 %v3459_v44 }
 0x13c   :  { %2402 = vmatprep.subr.bf16.mxu0 %v3464_v16  ;;  %2442 = vmatpush2.bf16.msra.mxu1 %v3507_v3  ;;  %v3527_v3 = vld [vmem:[%s4711_s5 + $0x40] sm:$0xff]  }
 0x13d   :  { %2443 = vmatprep.subr.bf16.mxu1 %v3512_v2 }
 0x13f   :  { %2403 = vmatpush2.bf16.msra.mxu0 %v3462_v31 }
 0x140   :  { %2444 = vmatpush2.bf16.msra.mxu1 %v3510_v5  ;;  %3007 = vmatprep.subr.bf16.mxu0 %v3513_v18 }
 0x142   :  { %v1756_v52 = vpop.f32.mrf.mxu0 }
 0x143   :  { %v1797_v54 = vpop.f32.mrf.mxu1  ;;  %v1757_v55 = vadd.f32 %v1756_v52, %v1716_v56 }
 0x144   :  { %v1758_v62 = vpop.f32.mrf.mxu0 }
 0x145   :  { %v1799_v46 = vpop.f32.mrf.mxu1  ;;  %v1798_v58 = vadd.f32 %v1797_v54, %v1757_v55  ;;  %v1759_v59 = vadd.f32 %v1758_v62, %v1718_v49 }
 0x146   :  { %v1760_v60 = vpop.f32.mrf.mxu0 }
 0x147   :  { %v1801_v61 = vpop.f32.mrf.mxu1  ;;  %v1800_v63 = vadd.f32 %v1799_v46, %v1759_v59  ;;  %v1968_v47 = vmax.f32 %v1798_v58, 0.0  ;;  %v3525_v46 = vld [vmem:[%s4711_s5 + $0x48] sm:$0xff]   ;;  %v3528_v60 = vld [vmem:[%s4711_s5] sm:$0xff]  }
 0x148   :  { %v1761_v0 = vpop.f32.mrf.mxu0 }
 0x149   :  { %v1802_v1 = vpop.f32.mrf.mxu1  ;;  %v1969_v4 = vmax.f32 %v1800_v63, 0.0  ;;  %v1972_v7 = vpack.c.bf16 %v1968_v47, %v1968_v47  ;;  %v2040_v63 = vld [vmem:[%s4710_s4] sm:$0x3] }
 0x14a   :  { %v2045_v47 = vrot.slane %v2040_v63, %v342_v40  ;;  %v2049_v0 = vrot.slane %v2040_v63, %v346_v42 }
 0x14b   :  { %v1973_v6 = vpack.c.bf16 %v1969_v4, %v1969_v4 }
 0x14d   :  { %2404 = vmatprep.mubr.bf16.mxu0 %v1973_v6 }
 0x14e   :  { %2405 = vmatmul.mubr.bf16.vlgmr.msra.gmra.mxu0 %v1972_v7 }
 0x14f   :  { %3008 = vmatpush3.bf16.msra.mxu0 %v3514_v19 }
 0x150   :  { %3009 = vmatprep.subr.bf16.mxu0 %v3515_v20 }
 0x153   :  { %3010 = vmatpush3.bf16.msra.mxu0 %v3516_v21 }
 0x154   :  { %3011 = vmatprep.subr.bf16.mxu0 %v3517_v22 }
 0x157   :  { %3012 = vmatpush3.bf16.msra.mxu0 %v3518_v23 }
 0x158   :  { %3013 = vmatprep.subr.bf16.mxu0 %v3519_v24 }
 0x15b   :  { %3014 = vmatpush3.bf16.msra.mxu0 %v3520_v25 }
 0x15c   :  { %3015 = vmatprep.subr.bf16.mxu0 %v3521_v26 }
 0x15f   :  { %3016 = vmatpush3.bf16.msra.mxu0 %v3522_v27 }
 0x160   :  { %3017 = vmatprep.subr.bf16.mxu0 %v3523_v28 }
 0x163   :  { %3018 = vmatpush3.bf16.msra.mxu0 %v3524_v29 }
 0x164   :  { %3019 = vmatprep.subr.bf16.mxu0 %v3525_v46 }
 0x167   :  { %3020 = vmatpush3.bf16.msra.mxu0 %v3526_v57 }
 0x168   :  { %3021 = vmatprep.subr.bf16.mxu0 %v3527_v3 }
 0x16b   :  { %3022 = vmatpush3.bf16.msra.mxu0 %v3528_v60 }
 0x182   :  { %v1838_v8 = vpop.f32.mrf.mxu0 }
 0x183   :  { %v1879_v9 = vpop.f32.mrf.mxu1  ;;  %v1839_v36 = vadd.f32 %v1838_v8, %v351_v34 }
 0x184   :  { %v1840_v10 = vpop.f32.mrf.mxu0 }
 0x185   :  { %v1881_v11 = vpop.f32.mrf.mxu1  ;;  %v1841_v37 = vadd.f32 %v1840_v10, %v355_v35  ;;  %v1880_v38 = vadd.f32 %v1879_v9, %v1839_v36 }
 0x186   :  { %v1842_v12 = vpop.f32.mrf.mxu0 }
 0x187   :  { %v1883_v13 = vpop.f32.mrf.mxu1  ;;  %v1882_v45 = vadd.f32 %v1881_v11, %v1841_v37 }
 0x188   :  { %v1843_v14 = vpop.f32.mrf.mxu0 }
 0x189   :  { %v1884_v15 = vpop.f32.mrf.mxu1 }
 0x1c2   :  { %v1920_v39 = vpop.f32.mrf.mxu0 }
 0x1c3   :  { %v1961_v44 = vpop.f32.mrf.mxu1  ;;  %v1921_v16 = vadd.f32 %v1920_v39, %v1880_v38 }
 0x1c4   :  { %v1922_v17 = vpop.f32.mrf.mxu0 }
 0x1c5   :  { %v1963_v48 = vpop.f32.mrf.mxu1  ;;  %v1962_v31 = vadd.f32 %v1961_v44, %v1921_v16  ;;  %v1923_v32 = vadd.f32 %v1922_v17, %v1882_v45 }
 0x1c6   :  { %v1924_v50 = vpop.f32.mrf.mxu0 }
 0x1c7   :  { %v1965_v53 = vpop.f32.mrf.mxu1  ;;  %v1964_v56 = vadd.f32 %v1963_v48, %v1923_v32  ;;  %v1970_v51 = vmax.f32 %v1962_v31, 0.0 }
 0x1c8   :  { %v1925_v52 = vpop.f32.mrf.mxu0 }
 0x1c9   :  { %v1966_v54 = vpop.f32.mrf.mxu1  ;;  %v1971_v49 = vmax.f32 %v1964_v56, 0.0  ;;  %v1974_v41 = vpack.c.bf16 %v1970_v51, %v1970_v51 }
 0x1cb   :  { %v1975_v55 = vpack.c.bf16 %v1971_v49, %v1971_v49 }
 0x1cd   :  { %2445 = vmatprep.mubr.bf16.mxu1 %v1975_v55 }
 0x1ce   :  { %2446 = vmatmul.mubr.bf16.vlgmr.msra.gmra.mxu1 %v1974_v41 }
 0x20e   :  { %v2406_v62 = vpop.f32.mrf.mxu0 }
 0x20f   :  { %v2407_v1 = vadd.f32 %v2406_v62, %v2045_v47 }
 0x210   :  { %v2408_v58 = vpop.f32.mrf.mxu0 }
 0x211   :  { %v2409_v4 = vadd.f32 %v2408_v58, %v2049_v0 }
 0x212   :  { %v2410_v59 = vpop.f32.mrf.mxu0 }
 0x214   :  { %v2411_v61 = vpop.f32.mrf.mxu0 }
 0x28e   :  { %v2447_v2 = vpop.f32.mrf.mxu1 }
 0x28f   :  { %v2448_v5 = vadd.f32 %v2447_v2, %v2407_v1 }
 0x290   :  { %v2449_v6 = vpop.f32.mrf.mxu1 }
 0x291   :  { %v2450_v7 = vadd.f32 %v2449_v6, %v2409_v4  ;;  %v2454_v8 = vmax.f32 %v2448_v5, 0.0 }
 0x292   :  { %v2451_v9 = vpop.f32.mrf.mxu1 }
 0x293   :  { %v2455_v10 = vmax.f32 %v2450_v7, 0.0  ;;  %v2456_v13 = vpack.c.bf16 %v2454_v8, %v2454_v8 }
 0x294   :  { %v2452_v11 = vpop.f32.mrf.mxu1 }
 0x295   :  { %v2457_v12 = vpack.c.bf16 %v2455_v10, %v2455_v10 }
 0x297   :  { %2625 = vmatprep.mubr.bf16.mxu0 %v2457_v12 }
 0x298   :  { %2626 = vmatmul.mubr.bf16.vlgmr.msra.gmra.mxu0 %v2456_v13 }
 0x358   :  { %v3023_v14 = vpop.f32.mrf.mxu0 }
 0x35a   :  { %v3024_v40 = vpop.f32.mrf.mxu0 }
 0x35b   :  { %v3025_v42 = vadd.f32 %v3024_v40, %v3023_v14 }
 0x35c   :  { %v3026_v15 = vpop.f32.mrf.mxu0 }
 0x35d   :  { %v2628_v18 = vadd.f32 %v3025_v42, %v2990_v43 }
 0x35e   :  { %v3027_v19 = vpop.f32.mrf.mxu0 }
 0x35f   :  { %v2634_v20 = vsel %vm2633_vm0, %v2628_v18, -inf }
 0x360   :  { %v2635_v21 = vrot.slane %v2634_v20, 4 }
 0x362   :  { %v2636_v22 = vmax.f32 %v2634_v20, %v2635_v21 }
 0x364   :  { %v2637_v23 = vrot.slane %v2636_v22, 2 }
 0x366   :  { %v2638_v24 = vmax.f32 %v2636_v22, %v2637_v23 }
 0x368   :  { %v2639_v25 = vrot.slane %v2638_v24, 1 }
 0x36a   :  { %v2640_v26 = vmax.f32 %v2638_v24, %v2639_v25 }
 0x36c   :  { %v2641_v27 = vsub.f32 %v2628_v18, %v2640_v26 }
 0x36e   :  { %v2642_v28 = vmul.f32 1.442695, %v2641_v27 }
 0x370   :  { %3529 = vpow2.f32 %v2642_v28 }
 0x37d   :  { %v3530_v29 = vpop.eup %3529 }
 0x37e   :  { %v2644_v30 = vsel %vm2633_vm0, %v3530_v29, 0.0 }
 0x37f   :  { %v2645_v33 = vrot.slane %v2644_v30, 4 }
 0x381   :  { %v2646_v34 = vadd.f32 %v2645_v33, %v2644_v30 }
 0x383   :  { %v2647_v35 = vrot.slane %v2646_v34, 2 }
 0x385   :  { %v2648_v36 = vadd.f32 %v2647_v35, %v2646_v34 }
 0x387   :  { %v2649_v37 = vrot.slane %v2648_v36, 1 }
 0x389   :  { %v2650_v38 = vadd.f32 %v2649_v37, %v2648_v36 }
 0x38b   :  { %3531 = vlog2.f32 %v2650_v38 }
 0x398   :  { %v3532_v39 = vpop.eup %3531 }
 0x399   :  { %v2652_v44 = vmul.f32 0.6931472, %v3532_v39 }
 0x39b   :  { %v2653_v45 = vadd.f32 %v2652_v44, %v2640_v26 }
 0x39d   :  { %v2654_v16 = vsub.f32 %v2628_v18, %v2653_v45 }
 0x39f   :  { %2655 = vst [vmem:[#allocation2] sm:$0x3] %v2654_v16 }
 0x3a0   :  { %3544 = shalt.err (!%p3541_p4)
}
 0x3a1   :  { %2665 = dma.vmem_to_hbm [thread:$0]  %s2663_s28, 32, %s4713_s7, [#allocation3]  }
 0x3a2   :  { %3553 = dma.done.wait [#allocation3], 32  }
 0x3a3   :  { %3554 = vsyncadd [#allocation3], 4294967264 }
 0x3a4   :  { %2669 = vsyncpa [#allocation3], 1 }

</bundles_post_ra>
